<compile_context>
chip_gen: v5e
topology: v5e:2x2
jax: 0.10.0
libtpu: 0.0.40
codegen_flags: <defaults>
</compile_context>

<pallas_src>
import math
import functools

import jax
import jax.numpy as jnp
from jax import lax
from jax.experimental import pallas as pl
from jax.experimental.pallas import tpu as pltpu


# ---------------------------------------------------------------------------
# In-kernel helpers (traced Python, all operate on a single (S, C) tile)
# ---------------------------------------------------------------------------
def _gn_normalize(x, p_mat):
    """Two-pass GroupNorm statistics on the MXU.

    x: (S, C); p_mat: (C, C) group-averaging matrix with 1/(S*group_size) on
    same-group entries. Returns (x - mu) * rsqrt(var + eps) (no affine)."""
    s = x.shape[0]
    ones_row = jnp.ones((1, s), jnp.float32)
    xsum = jnp.dot(ones_row, x, preferred_element_type=jnp.float32)          # (1, C)
    mu = jnp.dot(xsum, p_mat, preferred_element_type=jnp.float32)            # (1, C)
    xc = x - mu
    sqsum = jnp.dot(ones_row, xc * xc, preferred_element_type=jnp.float32)   # (1, C)
    var = jnp.dot(sqsum, p_mat, preferred_element_type=jnp.float32)          # (1, C)
    return xc * lax.rsqrt(var + 1e-5)


def _gn_swish(x, p_mat, gamma, beta):
    g = _gn_normalize(x, p_mat) * gamma + beta
    return g / (1.0 + jnp.exp(-g))                     # swish = g * sigmoid(g)


def _conv3x3(h, hp_ref, w_ref, *, width):
    """3x3 'same' conv as 9 shifted (S,Cin)@(Cin,Cout) MXU matmuls.

    hp_ref is a flat zero-padded scratch of shape (S + 2*(width+1), Cin): image
    rows live at [width+1, width+1+S).  Each tap (kh, kw) is then one contiguous
    static slice; vertical out-of-range taps land in the zero padding and the
    horizontal wrap is removed with a per-column mask."""
    S, Cin = h.shape
    Cout = w_ref.shape[2]
    pad = width + 1
    hp_ref[...] = jnp.zeros_like(hp_ref)
    hp_ref[pad:pad + S, :] = h

    col = lax.broadcasted_iota(jnp.int32, (S, Cin), 0) % width
    mask_l = (col >= 1).astype(jnp.float32)            # kw=0 (dw=-1): needs w >= 1
    mask_r = (col <= width - 2).astype(jnp.float32)    # kw=2 (dw=+1): needs w <= W-2

    acc = jnp.zeros((S, Cout), jnp.float32)
    for kh in range(3):
        for kw in range(3):
            off = (kh - 1) * width + (kw - 1)
            op = hp_ref[pad + off:pad + off + S, :]
            if kw == 0:
                op = op * mask_l
            elif kw == 2:
                op = op * mask_r
            acc = acc + jnp.dot(op, w_ref[kh * 3 + kw],
                                preferred_element_type=jnp.float32)
    return acc


def _attention(y, p_mat, wq_ref, wk_ref, wv_ref, bq_ref, bk_ref, bv_ref,
               wo_ref, bo_ref, *, n_head):
    """GroupNorm (affine folded into qkv weights) + spatial softmax attention + residual."""
    xn = _gn_normalize(y, p_mat)
    out = None
    # TODO(synk): full (S,S) scores stay in VMEM; add flash-style KV tiling before
    #             reusing at real diffusion resolutions (v7x has only 64 MiB VMEM).
    for h in range(n_head):                    # static loop; leading-axis ref index is free
        q = jnp.dot(xn, wq_ref[h], preferred_element_type=jnp.float32) + bq_ref[h]
        k = jnp.dot(xn, wk_ref[h], preferred_element_type=jnp.float32) + bk_ref[h]
        v = jnp.dot(xn, wv_ref[h], preferred_element_type=jnp.float32) + bv_ref[h]
        # contract last dims directly (no k.T relayout); 1/sqrt(C) folded into q.
        sc = lax.dot_general(q, k, (((1,), (1,)), ((), ())),
                             preferred_element_type=jnp.float32)              # (S, S)
        sc = sc - jnp.max(sc, axis=-1, keepdims=True)
        e = jnp.exp(sc)
        prob = e / jnp.sum(e, axis=-1, keepdims=True)                         # exact
        ho = jnp.dot(prob, v, preferred_element_type=jnp.float32)             # (S, hd)
        contrib = jnp.dot(ho, wo_ref[h], preferred_element_type=jnp.float32)  # (S, C)
        out = contrib if out is None else out + contrib
    return out + bo_ref[...] + y


# ---------------------------------------------------------------------------
# Fused kernel: one grid step == one batch element, everything VMEM-resident
# ---------------------------------------------------------------------------
def _fused_kernel(x_ref, p1_ref, p2_ref,
                  g1_ref, be1_ref, w1_ref, b1_ref,
                  g2_ref, be2_ref, w2_ref, b2_ref,
                  wres_ref, bres_ref,
                  wq_ref, wk_ref, wv_ref, bq_ref, bk_ref, bv_ref, wo_ref, bo_ref,
                  o_ref,
                  hp1_ref, hp2_ref,
                  *, width, n_head, has_res_conv):
    x = x_ref[0]                                                   # (S, Cin)

    # ---- block1: GN + Swish -> Conv3x3 (+ conv bias with noise already folded in)
    h1 = _gn_swish(x, p1_ref[...], g1_ref[...], be1_ref[...])
    h = _conv3x3(h1, hp1_ref, w1_ref, width=width) + b1_ref[0]

    # ---- block2: GN + Swish -> Conv3x3
    h2 = _gn_swish(h, p2_ref[...], g2_ref[...], be2_ref[...])
    h = _conv3x3(h2, hp2_ref, w2_ref, width=width) + b2_ref[...]

    # ---- residual: res_conv(x) (1x1) when dim != dim_out, else x
    if has_res_conv:
        res = (jnp.dot(x, wres_ref[...], preferred_element_type=jnp.float32)
               + bres_ref[...])
    else:
        res = x
    y = h + res

    # ---- SelfAttention (GN averaging matrix shared with GN2: same C, groups, S)
    o_ref[0] = _attention(y, p2_ref[...], wq_ref, wk_ref, wv_ref,
                          bq_ref, bk_ref, bv_ref, wo_ref, bo_ref, n_head=n_head)


# ---------------------------------------------------------------------------
# Wrapper
# ---------------------------------------------------------------------------
def _group_avg_matrix(channels, groups, spatial):
    gs = channels // groups
    gidx = jnp.arange(channels) // gs
    mask = (gidx[:, None] == gidx[None, :]).astype(jnp.float32)
    return mask / float(spatial * gs)


def resnet_bloc_with_attn(x_nchw, time_emb, p, *, n_head=1, norm_groups=32):
    """Full ResnetBlocWithAttn forward (with_attn=True, dropout=0 -> Identity)."""
    B, Cin, H, W = x_nchw.shape
    S = H * W
    Cout = p["w1"].shape[0]
    hd = Cout // n_head
    f32 = jnp.float32

    x_bsc = jnp.transpose(x_nchw, (0, 2, 3, 1)).reshape(B, S, Cin).astype(f32)

    # FeatureWiseAffine: tiny Linear(time_emb) in plain JAX, folded into conv1's bias.
    noise = time_emb.astype(f32) @ p["wn"].T.astype(f32) + p["bn"].astype(f32)   # (B, Cout)
    bias1 = (p["b1"].astype(f32)[None, :] + noise).reshape(B, 1, Cout)

    # 3x3 conv weights as (9, Cin, Cout) per-tap matrices, tap index = kh*3 + kw.
    w1 = jnp.transpose(p["w1"], (2, 3, 1, 0)).reshape(9, Cin, Cout).astype(f32)
    w2 = jnp.transpose(p["w2"], (2, 3, 1, 0)).reshape(9, Cout, Cout).astype(f32)
    b2 = p["b2"].reshape(1, Cout).astype(f32)

    p1 = _group_avg_matrix(Cin, norm_groups, S)
    p2 = _group_avg_matrix(Cout, norm_groups, S)     # shared by GN2 and attention GN

    has_res_conv = (Cin != Cout)
    if has_res_conv:
        wres = jnp.transpose(p["wres"].reshape(Cout, Cin)).astype(f32)   # (Cin, Cout)
        bres = p["bres"].reshape(1, Cout).astype(f32)
    else:
        wres = jnp.zeros((Cin, Cout), f32)           # unused (identity residual)
        bres = jnp.zeros((1, Cout), f32)

    # Attention: fold GroupNorm gamma/beta and the 1/sqrt(C) scale into the qkv
    # projection; pre-split heads (no lane slicing in-kernel).
    scale = 1.0 / math.sqrt(Cout)
    wqkv_t = jnp.transpose(p["wqkv"].reshape(3 * Cout, Cout)).astype(f32)        # (C, 3C)
    wg = p["gna_g"].reshape(Cout, 1).astype(f32) * wqkv_t
    bqkv = (p["gna_b"].reshape(1, Cout).astype(f32) @ wqkv_t)[0]                 # (3C,)

    def _split(arr, part):    # head-major qkv layout: per head [q | k | v]
        return jnp.stack(
            [arr[..., n * 3 * hd + part * hd: n * 3 * hd + (part + 1) * hd]
             for n in range(n_head)], axis=0)

    wq = _split(wg, 0) * scale                       # (n_head, C, hd)
    wk = _split(wg, 1)
    wv = _split(wg, 2)
    bq = _split(bqkv, 0).reshape(n_head, 1, hd) * scale
    bk = _split(bqkv, 1).reshape(n_head, 1, hd)
    bv = _split(bqkv, 2).reshape(n_head, 1, hd)
    wout_t = jnp.transpose(p["wout"].reshape(Cout, Cout)).astype(f32)            # (C_in, C_out)
    wo = jnp.stack([wout_t[n * hd:(n + 1) * hd, :] for n in range(n_head)], axis=0)
    bo = p["bout"].reshape(1, Cout).astype(f32)

    kernel = functools.partial(_fused_kernel, width=W, n_head=n_head,
                               has_res_conv=has_res_conv)

    def rep(shp):             # grid-invariant (weight/constant) block
        return pl.BlockSpec(shp, lambda b, _s=shp: (0,) * len(_s))

    y = pl.pallas_call(
        kernel,
        out_shape=jax.ShapeDtypeStruct((B, S, Cout), f32),
        grid=(B,),
        in_specs=[
            pl.BlockSpec((1, S, Cin), lambda b: (b, 0, 0)),        # x
            rep((Cin, Cin)),                                       # GN1 group-avg matrix
            rep((Cout, Cout)),                                     # GN2/attn group-avg matrix
            rep((1, Cin)), rep((1, Cin)),                          # GN1 gamma/beta
            rep((9, Cin, Cout)),                                   # conv1 taps
            pl.BlockSpec((1, 1, Cout), lambda b: (b, 0, 0)),       # conv1 bias + noise (per-batch)
            rep((1, Cout)), rep((1, Cout)),                        # GN2 gamma/beta
            rep((9, Cout, Cout)),                                  # conv2 taps
            rep((1, Cout)),                                        # conv2 bias
            rep((Cin, Cout)), rep((1, Cout)),                      # res 1x1 conv
            rep((n_head, Cout, hd)), rep((n_head, Cout, hd)), rep((n_head, Cout, hd)),  # wq/wk/wv
            rep((n_head, 1, hd)), rep((n_head, 1, hd)), rep((n_head, 1, hd)),           # bq/bk/bv
            rep((n_head, hd, Cout)),                               # per-head rows of W_out
            rep((1, Cout)),                                        # out-proj bias
        ],
        out_specs=pl.BlockSpec((1, S, Cout), lambda b: (b, 0, 0)),
        scratch_shapes=[
            pltpu.VMEM((S + 2 * (W + 1), Cin), f32),               # padded conv1 input
            pltpu.VMEM((S + 2 * (W + 1), Cout), f32),              # padded conv2 input
        ],
        compiler_params=pltpu.CompilerParams(
            # v7x: two TensorCores split the batch; on single-TC v5e/v6e the extra
            # grid step is ~0.35us, negligible once the whole block is one kernel.
            dimension_semantics=("parallel",)),
    )(x_bsc, p1, p2,
      p["gn1_g"].reshape(1, Cin).astype(f32), p["gn1_b"].reshape(1, Cin).astype(f32),
      w1, bias1,
      p["gn2_g"].reshape(1, Cout).astype(f32), p["gn2_b"].reshape(1, Cout).astype(f32),
      w2, b2, wres, bres,
      wq, wk, wv, bq, bk, bv, wo, bo)

    return jnp.transpose(y.reshape(B, H, W, Cout), (0, 3, 1, 2))


# ---------------------------------------------------------------------------
# Pure-JAX reference (mirrors the PyTorch module) for correctness checking
# ---------------------------------------------------------------------------
def _ref_groupnorm(x, groups, gamma, beta, eps=1e-5):
    B, C, H, W = x.shape
    xg = x.reshape(B, groups, C // groups, H, W)
    mu = xg.mean(axis=(2, 3, 4), keepdims=True)
    var = ((xg - mu) ** 2).mean(axis=(2, 3, 4), keepdims=True)
    xn = ((xg - mu) / jnp.sqrt(var + eps)).reshape(B, C, H, W)
    return xn * gamma.reshape(1, C, 1, 1) + beta.reshape(1, C, 1, 1)


def _ref_swish(x):
    return x * jax.nn.sigmoid(x)


def _ref_conv3x3(x, w, b):
    y = lax.conv_general_dilated(x, w, (1, 1), ((1, 1), (1, 1)),
                                 dimension_numbers=("NCHW", "OIHW", "NCHW"))
    return y + b.reshape(1, -1, 1, 1)


def _ref_attention(x, wqkv, wout, bout, gamma, beta, *, n_head, norm_groups):
    B, C, H, W = x.shape
    hd = C // n_head
    xn = _ref_groupnorm(x, norm_groups, gamma, beta)
    qkv = jnp.einsum("oc,bchw->bohw", wqkv.reshape(3 * C, C), xn)
    qkv = qkv.reshape(B, n_head, hd * 3, H, W)
    q, k, v = jnp.split(qkv, 3, axis=2)
    attn = jnp.einsum("bnchw,bncyx->bnhwyx", q, k) / math.sqrt(C)
    attn = attn.reshape(B, n_head, H, W, H * W)
    attn = jax.nn.softmax(attn, axis=-1)
    attn = attn.reshape(B, n_head, H, W, H, W)
    out = jnp.einsum("bnhwyx,bncyx->bnchw", attn, v).reshape(B, C, H, W)
    out = jnp.einsum("oc,bchw->bohw", wout.reshape(C, C), out) + bout.reshape(1, C, 1, 1)
    return out + x


def reference(x, time_emb, p, *, n_head, norm_groups):
    Cin = x.shape[1]
    Cout = p["w1"].shape[0]
    h = _ref_conv3x3(_ref_swish(_ref_groupnorm(x, norm_groups, p["gn1_g"], p["gn1_b"])),
                     p["w1"], p["b1"])
    noise = time_emb @ p["wn"].T + p["bn"]
    h = h + noise[:, :, None, None]
    h = _ref_conv3x3(_ref_swish(_ref_groupnorm(h, norm_groups, p["gn2_g"], p["gn2_b"])),
                     p["w2"], p["b2"])
    if Cin != Cout:
        res = (jnp.einsum("oc,bchw->bohw", p["wres"].reshape(Cout, Cin), x)
               + p["bres"].reshape(1, Cout, 1, 1))
    else:
        res = x
    y = h + res
    return _ref_attention(y, p["wqkv"], p["wout"], p["bout"], p["gna_g"], p["gna_b"],
                          n_head=n_head, norm_groups=norm_groups)


# ---------------------------------------------------------------------------
if __name__ == "__main__":
    B, DIM, DIM_OUT, H, W = 2, 16, 32, 8, 8
    NORM_GROUPS = 4
    N_HEAD = 1          # ResnetBlocWithAttn builds SelfAttention(dim_out) -> default n_head=1
    NOISE_DIM = 32

    key = jax.random.PRNGKey(0)
    ks = jax.random.split(key, 20)

    x = jax.random.normal(ks[0], (B, DIM, H, W), dtype=jnp.float32)
    t = jax.random.normal(ks[1], (B, NOISE_DIM), dtype=jnp.float32)

    p = {
        "gn1_g": 1.0 + 0.1 * jax.random.normal(ks[2], (DIM,), jnp.float32),
        "gn1_b": 0.1 * jax.random.normal(ks[3], (DIM,), jnp.float32),
        "w1": 0.1 * jax.random.normal(ks[4], (DIM_OUT, DIM, 3, 3), jnp.float32),
        "b1": 0.05 * jax.random.normal(ks[5], (DIM_OUT,), jnp.float32),
        "wn": 0.1 * jax.random.normal(ks[6], (DIM_OUT, NOISE_DIM), jnp.float32),
        "bn": 0.05 * jax.random.normal(ks[7], (DIM_OUT,), jnp.float32),
        "gn2_g": 1.0 + 0.1 * jax.random.normal(ks[8], (DIM_OUT,), jnp.float32),
        "gn2_b": 0.1 * jax.random.normal(ks[9], (DIM_OUT,), jnp.float32),
        "w2": 0.1 * jax.random.normal(ks[10], (DIM_OUT, DIM_OUT, 3, 3), jnp.float32),
        "b2": 0.05 * jax.random.normal(ks[11], (DIM_OUT,), jnp.float32),
        "wres": 0.1 * jax.random.normal(ks[12], (DIM_OUT, DIM, 1, 1), jnp.float32),
        "bres": 0.05 * jax.random.normal(ks[13], (DIM_OUT,), jnp.float32),
        "gna_g": 1.0 + 0.1 * jax.random.normal(ks[14], (DIM_OUT,), jnp.float32),
        "gna_b": 0.1 * jax.random.normal(ks[15], (DIM_OUT,), jnp.float32),
        "wqkv": 0.1 * jax.random.normal(ks[16], (3 * DIM_OUT, DIM_OUT, 1, 1), jnp.float32),
        "wout": 0.1 * jax.random.normal(ks[17], (DIM_OUT, DIM_OUT, 1, 1), jnp.float32),
        "bout": 0.05 * jax.random.normal(ks[18], (DIM_OUT,), jnp.float32),
    }

    y = resnet_bloc_with_attn(x, t, p, n_head=N_HEAD, norm_groups=NORM_GROUPS)
    y = jax.block_until_ready(y)

    y_ref = reference(x, t, p, n_head=N_HEAD, norm_groups=NORM_GROUPS)
    assert y.shape == (B, DIM_OUT, H, W)
    max_err = float(jnp.max(jnp.abs(y - y_ref)))
    # Exact softmax reciprocal -> tolerance tightened from 2e-3 to 1e-3.
    assert jnp.allclose(y, y_ref, atol=1e-3, rtol=1e-3), max_err

    print("KERNEL_OK")
</pallas_src>

<mosaic_0001>
module attributes {stable_mosaic.version = 11 : i64} {
  func.func @_fused_kernel(%arg0: i32, %arg1: memref<1x64x16xf32, #tpu.memory_space<vmem>>, %arg2: memref<16x16xf32, #tpu.memory_space<vmem>>, %arg3: memref<32x32xf32, #tpu.memory_space<vmem>>, %arg4: memref<1x16xf32, #tpu.memory_space<vmem>>, %arg5: memref<1x16xf32, #tpu.memory_space<vmem>>, %arg6: memref<9x16x32xf32, #tpu.memory_space<vmem>>, %arg7: memref<1x1x32xf32, #tpu.memory_space<vmem>>, %arg8: memref<1x32xf32, #tpu.memory_space<vmem>>, %arg9: memref<1x32xf32, #tpu.memory_space<vmem>>, %arg10: memref<9x32x32xf32, #tpu.memory_space<vmem>>, %arg11: memref<1x32xf32, #tpu.memory_space<vmem>>, %arg12: memref<16x32xf32, #tpu.memory_space<vmem>>, %arg13: memref<1x32xf32, #tpu.memory_space<vmem>>, %arg14: memref<1x32x32xf32, #tpu.memory_space<vmem>>, %arg15: memref<1x32x32xf32, #tpu.memory_space<vmem>>, %arg16: memref<1x32x32xf32, #tpu.memory_space<vmem>>, %arg17: memref<1x1x32xf32, #tpu.memory_space<vmem>>, %arg18: memref<1x1x32xf32, #tpu.memory_space<vmem>>, %arg19: memref<1x1x32xf32, #tpu.memory_space<vmem>>, %arg20: memref<1x32x32xf32, #tpu.memory_space<vmem>>, %arg21: memref<1x32xf32, #tpu.memory_space<vmem>>, %arg22: memref<1x64x32xf32, #tpu.memory_space<vmem>>, %arg23: memref<82x16xf32, #tpu.memory_space<vmem>>, %arg24: memref<82x32xf32, #tpu.memory_space<vmem>>) attributes {dimension_semantics = [#tpu.dimension_semantics<parallel>], iteration_bounds = array<i64: 2>, scalar_prefetch = 0 : i64, scratch_operands = 2 : i64, tpu.core_type = #tpu.core_type<tc>, window_params = [{transform_indices = @transform_0, window_bounds = array<i64: 1, 64, 16>}, {pipeline_mode = #tpu.pipeline_mode<synchronous>, transform_indices = @transform_1, window_bounds = array<i64: 16, 16>}, {pipeline_mode = #tpu.pipeline_mode<synchronous>, transform_indices = @transform_2, window_bounds = array<i64: 32, 32>}, {pipeline_mode = #tpu.pipeline_mode<synchronous>, transform_indices = @transform_3, window_bounds = array<i64: 1, 16>}, {pipeline_mode = #tpu.pipeline_mode<synchronous>, transform_indices = @transform_4, window_bounds = array<i64: 1, 16>}, {pipeline_mode = #tpu.pipeline_mode<synchronous>, transform_indices = @transform_5, window_bounds = array<i64: 9, 16, 32>}, {transform_indices = @transform_6, window_bounds = array<i64: 1, 1, 32>}, {pipeline_mode = #tpu.pipeline_mode<synchronous>, transform_indices = @transform_7, window_bounds = array<i64: 1, 32>}, {pipeline_mode = #tpu.pipeline_mode<synchronous>, transform_indices = @transform_8, window_bounds = array<i64: 1, 32>}, {pipeline_mode = #tpu.pipeline_mode<synchronous>, transform_indices = @transform_9, window_bounds = array<i64: 9, 32, 32>}, {pipeline_mode = #tpu.pipeline_mode<synchronous>, transform_indices = @transform_10, window_bounds = array<i64: 1, 32>}, {pipeline_mode = #tpu.pipeline_mode<synchronous>, transform_indices = @transform_11, window_bounds = array<i64: 16, 32>}, {pipeline_mode = #tpu.pipeline_mode<synchronous>, transform_indices = @transform_12, window_bounds = array<i64: 1, 32>}, {pipeline_mode = #tpu.pipeline_mode<synchronous>, transform_indices = @transform_13, window_bounds = array<i64: 1, 32, 32>}, {pipeline_mode = #tpu.pipeline_mode<synchronous>, transform_indices = @transform_14, window_bounds = array<i64: 1, 32, 32>}, {pipeline_mode = #tpu.pipeline_mode<synchronous>, transform_indices = @transform_15, window_bounds = array<i64: 1, 32, 32>}, {pipeline_mode = #tpu.pipeline_mode<synchronous>, transform_indices = @transform_16, window_bounds = array<i64: 1, 1, 32>}, {pipeline_mode = #tpu.pipeline_mode<synchronous>, transform_indices = @transform_17, window_bounds = array<i64: 1, 1, 32>}, {pipeline_mode = #tpu.pipeline_mode<synchronous>, transform_indices = @transform_18, window_bounds = array<i64: 1, 1, 32>}, {pipeline_mode = #tpu.pipeline_mode<synchronous>, transform_indices = @transform_19, window_bounds = array<i64: 1, 32, 32>}, {pipeline_mode = #tpu.pipeline_mode<synchronous>, transform_indices = @transform_20, window_bounds = array<i64: 1, 32>}, {transform_indices = @transform_21, window_bounds = array<i64: 1, 64, 32>}]} {
    %c0 = arith.constant 0 : index
    %c0_0 = arith.constant 0 : index
    %c0_1 = arith.constant 0 : index
    %0 = vector.load %arg1[%c0, %c0_0, %c0_1] : memref<1x64x16xf32, #tpu.memory_space<vmem>>, vector<1x64x16xf32>
    %1 = vector.shape_cast %0 : vector<1x64x16xf32> to vector<64x16xf32>
    %c0_2 = arith.constant 0 : index
    %c0_3 = arith.constant 0 : index
    %2 = vector.load %arg2[%c0_2, %c0_3] : memref<16x16xf32, #tpu.memory_space<vmem>>, vector<16x16xf32>
    %c0_4 = arith.constant 0 : index
    %c0_5 = arith.constant 0 : index
    %3 = vector.load %arg4[%c0_4, %c0_5] : memref<1x16xf32, #tpu.memory_space<vmem>>, vector<1x16xf32>
    %c0_6 = arith.constant 0 : index
    %c0_7 = arith.constant 0 : index
    %4 = vector.load %arg5[%c0_6, %c0_7] : memref<1x16xf32, #tpu.memory_space<vmem>>, vector<1x16xf32>
    %cst = arith.constant 1.000000e+00 : f32
    %5 = vector.broadcast %cst : f32 to vector<1x64xf32>
    %cst_8 = arith.constant dense<0.000000e+00> : vector<1x16xf32>
    %6 = tpu.matmul %5, %1, %cst_8 {dimension_numbers = #tpu.dot_dimension_numbers<[1], [0], [0], [1], [0, 0, 1, 1], [], []>} : vector<1x64xf32>, vector<64x16xf32>, vector<1x16xf32> -> vector<1x16xf32>
    %cst_9 = arith.constant dense<0.000000e+00> : vector<1x16xf32>
    %7 = tpu.matmul %6, %2, %cst_9 {dimension_numbers = #tpu.dot_dimension_numbers<[1], [0], [0], [1], [0, 0, 1, 1], [], []>} : vector<1x16xf32>, vector<16x16xf32>, vector<1x16xf32> -> vector<1x16xf32>
    %8 = vector.broadcast %7 : vector<1x16xf32> to vector<64x16xf32>
    %9 = arith.subf %1, %8 : vector<64x16xf32>
    %10 = arith.mulf %9, %9 : vector<64x16xf32>
    %cst_10 = arith.constant dense<0.000000e+00> : vector<1x16xf32>
    %11 = tpu.matmul %5, %10, %cst_10 {dimension_numbers = #tpu.dot_dimension_numbers<[1], [0], [0], [1], [0, 0, 1, 1], [], []>} : vector<1x64xf32>, vector<64x16xf32>, vector<1x16xf32> -> vector<1x16xf32>
    %cst_11 = arith.constant dense<0.000000e+00> : vector<1x16xf32>
    %12 = tpu.matmul %11, %2, %cst_11 {dimension_numbers = #tpu.dot_dimension_numbers<[1], [0], [0], [1], [0, 0, 1, 1], [], []>} : vector<1x16xf32>, vector<16x16xf32>, vector<1x16xf32> -> vector<1x16xf32>
    %cst_12 = arith.constant 9.99999974E-6 : f32
    %13 = vector.broadcast %cst_12 : f32 to vector<1x16xf32>
    %14 = arith.addf %12, %13 : vector<1x16xf32>
    %15 = math.rsqrt %14 : vector<1x16xf32>
    %16 = vector.broadcast %15 : vector<1x16xf32> to vector<64x16xf32>
    %17 = arith.mulf %9, %16 : vector<64x16xf32>
    %18 = vector.broadcast %3 : vector<1x16xf32> to vector<64x16xf32>
    %19 = arith.mulf %17, %18 : vector<64x16xf32>
    %20 = vector.broadcast %4 : vector<1x16xf32> to vector<64x16xf32>
    %21 = arith.addf %19, %20 : vector<64x16xf32>
    %cst_13 = arith.constant 0.000000e+00 : f32
    %22 = vector.broadcast %cst_13 : f32 to vector<64x16xf32>
    %23 = arith.subf %22, %21 : vector<64x16xf32>
    %24 = math.exp %23 : vector<64x16xf32>
    %cst_14 = arith.constant 1.000000e+00 : f32
    %25 = vector.broadcast %cst_14 : f32 to vector<64x16xf32>
    %26 = arith.addf %25, %24 : vector<64x16xf32>
    %27 = arith.divf %21, %26 : vector<64x16xf32>
    %cst_15 = arith.constant 0.000000e+00 : f32
    %28 = vector.broadcast %cst_15 : f32 to vector<82x16xf32>
    %c0_16 = arith.constant 0 : index
    %c0_17 = arith.constant 0 : index
    %29 = vector.load %arg23[%c0_16, %c0_17] : memref<82x16xf32, #tpu.memory_space<vmem>>, vector<82x16xf32>
    tpu.vector_store %arg23[%c0_16, %c0_17], %28 {strides = array<i32>} : memref<82x16xf32, #tpu.memory_space<vmem>>, vector<82x16xf32>,
    %c9 = arith.constant 9 : index
    %c0_18 = arith.constant 0 : index
    %30 = vector.load %arg23[%c9, %c0_18] : memref<82x16xf32, #tpu.memory_space<vmem>>, vector<64x16xf32>
    tpu.vector_store %arg23[%c9, %c0_18], %27 {strides = array<i32>} : memref<82x16xf32, #tpu.memory_space<vmem>>, vector<64x16xf32>,
    %31 = tpu.iota {dimensions = array<i32: 0>} : vector<64x16xi32>
    %c8_i32 = arith.constant 8 : i32
    %c0_i32 = arith.constant 0 : i32
    %32 = arith.cmpi eq, %c8_i32, %c0_i32 : i32
    %c1_i32 = arith.constant 1 : i32
    %33 = arith.select %32, %c1_i32, %c8_i32 : i32
    %34 = vector.broadcast %33 : i32 to vector<64x16xi32>
    %35 = arith.remsi %31, %34 : vector<64x16xi32>
    %c0_i32_19 = arith.constant 0 : i32
    %36 = vector.broadcast %c0_i32_19 : i32 to vector<64x16xi32>
    %37 = arith.cmpi ne, %35, %36 : vector<64x16xi32>
    %c0_i32_20 = arith.constant 0 : i32
    %38 = vector.broadcast %c0_i32_20 : i32 to vector<64x16xi32>
    %39 = arith.cmpi slt, %35, %38 : vector<64x16xi32>
    %c0_i32_21 = arith.constant 0 : i32
    %40 = arith.cmpi slt, %33, %c0_i32_21 : i32
    %41 = vector.broadcast %40 : i1 to vector<64x16xi1>
    %42 = vector.broadcast %41 : vector<64x16xi1> to vector<64x16xi1>
    %43 = arith.xori %39, %42 : vector<64x16xi1>
    %44 = arith.andi %43, %37 : vector<64x16xi1>
    %45 = vector.broadcast %33 : i32 to vector<64x16xi32>
    %46 = arith.addi %35, %45 : vector<64x16xi32>
    %47 = arith.select %44, %46, %35 : vector<64x16xi1>, vector<64x16xi32>
    %c1_i32_22 = arith.constant 1 : i32
    %48 = vector.broadcast %c1_i32_22 : i32 to vector<64x16xi32>
    %49 = arith.cmpi sge, %47, %48 : vector<64x16xi32>
    %50 = arith.extui %49 : vector<64x16xi1> to vector<64x16xi32>
    %51 = arith.sitofp %50 : vector<64x16xi32> to vector<64x16xf32>
    %c6_i32 = arith.constant 6 : i32
    %52 = vector.broadcast %c6_i32 : i32 to vector<64x16xi32>
    %53 = arith.cmpi sle, %47, %52 : vector<64x16xi32>
    %54 = arith.extui %53 : vector<64x16xi1> to vector<64x16xi32>
    %55 = arith.sitofp %54 : vector<64x16xi32> to vector<64x16xf32>
    %cst_23 = arith.constant 0.000000e+00 : f32
    %56 = vector.broadcast %cst_23 : f32 to vector<64x32xf32>
    %c0_24 = arith.constant 0 : index
    %c0_25 = arith.constant 0 : index
    %57 = vector.load %arg23[%c0_24, %c0_25] : memref<82x16xf32, #tpu.memory_space<vmem>>, vector<64x16xf32>
    %58 = arith.mulf %57, %51 : vector<64x16xf32>
    %c0_26 = arith.constant 0 : index
    %c0_27 = arith.constant 0 : index
    %c0_28 = arith.constant 0 : index
    %59 = vector.load %arg6[%c0_26, %c0_27, %c0_28] : memref<9x16x32xf32, #tpu.memory_space<vmem>>, vector<1x16x32xf32>
    %60 = vector.shape_cast %59 : vector<1x16x32xf32> to vector<16x32xf32>
    %cst_29 = arith.constant dense<0.000000e+00> : vector<64x32xf32>
    %61 = tpu.matmul %58, %60, %cst_29 {dimension_numbers = #tpu.dot_dimension_numbers<[1], [0], [0], [1], [0, 0, 1, 1], [], []>} : vector<64x16xf32>, vector<16x32xf32>, vector<64x32xf32> -> vector<64x32xf32>
    %62 = arith.addf %56, %61 : vector<64x32xf32>
    %c1 = arith.constant 1 : index
    %c0_30 = arith.constant 0 : index
    %63 = vector.load %arg23[%c1, %c0_30] : memref<82x16xf32, #tpu.memory_space<vmem>>, vector<64x16xf32>
    %c1_31 = arith.constant 1 : index
    %c0_32 = arith.constant 0 : index
    %c0_33 = arith.constant 0 : index
    %64 = vector.load %arg6[%c1_31, %c0_32, %c0_33] : memref<9x16x32xf32, #tpu.memory_space<vmem>>, vector<1x16x32xf32>
    %65 = vector.shape_cast %64 : vector<1x16x32xf32> to vector<16x32xf32>
    %cst_34 = arith.constant dense<0.000000e+00> : vector<64x32xf32>
    %66 = tpu.matmul %63, %65, %cst_34 {dimension_numbers = #tpu.dot_dimension_numbers<[1], [0], [0], [1], [0, 0, 1, 1], [], []>} : vector<64x16xf32>, vector<16x32xf32>, vector<64x32xf32> -> vector<64x32xf32>
    %67 = arith.addf %62, %66 : vector<64x32xf32>
    %c2 = arith.constant 2 : index
    %c0_35 = arith.constant 0 : index
    %68 = vector.load %arg23[%c2, %c0_35] : memref<82x16xf32, #tpu.memory_space<vmem>>, vector<64x16xf32>
    %69 = arith.mulf %68, %55 : vector<64x16xf32>
    %c2_36 = arith.constant 2 : index
    %c0_37 = arith.constant 0 : index
    %c0_38 = arith.constant 0 : index
    %70 = vector.load %arg6[%c2_36, %c0_37, %c0_38] : memref<9x16x32xf32, #tpu.memory_space<vmem>>, vector<1x16x32xf32>
    %71 = vector.shape_cast %70 : vector<1x16x32xf32> to vector<16x32xf32>
    %cst_39 = arith.constant dense<0.000000e+00> : vector<64x32xf32>
    %72 = tpu.matmul %69, %71, %cst_39 {dimension_numbers = #tpu.dot_dimension_numbers<[1], [0], [0], [1], [0, 0, 1, 1], [], []>} : vector<64x16xf32>, vector<16x32xf32>, vector<64x32xf32> -> vector<64x32xf32>
    %73 = arith.addf %67, %72 : vector<64x32xf32>
    %c8 = arith.constant 8 : index
    %c0_40 = arith.constant 0 : index
    %74 = vector.load %arg23[%c8, %c0_40] : memref<82x16xf32, #tpu.memory_space<vmem>>, vector<64x16xf32>
    %75 = arith.mulf %74, %51 : vector<64x16xf32>
    %c3 = arith.constant 3 : index
    %c0_41 = arith.constant 0 : index
    %c0_42 = arith.constant 0 : index
    %76 = vector.load %arg6[%c3, %c0_41, %c0_42] : memref<9x16x32xf32, #tpu.memory_space<vmem>>, vector<1x16x32xf32>
    %77 = vector.shape_cast %76 : vector<1x16x32xf32> to vector<16x32xf32>
    %cst_43 = arith.constant dense<0.000000e+00> : vector<64x32xf32>
    %78 = tpu.matmul %75, %77, %cst_43 {dimension_numbers = #tpu.dot_dimension_numbers<[1], [0], [0], [1], [0, 0, 1, 1], [], []>} : vector<64x16xf32>, vector<16x32xf32>, vector<64x32xf32> -> vector<64x32xf32>
    %79 = arith.addf %73, %78 : vector<64x32xf32>
    %c9_44 = arith.constant 9 : index
    %c0_45 = arith.constant 0 : index
    %80 = vector.load %arg23[%c9_44, %c0_45] : memref<82x16xf32, #tpu.memory_space<vmem>>, vector<64x16xf32>
    %c4 = arith.constant 4 : index
    %c0_46 = arith.constant 0 : index
    %c0_47 = arith.constant 0 : index
    %81 = vector.load %arg6[%c4, %c0_46, %c0_47] : memref<9x16x32xf32, #tpu.memory_space<vmem>>, vector<1x16x32xf32>
    %82 = vector.shape_cast %81 : vector<1x16x32xf32> to vector<16x32xf32>
    %cst_48 = arith.constant dense<0.000000e+00> : vector<64x32xf32>
    %83 = tpu.matmul %80, %82, %cst_48 {dimension_numbers = #tpu.dot_dimension_numbers<[1], [0], [0], [1], [0, 0, 1, 1], [], []>} : vector<64x16xf32>, vector<16x32xf32>, vector<64x32xf32> -> vector<64x32xf32>
    %84 = arith.addf %79, %83 : vector<64x32xf32>
    %c10 = arith.constant 10 : index
    %c0_49 = arith.constant 0 : index
    %85 = vector.load %arg23[%c10, %c0_49] : memref<82x16xf32, #tpu.memory_space<vmem>>, vector<64x16xf32>
    %86 = arith.mulf %85, %55 : vector<64x16xf32>
    %c5 = arith.constant 5 : index
    %c0_50 = arith.constant 0 : index
    %c0_51 = arith.constant 0 : index
    %87 = vector.load %arg6[%c5, %c0_50, %c0_51] : memref<9x16x32xf32, #tpu.memory_space<vmem>>, vector<1x16x32xf32>
    %88 = vector.shape_cast %87 : vector<1x16x32xf32> to vector<16x32xf32>
    %cst_52 = arith.constant dense<0.000000e+00> : vector<64x32xf32>
    %89 = tpu.matmul %86, %88, %cst_52 {dimension_numbers = #tpu.dot_dimension_numbers<[1], [0], [0], [1], [0, 0, 1, 1], [], []>} : vector<64x16xf32>, vector<16x32xf32>, vector<64x32xf32> -> vector<64x32xf32>
    %90 = arith.addf %84, %89 : vector<64x32xf32>
    %c16 = arith.constant 16 : index
    %c0_53 = arith.constant 0 : index
    %91 = vector.load %arg23[%c16, %c0_53] : memref<82x16xf32, #tpu.memory_space<vmem>>, vector<64x16xf32>
    %92 = arith.mulf %91, %51 : vector<64x16xf32>
    %c6 = arith.constant 6 : index
    %c0_54 = arith.constant 0 : index
    %c0_55 = arith.constant 0 : index
    %93 = vector.load %arg6[%c6, %c0_54, %c0_55] : memref<9x16x32xf32, #tpu.memory_space<vmem>>, vector<1x16x32xf32>
    %94 = vector.shape_cast %93 : vector<1x16x32xf32> to vector<16x32xf32>
    %cst_56 = arith.constant dense<0.000000e+00> : vector<64x32xf32>
    %95 = tpu.matmul %92, %94, %cst_56 {dimension_numbers = #tpu.dot_dimension_numbers<[1], [0], [0], [1], [0, 0, 1, 1], [], []>} : vector<64x16xf32>, vector<16x32xf32>, vector<64x32xf32> -> vector<64x32xf32>
    %96 = arith.addf %90, %95 : vector<64x32xf32>
    %c17 = arith.constant 17 : index
    %c0_57 = arith.constant 0 : index
    %97 = vector.load %arg23[%c17, %c0_57] : memref<82x16xf32, #tpu.memory_space<vmem>>, vector<64x16xf32>
    %c7 = arith.constant 7 : index
    %c0_58 = arith.constant 0 : index
    %c0_59 = arith.constant 0 : index
    %98 = vector.load %arg6[%c7, %c0_58, %c0_59] : memref<9x16x32xf32, #tpu.memory_space<vmem>>, vector<1x16x32xf32>
    %99 = vector.shape_cast %98 : vector<1x16x32xf32> to vector<16x32xf32>
    %cst_60 = arith.constant dense<0.000000e+00> : vector<64x32xf32>
    %100 = tpu.matmul %97, %99, %cst_60 {dimension_numbers = #tpu.dot_dimension_numbers<[1], [0], [0], [1], [0, 0, 1, 1], [], []>} : vector<64x16xf32>, vector<16x32xf32>, vector<64x32xf32> -> vector<64x32xf32>
    %101 = arith.addf %96, %100 : vector<64x32xf32>
    %c18 = arith.constant 18 : index
    %c0_61 = arith.constant 0 : index
    %102 = vector.load %arg23[%c18, %c0_61] : memref<82x16xf32, #tpu.memory_space<vmem>>, vector<64x16xf32>
    %103 = arith.mulf %102, %55 : vector<64x16xf32>
    %c8_62 = arith.constant 8 : index
    %c0_63 = arith.constant 0 : index
    %c0_64 = arith.constant 0 : index
    %104 = vector.load %arg6[%c8_62, %c0_63, %c0_64] : memref<9x16x32xf32, #tpu.memory_space<vmem>>, vector<1x16x32xf32>
    %105 = vector.shape_cast %104 : vector<1x16x32xf32> to vector<16x32xf32>
    %cst_65 = arith.constant dense<0.000000e+00> : vector<64x32xf32>
    %106 = tpu.matmul %103, %105, %cst_65 {dimension_numbers = #tpu.dot_dimension_numbers<[1], [0], [0], [1], [0, 0, 1, 1], [], []>} : vector<64x16xf32>, vector<16x32xf32>, vector<64x32xf32> -> vector<64x32xf32>
    %107 = arith.addf %101, %106 : vector<64x32xf32>
    %c0_66 = arith.constant 0 : index
    %c0_67 = arith.constant 0 : index
    %c0_68 = arith.constant 0 : index
    %108 = vector.load %arg7[%c0_66, %c0_67, %c0_68] : memref<1x1x32xf32, #tpu.memory_space<vmem>>, vector<1x1x32xf32>
    %109 = vector.shape_cast %108 : vector<1x1x32xf32> to vector<1x32xf32>
    %110 = vector.broadcast %109 : vector<1x32xf32> to vector<64x32xf32>
    %111 = arith.addf %107, %110 : vector<64x32xf32>
    %c0_69 = arith.constant 0 : index
    %c0_70 = arith.constant 0 : index
    %112 = vector.load %arg3[%c0_69, %c0_70] : memref<32x32xf32, #tpu.memory_space<vmem>>, vector<32x32xf32>
    %c0_71 = arith.constant 0 : index
    %c0_72 = arith.constant 0 : index
    %113 = vector.load %arg8[%c0_71, %c0_72] : memref<1x32xf32, #tpu.memory_space<vmem>>, vector<1x32xf32>
    %c0_73 = arith.constant 0 : index
    %c0_74 = arith.constant 0 : index
    %114 = vector.load %arg9[%c0_73, %c0_74] : memref<1x32xf32, #tpu.memory_space<vmem>>, vector<1x32xf32>
    %cst_75 = arith.constant 1.000000e+00 : f32
    %115 = vector.broadcast %cst_75 : f32 to vector<1x64xf32>
    %cst_76 = arith.constant dense<0.000000e+00> : vector<1x32xf32>
    %116 = tpu.matmul %115, %111, %cst_76 {dimension_numbers = #tpu.dot_dimension_numbers<[1], [0], [0], [1], [0, 0, 1, 1], [], []>} : vector<1x64xf32>, vector<64x32xf32>, vector<1x32xf32> -> vector<1x32xf32>
    %cst_77 = arith.constant dense<0.000000e+00> : vector<1x32xf32>
    %117 = tpu.matmul %116, %112, %cst_77 {dimension_numbers = #tpu.dot_dimension_numbers<[1], [0], [0], [1], [0, 0, 1, 1], [], []>} : vector<1x32xf32>, vector<32x32xf32>, vector<1x32xf32> -> vector<1x32xf32>
    %118 = vector.broadcast %117 : vector<1x32xf32> to vector<64x32xf32>
    %119 = arith.subf %111, %118 : vector<64x32xf32>
    %120 = arith.mulf %119, %119 : vector<64x32xf32>
    %cst_78 = arith.constant dense<0.000000e+00> : vector<1x32xf32>
    %121 = tpu.matmul %115, %120, %cst_78 {dimension_numbers = #tpu.dot_dimension_numbers<[1], [0], [0], [1], [0, 0, 1, 1], [], []>} : vector<1x64xf32>, vector<64x32xf32>, vector<1x32xf32> -> vector<1x32xf32>
    %cst_79 = arith.constant dense<0.000000e+00> : vector<1x32xf32>
    %122 = tpu.matmul %121, %112, %cst_79 {dimension_numbers = #tpu.dot_dimension_numbers<[1], [0], [0], [1], [0, 0, 1, 1], [], []>} : vector<1x32xf32>, vector<32x32xf32>, vector<1x32xf32> -> vector<1x32xf32>
    %cst_80 = arith.constant 9.99999974E-6 : f32
    %123 = vector.broadcast %cst_80 : f32 to vector<1x32xf32>
    %124 = arith.addf %122, %123 : vector<1x32xf32>
    %125 = math.rsqrt %124 : vector<1x32xf32>
    %126 = vector.broadcast %125 : vector<1x32xf32> to vector<64x32xf32>
    %127 = arith.mulf %119, %126 : vector<64x32xf32>
    %128 = vector.broadcast %113 : vector<1x32xf32> to vector<64x32xf32>
    %129 = arith.mulf %127, %128 : vector<64x32xf32>
    %130 = vector.broadcast %114 : vector<1x32xf32> to vector<64x32xf32>
    %131 = arith.addf %129, %130 : vector<64x32xf32>
    %cst_81 = arith.constant 0.000000e+00 : f32
    %132 = vector.broadcast %cst_81 : f32 to vector<64x32xf32>
    %133 = arith.subf %132, %131 : vector<64x32xf32>
    %134 = math.exp %133 : vector<64x32xf32>
    %cst_82 = arith.constant 1.000000e+00 : f32
    %135 = vector.broadcast %cst_82 : f32 to vector<64x32xf32>
    %136 = arith.addf %135, %134 : vector<64x32xf32>
    %137 = arith.divf %131, %136 : vector<64x32xf32>
    %cst_83 = arith.constant 0.000000e+00 : f32
    %138 = vector.broadcast %cst_83 : f32 to vector<82x32xf32>
    %c0_84 = arith.constant 0 : index
    %c0_85 = arith.constant 0 : index
    %139 = vector.load %arg24[%c0_84, %c0_85] : memref<82x32xf32, #tpu.memory_space<vmem>>, vector<82x32xf32>
    tpu.vector_store %arg24[%c0_84, %c0_85], %138 {strides = array<i32>} : memref<82x32xf32, #tpu.memory_space<vmem>>, vector<82x32xf32>,
    %c9_86 = arith.constant 9 : index
    %c0_87 = arith.constant 0 : index
    %140 = vector.load %arg24[%c9_86, %c0_87] : memref<82x32xf32, #tpu.memory_space<vmem>>, vector<64x32xf32>
    tpu.vector_store %arg24[%c9_86, %c0_87], %137 {strides = array<i32>} : memref<82x32xf32, #tpu.memory_space<vmem>>, vector<64x32xf32>,
    %141 = tpu.iota {dimensions = array<i32: 0>} : vector<64x32xi32>
    %c8_i32_88 = arith.constant 8 : i32
    %c0_i32_89 = arith.constant 0 : i32
    %142 = arith.cmpi eq, %c8_i32_88, %c0_i32_89 : i32
    %c1_i32_90 = arith.constant 1 : i32
    %143 = arith.select %142, %c1_i32_90, %c8_i32_88 : i32
    %144 = vector.broadcast %143 : i32 to vector<64x32xi32>
    %145 = arith.remsi %141, %144 : vector<64x32xi32>
    %c0_i32_91 = arith.constant 0 : i32
    %146 = vector.broadcast %c0_i32_91 : i32 to vector<64x32xi32>
    %147 = arith.cmpi ne, %145, %146 : vector<64x32xi32>
    %c0_i32_92 = arith.constant 0 : i32
    %148 = vector.broadcast %c0_i32_92 : i32 to vector<64x32xi32>
    %149 = arith.cmpi slt, %145, %148 : vector<64x32xi32>
    %c0_i32_93 = arith.constant 0 : i32
    %150 = arith.cmpi slt, %143, %c0_i32_93 : i32
    %151 = vector.broadcast %150 : i1 to vector<64x32xi1>
    %152 = vector.broadcast %151 : vector<64x32xi1> to vector<64x32xi1>
    %153 = arith.xori %149, %152 : vector<64x32xi1>
    %154 = arith.andi %153, %147 : vector<64x32xi1>
    %155 = vector.broadcast %143 : i32 to vector<64x32xi32>
    %156 = arith.addi %145, %155 : vector<64x32xi32>
    %157 = arith.select %154, %156, %145 : vector<64x32xi1>, vector<64x32xi32>
    %c1_i32_94 = arith.constant 1 : i32
    %158 = vector.broadcast %c1_i32_94 : i32 to vector<64x32xi32>
    %159 = arith.cmpi sge, %157, %158 : vector<64x32xi32>
    %160 = arith.extui %159 : vector<64x32xi1> to vector<64x32xi32>
    %161 = arith.sitofp %160 : vector<64x32xi32> to vector<64x32xf32>
    %c6_i32_95 = arith.constant 6 : i32
    %162 = vector.broadcast %c6_i32_95 : i32 to vector<64x32xi32>
    %163 = arith.cmpi sle, %157, %162 : vector<64x32xi32>
    %164 = arith.extui %163 : vector<64x32xi1> to vector<64x32xi32>
    %165 = arith.sitofp %164 : vector<64x32xi32> to vector<64x32xf32>
    %cst_96 = arith.constant 0.000000e+00 : f32
    %166 = vector.broadcast %cst_96 : f32 to vector<64x32xf32>
    %c0_97 = arith.constant 0 : index
    %c0_98 = arith.constant 0 : index
    %167 = vector.load %arg24[%c0_97, %c0_98] : memref<82x32xf32, #tpu.memory_space<vmem>>, vector<64x32xf32>
    %168 = arith.mulf %167, %161 : vector<64x32xf32>
    %c0_99 = arith.constant 0 : index
    %c0_100 = arith.constant 0 : index
    %c0_101 = arith.constant 0 : index
    %169 = vector.load %arg10[%c0_99, %c0_100, %c0_101] : memref<9x32x32xf32, #tpu.memory_space<vmem>>, vector<1x32x32xf32>
    %170 = vector.shape_cast %169 : vector<1x32x32xf32> to vector<32x32xf32>
    %cst_102 = arith.constant dense<0.000000e+00> : vector<64x32xf32>
    %171 = tpu.matmul %168, %170, %cst_102 {dimension_numbers = #tpu.dot_dimension_numbers<[1], [0], [0], [1], [0, 0, 1, 1], [], []>} : vector<64x32xf32>, vector<32x32xf32>, vector<64x32xf32> -> vector<64x32xf32>
    %172 = arith.addf %166, %171 : vector<64x32xf32>
    %c1_103 = arith.constant 1 : index
    %c0_104 = arith.constant 0 : index
    %173 = vector.load %arg24[%c1_103, %c0_104] : memref<82x32xf32, #tpu.memory_space<vmem>>, vector<64x32xf32>
    %c1_105 = arith.constant 1 : index
    %c0_106 = arith.constant 0 : index
    %c0_107 = arith.constant 0 : index
    %174 = vector.load %arg10[%c1_105, %c0_106, %c0_107] : memref<9x32x32xf32, #tpu.memory_space<vmem>>, vector<1x32x32xf32>
    %175 = vector.shape_cast %174 : vector<1x32x32xf32> to vector<32x32xf32>
    %cst_108 = arith.constant dense<0.000000e+00> : vector<64x32xf32>
    %176 = tpu.matmul %173, %175, %cst_108 {dimension_numbers = #tpu.dot_dimension_numbers<[1], [0], [0], [1], [0, 0, 1, 1], [], []>} : vector<64x32xf32>, vector<32x32xf32>, vector<64x32xf32> -> vector<64x32xf32>
    %177 = arith.addf %172, %176 : vector<64x32xf32>
    %c2_109 = arith.constant 2 : index
    %c0_110 = arith.constant 0 : index
    %178 = vector.load %arg24[%c2_109, %c0_110] : memref<82x32xf32, #tpu.memory_space<vmem>>, vector<64x32xf32>
    %179 = arith.mulf %178, %165 : vector<64x32xf32>
    %c2_111 = arith.constant 2 : index
    %c0_112 = arith.constant 0 : index
    %c0_113 = arith.constant 0 : index
    %180 = vector.load %arg10[%c2_111, %c0_112, %c0_113] : memref<9x32x32xf32, #tpu.memory_space<vmem>>, vector<1x32x32xf32>
    %181 = vector.shape_cast %180 : vector<1x32x32xf32> to vector<32x32xf32>
    %cst_114 = arith.constant dense<0.000000e+00> : vector<64x32xf32>
    %182 = tpu.matmul %179, %181, %cst_114 {dimension_numbers = #tpu.dot_dimension_numbers<[1], [0], [0], [1], [0, 0, 1, 1], [], []>} : vector<64x32xf32>, vector<32x32xf32>, vector<64x32xf32> -> vector<64x32xf32>
    %183 = arith.addf %177, %182 : vector<64x32xf32>
    %c8_115 = arith.constant 8 : index
    %c0_116 = arith.constant 0 : index
    %184 = vector.load %arg24[%c8_115, %c0_116] : memref<82x32xf32, #tpu.memory_space<vmem>>, vector<64x32xf32>
    %185 = arith.mulf %184, %161 : vector<64x32xf32>
    %c3_117 = arith.constant 3 : index
    %c0_118 = arith.constant 0 : index
    %c0_119 = arith.constant 0 : index
    %186 = vector.load %arg10[%c3_117, %c0_118, %c0_119] : memref<9x32x32xf32, #tpu.memory_space<vmem>>, vector<1x32x32xf32>
    %187 = vector.shape_cast %186 : vector<1x32x32xf32> to vector<32x32xf32>
    %cst_120 = arith.constant dense<0.000000e+00> : vector<64x32xf32>
    %188 = tpu.matmul %185, %187, %cst_120 {dimension_numbers = #tpu.dot_dimension_numbers<[1], [0], [0], [1], [0, 0, 1, 1], [], []>} : vector<64x32xf32>, vector<32x32xf32>, vector<64x32xf32> -> vector<64x32xf32>
    %189 = arith.addf %183, %188 : vector<64x32xf32>
    %c9_121 = arith.constant 9 : index
    %c0_122 = arith.constant 0 : index
    %190 = vector.load %arg24[%c9_121, %c0_122] : memref<82x32xf32, #tpu.memory_space<vmem>>, vector<64x32xf32>
    %c4_123 = arith.constant 4 : index
    %c0_124 = arith.constant 0 : index
    %c0_125 = arith.constant 0 : index
    %191 = vector.load %arg10[%c4_123, %c0_124, %c0_125] : memref<9x32x32xf32, #tpu.memory_space<vmem>>, vector<1x32x32xf32>
    %192 = vector.shape_cast %191 : vector<1x32x32xf32> to vector<32x32xf32>
    %cst_126 = arith.constant dense<0.000000e+00> : vector<64x32xf32>
    %193 = tpu.matmul %190, %192, %cst_126 {dimension_numbers = #tpu.dot_dimension_numbers<[1], [0], [0], [1], [0, 0, 1, 1], [], []>} : vector<64x32xf32>, vector<32x32xf32>, vector<64x32xf32> -> vector<64x32xf32>
    %194 = arith.addf %189, %193 : vector<64x32xf32>
    %c10_127 = arith.constant 10 : index
    %c0_128 = arith.constant 0 : index
    %195 = vector.load %arg24[%c10_127, %c0_128] : memref<82x32xf32, #tpu.memory_space<vmem>>, vector<64x32xf32>
    %196 = arith.mulf %195, %165 : vector<64x32xf32>
    %c5_129 = arith.constant 5 : index
    %c0_130 = arith.constant 0 : index
    %c0_131 = arith.constant 0 : index
    %197 = vector.load %arg10[%c5_129, %c0_130, %c0_131] : memref<9x32x32xf32, #tpu.memory_space<vmem>>, vector<1x32x32xf32>
    %198 = vector.shape_cast %197 : vector<1x32x32xf32> to vector<32x32xf32>
    %cst_132 = arith.constant dense<0.000000e+00> : vector<64x32xf32>
    %199 = tpu.matmul %196, %198, %cst_132 {dimension_numbers = #tpu.dot_dimension_numbers<[1], [0], [0], [1], [0, 0, 1, 1], [], []>} : vector<64x32xf32>, vector<32x32xf32>, vector<64x32xf32> -> vector<64x32xf32>
    %200 = arith.addf %194, %199 : vector<64x32xf32>
    %c16_133 = arith.constant 16 : index
    %c0_134 = arith.constant 0 : index
    %201 = vector.load %arg24[%c16_133, %c0_134] : memref<82x32xf32, #tpu.memory_space<vmem>>, vector<64x32xf32>
    %202 = arith.mulf %201, %161 : vector<64x32xf32>
    %c6_135 = arith.constant 6 : index
    %c0_136 = arith.constant 0 : index
    %c0_137 = arith.constant 0 : index
    %203 = vector.load %arg10[%c6_135, %c0_136, %c0_137] : memref<9x32x32xf32, #tpu.memory_space<vmem>>, vector<1x32x32xf32>
    %204 = vector.shape_cast %203 : vector<1x32x32xf32> to vector<32x32xf32>
    %cst_138 = arith.constant dense<0.000000e+00> : vector<64x32xf32>
    %205 = tpu.matmul %202, %204, %cst_138 {dimension_numbers = #tpu.dot_dimension_numbers<[1], [0], [0], [1], [0, 0, 1, 1], [], []>} : vector<64x32xf32>, vector<32x32xf32>, vector<64x32xf32> -> vector<64x32xf32>
    %206 = arith.addf %200, %205 : vector<64x32xf32>
    %c17_139 = arith.constant 17 : index
    %c0_140 = arith.constant 0 : index
    %207 = vector.load %arg24[%c17_139, %c0_140] : memref<82x32xf32, #tpu.memory_space<vmem>>, vector<64x32xf32>
    %c7_141 = arith.constant 7 : index
    %c0_142 = arith.constant 0 : index
    %c0_143 = arith.constant 0 : index
    %208 = vector.load %arg10[%c7_141, %c0_142, %c0_143] : memref<9x32x32xf32, #tpu.memory_space<vmem>>, vector<1x32x32xf32>
    %209 = vector.shape_cast %208 : vector<1x32x32xf32> to vector<32x32xf32>
    %cst_144 = arith.constant dense<0.000000e+00> : vector<64x32xf32>
    %210 = tpu.matmul %207, %209, %cst_144 {dimension_numbers = #tpu.dot_dimension_numbers<[1], [0], [0], [1], [0, 0, 1, 1], [], []>} : vector<64x32xf32>, vector<32x32xf32>, vector<64x32xf32> -> vector<64x32xf32>
    %211 = arith.addf %206, %210 : vector<64x32xf32>
    %c18_145 = arith.constant 18 : index
    %c0_146 = arith.constant 0 : index
    %212 = vector.load %arg24[%c18_145, %c0_146] : memref<82x32xf32, #tpu.memory_space<vmem>>, vector<64x32xf32>
    %213 = arith.mulf %212, %165 : vector<64x32xf32>
    %c8_147 = arith.constant 8 : index
    %c0_148 = arith.constant 0 : index
    %c0_149 = arith.constant 0 : index
    %214 = vector.load %arg10[%c8_147, %c0_148, %c0_149] : memref<9x32x32xf32, #tpu.memory_space<vmem>>, vector<1x32x32xf32>
    %215 = vector.shape_cast %214 : vector<1x32x32xf32> to vector<32x32xf32>
    %cst_150 = arith.constant dense<0.000000e+00> : vector<64x32xf32>
    %216 = tpu.matmul %213, %215, %cst_150 {dimension_numbers = #tpu.dot_dimension_numbers<[1], [0], [0], [1], [0, 0, 1, 1], [], []>} : vector<64x32xf32>, vector<32x32xf32>, vector<64x32xf32> -> vector<64x32xf32>
    %217 = arith.addf %211, %216 : vector<64x32xf32>
    %c0_151 = arith.constant 0 : index
    %c0_152 = arith.constant 0 : index
    %218 = vector.load %arg11[%c0_151, %c0_152] : memref<1x32xf32, #tpu.memory_space<vmem>>, vector<1x32xf32>
    %219 = vector.broadcast %218 : vector<1x32xf32> to vector<64x32xf32>
    %220 = arith.addf %217, %219 : vector<64x32xf32>
    %c0_153 = arith.constant 0 : index
    %c0_154 = arith.constant 0 : index
    %221 = vector.load %arg12[%c0_153, %c0_154] : memref<16x32xf32, #tpu.memory_space<vmem>>, vector<16x32xf32>
    %cst_155 = arith.constant dense<0.000000e+00> : vector<64x32xf32>
    %222 = tpu.matmul %1, %221, %cst_155 {dimension_numbers = #tpu.dot_dimension_numbers<[1], [0], [0], [1], [0, 0, 1, 1], [], []>} : vector<64x16xf32>, vector<16x32xf32>, vector<64x32xf32> -> vector<64x32xf32>
    %c0_156 = arith.constant 0 : index
    %c0_157 = arith.constant 0 : index
    %223 = vector.load %arg13[%c0_156, %c0_157] : memref<1x32xf32, #tpu.memory_space<vmem>>, vector<1x32xf32>
    %224 = vector.broadcast %223 : vector<1x32xf32> to vector<64x32xf32>
    %225 = arith.addf %222, %224 : vector<64x32xf32>
    %226 = arith.addf %220, %225 : vector<64x32xf32>
    %c0_158 = arith.constant 0 : index
    %c0_159 = arith.constant 0 : index
    %227 = vector.load %arg3[%c0_158, %c0_159] : memref<32x32xf32, #tpu.memory_space<vmem>>, vector<32x32xf32>
    %cst_160 = arith.constant 1.000000e+00 : f32
    %228 = vector.broadcast %cst_160 : f32 to vector<1x64xf32>
    %cst_161 = arith.constant dense<0.000000e+00> : vector<1x32xf32>
    %229 = tpu.matmul %228, %226, %cst_161 {dimension_numbers = #tpu.dot_dimension_numbers<[1], [0], [0], [1], [0, 0, 1, 1], [], []>} : vector<1x64xf32>, vector<64x32xf32>, vector<1x32xf32> -> vector<1x32xf32>
    %cst_162 = arith.constant dense<0.000000e+00> : vector<1x32xf32>
    %230 = tpu.matmul %229, %227, %cst_162 {dimension_numbers = #tpu.dot_dimension_numbers<[1], [0], [0], [1], [0, 0, 1, 1], [], []>} : vector<1x32xf32>, vector<32x32xf32>, vector<1x32xf32> -> vector<1x32xf32>
    %231 = vector.broadcast %230 : vector<1x32xf32> to vector<64x32xf32>
    %232 = arith.subf %226, %231 : vector<64x32xf32>
    %233 = arith.mulf %232, %232 : vector<64x32xf32>
    %cst_163 = arith.constant dense<0.000000e+00> : vector<1x32xf32>
    %234 = tpu.matmul %228, %233, %cst_163 {dimension_numbers = #tpu.dot_dimension_numbers<[1], [0], [0], [1], [0, 0, 1, 1], [], []>} : vector<1x64xf32>, vector<64x32xf32>, vector<1x32xf32> -> vector<1x32xf32>
    %cst_164 = arith.constant dense<0.000000e+00> : vector<1x32xf32>
    %235 = tpu.matmul %234, %227, %cst_164 {dimension_numbers = #tpu.dot_dimension_numbers<[1], [0], [0], [1], [0, 0, 1, 1], [], []>} : vector<1x32xf32>, vector<32x32xf32>, vector<1x32xf32> -> vector<1x32xf32>
    %cst_165 = arith.constant 9.99999974E-6 : f32
    %236 = vector.broadcast %cst_165 : f32 to vector<1x32xf32>
    %237 = arith.addf %235, %236 : vector<1x32xf32>
    %238 = math.rsqrt %237 : vector<1x32xf32>
    %239 = vector.broadcast %238 : vector<1x32xf32> to vector<64x32xf32>
    %240 = arith.mulf %232, %239 : vector<64x32xf32>
    %c0_166 = arith.constant 0 : index
    %c0_167 = arith.constant 0 : index
    %c0_168 = arith.constant 0 : index
    %241 = vector.load %arg14[%c0_166, %c0_167, %c0_168] : memref<1x32x32xf32, #tpu.memory_space<vmem>>, vector<1x32x32xf32>
    %242 = vector.shape_cast %241 : vector<1x32x32xf32> to vector<32x32xf32>
    %cst_169 = arith.constant dense<0.000000e+00> : vector<64x32xf32>
    %243 = tpu.matmul %240, %242, %cst_169 {dimension_numbers = #tpu.dot_dimension_numbers<[1], [0], [0], [1], [0, 0, 1, 1], [], []>} : vector<64x32xf32>, vector<32x32xf32>, vector<64x32xf32> -> vector<64x32xf32>
    %c0_170 = arith.constant 0 : index
    %c0_171 = arith.constant 0 : index
    %c0_172 = arith.constant 0 : index
    %244 = vector.load %arg17[%c0_170, %c0_171, %c0_172] : memref<1x1x32xf32, #tpu.memory_space<vmem>>, vector<1x1x32xf32>
    %245 = vector.shape_cast %244 : vector<1x1x32xf32> to vector<1x32xf32>
    %246 = vector.broadcast %245 : vector<1x32xf32> to vector<64x32xf32>
    %247 = arith.addf %243, %246 : vector<64x32xf32>
    %c0_173 = arith.constant 0 : index
    %c0_174 = arith.constant 0 : index
    %c0_175 = arith.constant 0 : index
    %248 = vector.load %arg15[%c0_173, %c0_174, %c0_175] : memref<1x32x32xf32, #tpu.memory_space<vmem>>, vector<1x32x32xf32>
    %249 = vector.shape_cast %248 : vector<1x32x32xf32> to vector<32x32xf32>
    %cst_176 = arith.constant dense<0.000000e+00> : vector<64x32xf32>
    %250 = tpu.matmul %240, %249, %cst_176 {dimension_numbers = #tpu.dot_dimension_numbers<[1], [0], [0], [1], [0, 0, 1, 1], [], []>} : vector<64x32xf32>, vector<32x32xf32>, vector<64x32xf32> -> vector<64x32xf32>
    %c0_177 = arith.constant 0 : index
    %c0_178 = arith.constant 0 : index
    %c0_179 = arith.constant 0 : index
    %251 = vector.load %arg18[%c0_177, %c0_178, %c0_179] : memref<1x1x32xf32, #tpu.memory_space<vmem>>, vector<1x1x32xf32>
    %252 = vector.shape_cast %251 : vector<1x1x32xf32> to vector<1x32xf32>
    %253 = vector.broadcast %252 : vector<1x32xf32> to vector<64x32xf32>
    %254 = arith.addf %250, %253 : vector<64x32xf32>
    %c0_180 = arith.constant 0 : index
    %c0_181 = arith.constant 0 : index
    %c0_182 = arith.constant 0 : index
    %255 = vector.load %arg16[%c0_180, %c0_181, %c0_182] : memref<1x32x32xf32, #tpu.memory_space<vmem>>, vector<1x32x32xf32>
    %256 = vector.shape_cast %255 : vector<1x32x32xf32> to vector<32x32xf32>
    %cst_183 = arith.constant dense<0.000000e+00> : vector<64x32xf32>
    %257 = tpu.matmul %240, %256, %cst_183 {dimension_numbers = #tpu.dot_dimension_numbers<[1], [0], [0], [1], [0, 0, 1, 1], [], []>} : vector<64x32xf32>, vector<32x32xf32>, vector<64x32xf32> -> vector<64x32xf32>
    %c0_184 = arith.constant 0 : index
    %c0_185 = arith.constant 0 : index
    %c0_186 = arith.constant 0 : index
    %258 = vector.load %arg19[%c0_184, %c0_185, %c0_186] : memref<1x1x32xf32, #tpu.memory_space<vmem>>, vector<1x1x32xf32>
    %259 = vector.shape_cast %258 : vector<1x1x32xf32> to vector<1x32xf32>
    %260 = vector.broadcast %259 : vector<1x32xf32> to vector<64x32xf32>
    %261 = arith.addf %257, %260 : vector<64x32xf32>
    %cst_187 = arith.constant dense<0.000000e+00> : vector<64x64xf32>
    %262 = tpu.matmul %247, %254, %cst_187 {dimension_numbers = #tpu.dot_dimension_numbers<[1], [1], [0], [0], [0, 0, 1, 0], [], []>} : vector<64x32xf32>, vector<64x32xf32>, vector<64x64xf32> -> vector<64x64xf32>
    %cst_188 = arith.constant dense<0xFF800000> : vector<64xf32>
    %263 = vector.multi_reduction <maximumf>, %262, %cst_188 [1] : vector<64x64xf32> to vector<64xf32>
    %264 = vector.shape_cast %263 : vector<64xf32> to vector<64x1xf32>
    %265 = vector.broadcast %264 : vector<64x1xf32> to vector<64x64xf32>
    %266 = arith.subf %262, %265 : vector<64x64xf32>
    %267 = math.exp %266 : vector<64x64xf32>
    %cst_189 = arith.constant dense<0.000000e+00> : vector<64xf32>
    %268 = vector.multi_reduction <add>, %267, %cst_189 [1] : vector<64x64xf32> to vector<64xf32>
    %269 = vector.shape_cast %268 : vector<64xf32> to vector<64x1xf32>
    %270 = vector.broadcast %269 : vector<64x1xf32> to vector<64x64xf32>
    %271 = arith.divf %267, %270 : vector<64x64xf32>
    %cst_190 = arith.constant dense<0.000000e+00> : vector<64x32xf32>
    %272 = tpu.matmul %271, %261, %cst_190 {dimension_numbers = #tpu.dot_dimension_numbers<[1], [0], [0], [1], [0, 0, 1, 1], [], []>} : vector<64x64xf32>, vector<64x32xf32>, vector<64x32xf32> -> vector<64x32xf32>
    %c0_191 = arith.constant 0 : index
    %c0_192 = arith.constant 0 : index
    %c0_193 = arith.constant 0 : index
    %273 = vector.load %arg20[%c0_191, %c0_192, %c0_193] : memref<1x32x32xf32, #tpu.memory_space<vmem>>, vector<1x32x32xf32>
    %274 = vector.shape_cast %273 : vector<1x32x32xf32> to vector<32x32xf32>
    %cst_194 = arith.constant dense<0.000000e+00> : vector<64x32xf32>
    %275 = tpu.matmul %272, %274, %cst_194 {dimension_numbers = #tpu.dot_dimension_numbers<[1], [0], [0], [1], [0, 0, 1, 1], [], []>} : vector<64x32xf32>, vector<32x32xf32>, vector<64x32xf32> -> vector<64x32xf32>
    %c0_195 = arith.constant 0 : index
    %c0_196 = arith.constant 0 : index
    %276 = vector.load %arg21[%c0_195, %c0_196] : memref<1x32xf32, #tpu.memory_space<vmem>>, vector<1x32xf32>
    %277 = vector.broadcast %276 : vector<1x32xf32> to vector<64x32xf32>
    %278 = arith.addf %275, %277 : vector<64x32xf32>
    %279 = arith.addf %278, %226 : vector<64x32xf32>
    %c0_197 = arith.constant 0 : index
    %c0_198 = arith.constant 0 : index
    %c0_199 = arith.constant 0 : index
    %280 = vector.load %arg22[%c0_197, %c0_198, %c0_199] : memref<1x64x32xf32, #tpu.memory_space<vmem>>, vector<1x64x32xf32>
    %281 = vector.shape_cast %280 : vector<1x64x32xf32> to vector<64x32xf32>
    %282 = vector.shape_cast %279 : vector<64x32xf32> to vector<1x64x32xf32>
    tpu.vector_store %arg22[%c0_197, %c0_198, %c0_199], %282 {strides = array<i32>} : memref<1x64x32xf32, #tpu.memory_space<vmem>>, vector<1x64x32xf32>,
    return
  }
  func.func @transform_0(%arg0: i32) -> (i32, i32, i32) {
    %c0_i32 = arith.constant 0 : i32
    %c0_i32_0 = arith.constant 0 : i32
    %c0_i32_1 = arith.constant 0 : i32
    return %arg0, %c0_i32, %c0_i32_0 : i32, i32, i32
  }
  func.func @transform_1(%arg0: i32) -> (i32, i32) {
    %c0_i32 = arith.constant 0 : i32
    %c0_i32_0 = arith.constant 0 : i32
    %c0_i32_1 = arith.constant 0 : i32
    return %c0_i32, %c0_i32_0 : i32, i32
  }
  func.func @transform_2(%arg0: i32) -> (i32, i32) {
    %c0_i32 = arith.constant 0 : i32
    %c0_i32_0 = arith.constant 0 : i32
    %c0_i32_1 = arith.constant 0 : i32
    return %c0_i32, %c0_i32_0 : i32, i32
  }
  func.func @transform_3(%arg0: i32) -> (i32, i32) {
    %c0_i32 = arith.constant 0 : i32
    %c0_i32_0 = arith.constant 0 : i32
    %c0_i32_1 = arith.constant 0 : i32
    return %c0_i32, %c0_i32_0 : i32, i32
  }
  func.func @transform_4(%arg0: i32) -> (i32, i32) {
    %c0_i32 = arith.constant 0 : i32
    %c0_i32_0 = arith.constant 0 : i32
    %c0_i32_1 = arith.constant 0 : i32
    return %c0_i32, %c0_i32_0 : i32, i32
  }
  func.func @transform_5(%arg0: i32) -> (i32, i32, i32) {
    %c0_i32 = arith.constant 0 : i32
    %c0_i32_0 = arith.constant 0 : i32
    %c0_i32_1 = arith.constant 0 : i32
    %c0_i32_2 = arith.constant 0 : i32
    return %c0_i32, %c0_i32_0, %c0_i32_1 : i32, i32, i32
  }
  func.func @transform_6(%arg0: i32) -> (i32, i32, i32) {
    %c0_i32 = arith.constant 0 : i32
    %c0_i32_0 = arith.constant 0 : i32
    %c0_i32_1 = arith.constant 0 : i32
    return %arg0, %c0_i32, %c0_i32_0 : i32, i32, i32
  }
  func.func @transform_7(%arg0: i32) -> (i32, i32) {
    %c0_i32 = arith.constant 0 : i32
    %c0_i32_0 = arith.constant 0 : i32
    %c0_i32_1 = arith.constant 0 : i32
    return %c0_i32, %c0_i32_0 : i32, i32
  }
  func.func @transform_8(%arg0: i32) -> (i32, i32) {
    %c0_i32 = arith.constant 0 : i32
    %c0_i32_0 = arith.constant 0 : i32
    %c0_i32_1 = arith.constant 0 : i32
    return %c0_i32, %c0_i32_0 : i32, i32
  }
  func.func @transform_9(%arg0: i32) -> (i32, i32, i32) {
    %c0_i32 = arith.constant 0 : i32
    %c0_i32_0 = arith.constant 0 : i32
    %c0_i32_1 = arith.constant 0 : i32
    %c0_i32_2 = arith.constant 0 : i32
    return %c0_i32, %c0_i32_0, %c0_i32_1 : i32, i32, i32
  }
  func.func @transform_10(%arg0: i32) -> (i32, i32) {
    %c0_i32 = arith.constant 0 : i32
    %c0_i32_0 = arith.constant 0 : i32
    %c0_i32_1 = arith.constant 0 : i32
    return %c0_i32, %c0_i32_0 : i32, i32
  }
  func.func @transform_11(%arg0: i32) -> (i32, i32) {
    %c0_i32 = arith.constant 0 : i32
    %c0_i32_0 = arith.constant 0 : i32
    %c0_i32_1 = arith.constant 0 : i32
    return %c0_i32, %c0_i32_0 : i32, i32
  }
  func.func @transform_12(%arg0: i32) -> (i32, i32) {
    %c0_i32 = arith.constant 0 : i32
    %c0_i32_0 = arith.constant 0 : i32
    %c0_i32_1 = arith.constant 0 : i32
    return %c0_i32, %c0_i32_0 : i32, i32
  }
  func.func @transform_13(%arg0: i32) -> (i32, i32, i32) {
    %c0_i32 = arith.constant 0 : i32
    %c0_i32_0 = arith.constant 0 : i32
    %c0_i32_1 = arith.constant 0 : i32
    %c0_i32_2 = arith.constant 0 : i32
    return %c0_i32, %c0_i32_0, %c0_i32_1 : i32, i32, i32
  }
  func.func @transform_14(%arg0: i32) -> (i32, i32, i32) {
    %c0_i32 = arith.constant 0 : i32
    %c0_i32_0 = arith.constant 0 : i32
    %c0_i32_1 = arith.constant 0 : i32
    %c0_i32_2 = arith.constant 0 : i32
    return %c0_i32, %c0_i32_0, %c0_i32_1 : i32, i32, i32
  }
  func.func @transform_15(%arg0: i32) -> (i32, i32, i32) {
    %c0_i32 = arith.constant 0 : i32
    %c0_i32_0 = arith.constant 0 : i32
    %c0_i32_1 = arith.constant 0 : i32
    %c0_i32_2 = arith.constant 0 : i32
    return %c0_i32, %c0_i32_0, %c0_i32_1 : i32, i32, i32
  }
  func.func @transform_16(%arg0: i32) -> (i32, i32, i32) {
    %c0_i32 = arith.constant 0 : i32
    %c0_i32_0 = arith.constant 0 : i32
    %c0_i32_1 = arith.constant 0 : i32
    %c0_i32_2 = arith.constant 0 : i32
    return %c0_i32, %c0_i32_0, %c0_i32_1 : i32, i32, i32
  }
  func.func @transform_17(%arg0: i32) -> (i32, i32, i32) {
    %c0_i32 = arith.constant 0 : i32
    %c0_i32_0 = arith.constant 0 : i32
    %c0_i32_1 = arith.constant 0 : i32
    %c0_i32_2 = arith.constant 0 : i32
    return %c0_i32, %c0_i32_0, %c0_i32_1 : i32, i32, i32
  }
  func.func @transform_18(%arg0: i32) -> (i32, i32, i32) {
    %c0_i32 = arith.constant 0 : i32
    %c0_i32_0 = arith.constant 0 : i32
    %c0_i32_1 = arith.constant 0 : i32
    %c0_i32_2 = arith.constant 0 : i32
    return %c0_i32, %c0_i32_0, %c0_i32_1 : i32, i32, i32
  }
  func.func @transform_19(%arg0: i32) -> (i32, i32, i32) {
    %c0_i32 = arith.constant 0 : i32
    %c0_i32_0 = arith.constant 0 : i32
    %c0_i32_1 = arith.constant 0 : i32
    %c0_i32_2 = arith.constant 0 : i32
    return %c0_i32, %c0_i32_0, %c0_i32_1 : i32, i32, i32
  }
  func.func @transform_20(%arg0: i32) -> (i32, i32) {
    %c0_i32 = arith.constant 0 : i32
    %c0_i32_0 = arith.constant 0 : i32
    %c0_i32_1 = arith.constant 0 : i32
    return %c0_i32, %c0_i32_0 : i32, i32
  }
  func.func @transform_21(%arg0: i32) -> (i32, i32, i32) {
    %c0_i32 = arith.constant 0 : i32
    %c0_i32_0 = arith.constant 0 : i32
    %c0_i32_1 = arith.constant 0 : i32
    return %arg0, %c0_i32, %c0_i32_0 : i32, i32, i32
  }
}

</mosaic_0001>

<bundles_post_ra>
// kernel: tpu_custom_call.1
= control target key start
LH: loop header
LB: loop body
LE: loop exit
PB: predicated region body
PF: predicated region fallthrough
CT: control target
= control target key end

     0   :  { %s7318_s0 = inlined_call_operand.vmem [shape: f32[2,64,16], index: 0, kind: input, shape index: {}]   ;;  %s7319_s1 = inlined_call_operand.hbm [shape: f32[16,16], index: 1, kind: input, shape index: {}]   ;;  %s7320_s2 = inlined_call_operand.hbm [shape: f32[32,32], index: 2, kind: input, shape index: {}]   ;;  %s7321_s3 = inlined_call_operand.vmem [shape: f32[1,16], index: 3, kind: input, shape index: {}]   ;;  %s7322_s4 = inlined_call_operand.hbm [shape: f32[1,16], index: 4, kind: input, shape index: {}]   ;;  %s7323_s5 = inlined_call_operand.vmem [shape: f32[9,16,32], index: 5, kind: input, shape index: {}]   ;;  %s7324_s6 = inlined_call_operand.hbm [shape: f32[2,1,32], index: 6, kind: input, shape index: {}]   ;;  %s7325_s7 = inlined_call_operand.hbm [shape: f32[1,32], index: 7, kind: input, shape index: {}]   ;;  %s7326_s8 = inlined_call_operand.hbm [shape: f32[1,32], index: 8, kind: input, shape index: {}]   ;;  %s7327_s9 = inlined_call_operand.hbm [shape: f32[9,32,32], index: 9, kind: input, shape index: {}]   ;;  %s7328_s10 = inlined_call_operand.hbm [shape: f32[1,32], index: 10, kind: input, shape index: {}]   ;;  %s7329_s11 = inlined_call_operand.hbm [shape: f32[16,32], index: 11, kind: input, shape index: {}]   ;;  %s7330_s12 = inlined_call_operand.hbm [shape: f32[1,32], index: 12, kind: input, shape index: {}]   ;;  %s7331_s13 = inlined_call_operand.hbm [shape: f32[1,32,32], index: 13, kind: input, shape index: {}]   ;;  %s7332_s14 = inlined_call_operand.hbm [shape: f32[1,32,32], index: 14, kind: input, shape index: {}]   ;;  %s7333_s15 = inlined_call_operand.hbm [shape: f32[1,32,32], index: 15, kind: input, shape index: {}]   ;;  %s7334_s16 = inlined_call_operand.hbm [shape: f32[1,1,32], index: 16, kind: input, shape index: {}]   ;;  %s7335_s17 = inlined_call_operand.hbm [shape: f32[1,1,32], index: 17, kind: input, shape index: {}]   ;;  %s7336_s18 = inlined_call_operand.hbm [shape: f32[1,1,32], index: 18, kind: input, shape index: {}]   ;;  %s7337_s19 = inlined_call_operand.vmem [shape: f32[1,32,32], index: 19, kind: input, shape index: {}]   ;;  %s7338_s20 = inlined_call_operand.vmem [shape: f32[1,32], index: 20, kind: input, shape index: {}]   ;;  %s7339_s21 = inlined_call_operand.vmem [shape: f32[2,64,32], index: 21, kind: output, shape index: {}]  }
   0x1   :  { %7385 = sst [smem:[#allocation69_spill]] %s7318_s0 }
   0x2   :  { %7386 = sst [smem:[#allocation70_spill]] %s7319_s1 }
   0x3   :  { %7387 = sst [smem:[#allocation71_spill]] %s7320_s2 }
   0x4   :  { %7388 = sst [smem:[#allocation72_spill]] %s7321_s3 }
   0x5   :  { %7389 = sst [smem:[#allocation73_spill]] %s7322_s4 }
   0x6   :  { %7390 = sst [smem:[#allocation74_spill]] %s7323_s5 }
   0x7   :  { %7391 = sst [smem:[#allocation75_spill]] %s7324_s6 }
   0x8   :  { %7392 = sst [smem:[#allocation76_spill]] %s7325_s7 }
   0x9   :  { %7393 = sst [smem:[#allocation77_spill]] %s7326_s8 }
   0xa   :  { %7394 = sst [smem:[#allocation78_spill]] %s7328_s10 }
   0xb   :  { %7395 = sst [smem:[#allocation79_spill]] %s7337_s19 }
   0xc   :  { %7396 = sst [smem:[#allocation80_spill]] %s7338_s20 }
   0xd   :  { %7397 = sst [smem:[#allocation81_spill]] %s7339_s21 }
   0xe   :  { %26 = vsyncpa [#allocation5], 0 }
   0xf   :  { %27 = vsyncpa [#allocation7], 0 }
  0x10   :  { %28 = vsyncpa [#allocation10], 0 }
  0x11   :  { %30 = vsyncpa [#allocation10 + $0x1], 0 }
  0x12   :  { %31 = vsyncpa [#allocation13], 0 }
  0x13   :  { %32 = vsyncpa [#allocation16], 0 }
  0x14   :  { %33 = vsyncpa [#allocation19], 0 }
  0x15   :  { %34 = vsyncpa [#allocation22], 0 }
  0x16   :  { %35 = vsyncpa [#allocation25], 0 }
  0x17   :  { %36 = vsyncpa [#allocation28], 0  ;;  %s5672_s2 = smov 0   ;;  %s5674_s25 = smov 0  }
  0x18   :  { %s5676_s26 = smov 0   ;;  %s5678_s27 = smov 0  }
  0x19 LB: > { %s5693_s3 = sadd.s32 4294967295, %s5541_s27   ;;  %p4381_p0 = scmp.ge.s32.totalorder %s5541_s27, 1  ;;  %s5541_s27 = sphi %s5678_s27, %s7676_s27   ;;  %s5537_s26 = sphi %s5676_s26, %s7675_s26   ;;  %s5533_s25 = sphi %s5674_s25, %s7674_s25   ;;  %s5529_s2 = sphi %s5672_s2, %s7673_s2  }
  0x1a   : > { %7398 = sst [smem:[#allocation39_spill]] %s5693_s3  ;;  %p194_p1 = scmp.eq.s32.totalorder %s5693_s3, 0 }
  0x1b   : > { %p524_p2 = scmp.lt.s32.totalorder %s5541_s27, 3  ;;  %s7399_s0 = sld [smem:[#allocation71_spill]] }
  0x1c   : > { %s5543_s5 = smov [#allocation6]   ;;  %s7402_s7 = sld [smem:[#allocation76_spill]] }
  0x1d   : > { %p5701_p3 = pnand %p4381_p0, %p524_p2  ;;  %s551_s22 = sshll.u32 %s5543_s5, 4  ;;  %s552_s22 = int_to_ptr.vmem [resolvable:$true] %s551_s22 }
  0x1e   : > { %s7404_s8 = sld [smem:[#allocation77_spill]]  ;;  %s5544_s20 = smov [#allocation11]  }
  0x1f   : > { %s7400_s30 = scalar_select %p5701_p3, 1, 0 }
  0x20   : > { %p4738_p4 = pneg %p5701_p3  ;;  %s584_s5 = sshll.u32 %s5544_s20, 4  ;;  %s585_s5 = int_to_ptr.vmem [resolvable:$true] %s584_s5 }
  0x21   : > { %s549_s4 = sshll.u32 %s7399_s0, 4  ;;  %7401 = sst [smem:[#allocation40_spill]] %s7400_s30  ;;  %s550_s4 = int_to_ptr.hbm [resolvable:$true] %s549_s4 }
  0x22   : > { %s582_s24 = sshll.u32 %s7402_s7, 4  ;;  %p5712_p5 = pnand %p4738_p4, %p194_p1  ;;  %s583_s24 = int_to_ptr.hbm [resolvable:$true] %s582_s24 }
  0x23   : > { %s5545_s19 = smov 128   ;;  %s5546_s30 = smov 8  }
  0x24   : > { %s594_s0 = sshll.u32 %s7404_s8, 4  ;;  %s7405_s10 = sld [smem:[#allocation78_spill]]  ;;  %s595_s0 = int_to_ptr.hbm [resolvable:$true] %s594_s0 }
  0x25   : > { %4744 = dma.hbm_to_vmem [thread:$0]  (!%p5712_p5), %s550_s4, 512, %s552_s22, [#allocation7], %s5545_s19, %s5545_s19, %s5546_s30  }
  0x26   : > { %4750 = dma.hbm_to_vmem [thread:$0]  (!%p5712_p5), %s583_s24, 16, %s585_s5, [#allocation10]  }
  0x27   : > { %s5547_s28 = smov [#allocation12]   ;;  %s5548_s20 = smov [#allocation15]  }
  0x28   : > { %s596_s29 = sshll.u32 %s5547_s28, 4  ;;  %s622_s8 = sshll.u32 %s5548_s20, 4  ;;  %s597_s29 = int_to_ptr.vmem [resolvable:$true] %s596_s29  ;;  %s623_s8 = int_to_ptr.vmem [resolvable:$true] %s622_s8 }
  0x29   : > { %4753 = dma.hbm_to_vmem [thread:$0]  (!%p5712_p5), %s595_s0, 16, %s597_s29, [#allocation13]  }
  0x2a   : > { %s620_s7 = sshll.u32 %s7405_s10, 4  ;;  %s646_s4 = sshll.u32 %s7330_s12, 4  ;;  %s621_s7 = int_to_ptr.hbm [resolvable:$true] %s620_s7  ;;  %s647_s4 = int_to_ptr.hbm [resolvable:$true] %s646_s4 }
  0x2b   : > { %4759 = dma.hbm_to_vmem [thread:$0]  (!%p5712_p5), %s621_s7, 16, %s623_s8, [#allocation16]  }
  0x2c   : > { %s671_s5 = sshll.u32 %s7332_s14, 4  ;;  %s5549_s23 = smov [#allocation18]   ;;  %s672_s5 = int_to_ptr.hbm [resolvable:$true] %s671_s5 }
  0x2d   : > { %s648_s1 = sshll.u32 %s5549_s23, 4  ;;  %s5550_s0 = smov [#allocation21]   ;;  %s649_s1 = int_to_ptr.vmem [resolvable:$true] %s648_s1 }
  0x2e   : > { %4765 = dma.hbm_to_vmem [thread:$0]  (!%p5712_p5), %s647_s4, 16, %s649_s1, [#allocation19]  }
  0x2f   : > { %s673_s28 = sshll.u32 %s5550_s0, 4  ;;  %s700_s29 = sshll.u32 %s7334_s16, 4  ;;  %s674_s28 = int_to_ptr.vmem [resolvable:$true] %s673_s28  ;;  %s701_s29 = int_to_ptr.hbm [resolvable:$true] %s700_s29 }
  0x30   : > { %4771 = dma.hbm_to_vmem [thread:$0]  (!%p5712_p5), %s672_s5, 512, %s674_s28, [#allocation22], %s5545_s19, %s5545_s19, %s5546_s30  }
  0x31   : > { %s7406_s20 = sld [smem:[#allocation70_spill]]  ;;  %s5551_s24 = smov [#allocation24]  }
  0x32   : > { %s702_s4 = sshll.u32 %s5551_s24, 4  ;;  %s5552_s23 = smov [#allocation4]   ;;  %s703_s4 = int_to_ptr.vmem [resolvable:$true] %s702_s4 }
  0x33   : > { %4777 = dma.hbm_to_vmem [thread:$0]  (!%p5712_p5), %s701_s29, 16, %s703_s4, [#allocation25]  }
  0x34   : > { %s537_s1 = sshll.u32 %s5552_s23, 4  ;;  %s7407_s3 = sld [smem:[#allocation73_spill]]  ;;  %s538_s1 = int_to_ptr.vmem [resolvable:$true] %s537_s1 }
  0x35   : > { %s605_s7 = sshll.u32 %s7327_s9, 4  ;;  %s5553_s8 = smov [#allocation8]   ;;  %s606_s7 = int_to_ptr.hbm [resolvable:$true] %s605_s7 }
  0x36   : > { %s569_s29 = sshll.u32 %s5553_s8, 4  ;;  %s631_s0 = sshll.u32 %s7329_s11, 4  ;;  %s570_s29 = int_to_ptr.vmem [resolvable:$true] %s569_s29  ;;  %s632_s0 = int_to_ptr.hbm [resolvable:$true] %s631_s0 }
  0x37   : > { %s535_s22 = sshll.u32 %s7406_s20, 4  ;;  %s5554_s20 = smov [#allocation14]   ;;  %s536_s22 = int_to_ptr.hbm [resolvable:$true] %s535_s22 }
  0x38   : > { %4741 = dma.hbm_to_vmem [thread:$0]  (!%p5712_p5), %s536_s22, 256, %s538_s1, [#allocation5], %s5545_s19, %s5545_s19, %s5546_s30  }
  0x39   : > { %s607_s24 = sshll.u32 %s5554_s20, 4  ;;  %s657_s6 = sshll.u32 %s7331_s13, 4  ;;  %s608_s24 = int_to_ptr.vmem [resolvable:$true] %s607_s24  ;;  %s658_s6 = int_to_ptr.hbm [resolvable:$true] %s657_s6 }
  0x3a   : > { %s567_s10 = sshll.u32 %s7407_s3, 4  ;;  %s5555_s3 = smov [#allocation17]   ;;  %s568_s10 = int_to_ptr.hbm [resolvable:$true] %s567_s10 }
  0x3b   : > { %4747 = dma.hbm_to_vmem [thread:$0]  (!%p5712_p5), %s568_s10, 16, %s570_s29, [#allocation7]  }
  0x3c   : > { %4756 = dma.hbm_to_vmem [thread:$0]  (!%p5712_p5), %s606_s7, 4608, %s608_s24, [#allocation13], %s5545_s19, %s5545_s19, %s5546_s30  }
  0x3d   : > { %s633_s10 = sshll.u32 %s5555_s3, 4  ;;  %s5556_s5 = smov [#allocation20]   ;;  %s634_s10 = int_to_ptr.vmem [resolvable:$true] %s633_s10 }
  0x3e   : > { %4762 = dma.hbm_to_vmem [thread:$0]  (!%p5712_p5), %s632_s0, 256, %s634_s10, [#allocation16], %s5545_s19, %s5545_s19, %s5546_s30  }
  0x3f   : > { %s659_s28 = sshll.u32 %s5556_s5, 4  ;;  %s685_s7 = sshll.u32 %s7333_s15, 4  ;;  %s660_s28 = int_to_ptr.vmem [resolvable:$true] %s659_s28  ;;  %s686_s7 = int_to_ptr.hbm [resolvable:$true] %s685_s7 }
  0x40   : > { %4768 = dma.hbm_to_vmem [thread:$0]  (!%p5712_p5), %s658_s6, 512, %s660_s28, [#allocation19], %s5545_s19, %s5545_s19, %s5546_s30  }
  0x41   : > { %s712_s4 = sshll.u32 %s7335_s17, 4  ;;  %s5557_s23 = smov [#allocation23]   ;;  %s713_s4 = int_to_ptr.hbm [resolvable:$true] %s712_s4 }
  0x42   : > { %s687_s0 = sshll.u32 %s5557_s23, 4  ;;  %s5558_s22 = smov [#allocation26]   ;;  %s688_s0 = int_to_ptr.vmem [resolvable:$true] %s687_s0 }
  0x43   : > { %4774 = dma.hbm_to_vmem [thread:$0]  (!%p5712_p5), %s686_s7, 512, %s688_s0, [#allocation22], %s5545_s19, %s5545_s19, %s5546_s30  }
  0x44   : > { %s714_s1 = sshll.u32 %s5558_s22, 4  ;;  %s724_s10 = sshll.u32 %s7336_s18, 4  ;;  %s715_s1 = int_to_ptr.vmem [resolvable:$true] %s714_s1  ;;  %s725_s10 = int_to_ptr.hbm [resolvable:$true] %s724_s10 }
  0x45   : > { %4780 = dma.hbm_to_vmem [thread:$0]  (!%p5712_p5), %s713_s4, 16, %s715_s1, [#allocation25]  }
  0x46   : > { %s5559_s28 = smov [#allocation27]   ;;  %s5807_s30 = sadd.s32 1, %s5541_s27  }
  0x47   : > { %s726_s19 = sshll.u32 %s5559_s28, 4  ;;  %s177_s8 = ssub.s32 %s5541_s27, %s5807_s30  ;;  %s727_s19 = int_to_ptr.vmem [resolvable:$true] %s726_s19 }
  0x48   : > { %4783 = dma.hbm_to_vmem [thread:$0]  (!%p5712_p5), %s725_s10, 16, %s727_s19, [#allocation28]  }
  0x49   : > { %s180_s29 = sadd.s32 1, %s5537_s26  ;;  %p178_p6 = scmp.eq.s32.totalorder %s177_s8, 0 }
  0x4a   : > { %p187_p7 = scmp.ne.s32.totalorder %s5537_s26, %s5533_s25  ;;  %p188_p8 = scmp.eq.s32.totalorder %s5541_s27, 0 }
  0x4b   : > { %p193_p9 = scmp.ne.s32.totalorder %s5533_s25, %s5529_s2  ;;  %p4803_p12 = scmp.lt.s32.totalorder %s5541_s27, 2 }
  0x4c   : > { %s5818_s7 = scalar_select %p178_p6, %s5537_s26, %s180_s29  }
  0x4d   : > { %p5822_p10 = por %p194_p1, %p193_p9  ;;  %p189_p11 = por %p188_p8, %p187_p7 }
  0x4e   : > { %s751_s21 = sand.u32 1, %s5541_s27   ;;  %s753_s24 = sand.u32 1, %s5537_s26  }
  0x4f   : > { %s7410_s0 = sld [smem:[#allocation75_spill]]  ;;  %s754_s6 = scalar_lea.vmem [#allocation9], %s753_s24 }
  0x50   : > { %s761_s3 = sshll.u32 %s754_s6, 4  ;;  %p5833_p13 = pnand %p4803_p12, %p189_p11  ;;  %s762_s3 = int_to_ptr.vmem [resolvable:$true] %s761_s3 }
  0x51   : > { %s752_s10 = scalar_lea.sflag [#allocation10], %s751_s21 }
  0x52   : > { %p5445_p2 = pneg %p5833_p13 }
  0x55   : > { %s757_s22 = scalar_lea.hbm %s7410_s0, %s5541_s27  ;;  %s5448_s8 = scalar_lea.hbm %s7410_s0, 2 }
  0x56   : > { %s759_s1 = sshll.u32 %s757_s22, 4  ;;  %s760_s1 = int_to_ptr.hbm [resolvable:$true] %s759_s1 }
  0x57   : > { %s5441_s5 = sshra.s32 %s760_s1, 4  ;;  %s5442_s5 = int_to_ptr.hbm [resolvable:$true] %s5441_s5 }
  0x58   : > { %s5443_s28 = scalar_lea.hbm %s5442_s5, 1  ;;  %p5449_p6 = scmp.lt.s32.totalorder %s5442_s5, %s7410_s0 }
  0x59   : > { %p5444_p0 = scmp.ne.s32.totalorder %s5442_s5, %s5443_s28  ;;  %p5450_p7 = scmp.lt.s32.totalorder %s5448_s8, %s5443_s28 }
  0x5b   : > { %p5446_p4 = pnand %p5445_p2, %p5444_p0  ;;  %p5451_p8 = por %p5450_p7, %p5449_p6 }
  0x5d   : > { %p5447_p5 = pneg %p5446_p4 }
  0x5f   : > { %p5452_p9 = pnand %p5451_p8, %p5447_p5 }
  0x61   : > { %5455 = shalt.err (!%p5452_p9)
}
  0x62   : > { %4787 = dma.hbm_to_vmem [thread:$0]  (!%p5833_p13), %s760_s1, 16, %s762_s3, %s752_s10  }
  0x63   : > { %770 = sbr.rel (%p5701_p3) target bundleno = 3507 (0xdb3), region = 104 }
  0x68   : > { %s7413_s4 = sld [smem:[#allocation39_spill]] }
  0x69   : > { %5488 = dma.done.wait (%p194_p1), [#allocation5], 256  }
  0x6a   : > { %5490 = vsyncadd (%p194_p1), [#allocation5], 4294967040 }
  0x6b   : > { %5492 = dma.done.wait (%p194_p1), [#allocation7], 528  }
  0x6c   : > { %5494 = vsyncadd (%p194_p1), [#allocation7], 4294966768  ;;  %s789_s22 = sand.u32 1, %s5533_s25  }
  0x6d   : > { %s5859_s6 = scalar_lea.vmem [#allocation9], %s789_s22 }
  0x6e   : > { %s787_s23 = sand.u32 1, %s7413_s4  }
  0x6f   : > { %s788_s1 = scalar_lea.sflag [#allocation10], %s787_s23 }
  0x70   : > { %5496 = dma.done.wait (%p5822_p10), %s788_s1, 16  }
  0x71   : > { %5498 = vsyncadd (%p5822_p10), %s788_s1, 4294967280 }
  0x72   : > { %5500 = dma.done.wait (%p194_p1), [#allocation10], 16  }
  0x73   : > { %5502 = vsyncadd (%p194_p1), [#allocation10], 4294967280 }
  0x74   : > { %5504 = dma.done.wait (%p194_p1), [#allocation13], 4624  }
  0x75   : > { %5506 = vsyncadd (%p194_p1), [#allocation13], 4294962672 }
  0x76   : > { %5508 = dma.done.wait (%p194_p1), [#allocation16], 272  }
  0x77   : > { %5510 = vsyncadd (%p194_p1), [#allocation16], 4294967024 }
  0x78   : > { %5512 = dma.done.wait (%p194_p1), [#allocation19], 528  }
  0x79   : > { %5514 = vsyncadd (%p194_p1), [#allocation19], 4294966768 }
  0x7a   : > { %5516 = dma.done.wait (%p194_p1), [#allocation22], 1024  }
  0x7b   : > { %5518 = vsyncadd (%p194_p1), [#allocation22], 4294966272 }
  0x7c   : > { %5520 = dma.done.wait (%p194_p1), [#allocation25], 32  }
  0x7d   : > { %5522 = vsyncadd (%p194_p1), [#allocation25], 4294967264 }
  0x7e   : > { %5524 = dma.done.wait (%p194_p1), [#allocation28], 16  }
  0x7f   : > { %5526 = vsyncadd (%p194_p1), [#allocation28], 4294967280  ;;  %p914_p3 = scmp.lt.s32.totalorder %s7413_s4, 1  ;;  %s7414_s10 = sld [smem:[#allocation69_spill]]  ;;  %v933_v4 = vld [vmem:[#allocation4 + $0x8] sm:$0xff]  ;;  %vm7346_vm0 = vcmask 523264  }
  0x80   : > { %978 = vmatpush.msra.mxu1 %v933_v4  ;;  %1038 = vmatpush.msra.mxu3 %v933_v4  ;;  %v7349_v9 = vmov 1.0   ;;  %v932_v10 = vld [vmem:[#allocation4] sm:$0xff]  ;;  %vm7383_vm1 = vcmask 130048   ;;  %s7415_s19 = sld [smem:[#allocation72_spill]]  ;;  %v4871_v46 = vld [vmem:[#allocation8] ss:$0 sm:$0xff] }
  0x81   : > { %s7678_s4 = smov (!%p914_p3, %s7413_s4), 1  ;;  %s7416_s24 = sld [smem:[#allocation74_spill]] }
  0x82   : > { %s4672_s20 = sshll.u32 %s7678_s4, 6  ;;  %979 = vmatpush.msra.mxu1 %v932_v10  ;;  %1039 = vmatpush.msra.mxu3 %v932_v10  ;;  %s7650_s8 = sld [smem:[#allocation79_spill]] }
  0x83   : > { %s7663_s28 = sld [smem:[#allocation80_spill]] }
  0x85   : > { %s5903_s5 = scalar_lea.vmem %s7414_s10, %s4672_s20 }
  0x86   : > { %v931_v0 = vld [vmem:[%s5903_s5 + $0x38] sm:$0xff]  ;;  %v930_v1 = vld [vmem:[%s5903_s5 + $0x30] sm:$0xff]  ;;  %v929_v2 = vld [vmem:[%s5903_s5 + $0x28] sm:$0xff] }
  0x87   : > { %948 = vmatpush.msra.mxu0 %v931_v0  ;;  %v928_v3 = vld [vmem:[%s5903_s5 + $0x20] sm:$0xff]  ;;  %v927_v5 = vld [vmem:[%s5903_s5 + $0x18] sm:$0xff]  ;;  %v926_v6 = vld [vmem:[%s5903_s5 + $0x10] sm:$0xff] }
  0x88   : > { %v925_v7 = vld [vmem:[%s5903_s5 + $0x8] sm:$0xff]  ;;  %v924_v8 = vld [vmem:[%s5903_s5] sm:$0xff] }
  0x89   : > { %949 = vmatpush.msra.mxu0 %v930_v1  ;;  %v4870_v41 = vld [vmem:[%s7415_s19] ss:$0 sm:$0xff] }
  0x8b   : > { %950 = vmatpush.msra.mxu0 %v929_v2 }
  0x8d   : > { %951 = vmatpush.msra.mxu0 %v928_v3 }
  0x8f   : > { %952 = vmatpush.msra.mxu0 %v927_v5 }
  0x91   : > { %953 = vmatpush.msra.mxu0 %v926_v6 }
  0x93   : > { %954 = vmatpush.msra.mxu0 %v925_v7 }
  0x95   : > { %955 = vmatpush.msra.mxu0 %v924_v8 }
  0x96   : > { %4418 = vmatmul.msk.f32.vlgmr.msra.gmra.mxu0 %vm7346_vm0, %v7349_v9 }
 0x113   : > { %v957_v11 = vpop.f32.mrf.mxu0 }
 0x114   : > { %4419 = vmatmul.msk.f32.vlgmr.msra.gmra.mxu1 %vm7383_vm1, %v957_v11 }
 0x191   : > { %v981_v12 = vpop.f32.mrf.mxu1 }
 0x192   : > { %v984_v13 = vperm.slane %v981_v12, 0 }
 0x194   : > { %v992_v14 = vsub.f32 %v931_v0, %v984_v13  ;;  %v991_v15 = vsub.f32 %v930_v1, %v984_v13  ;;  %v990_v17 = vsub.f32 %v929_v2, %v984_v13  ;;  %v989_v19 = vsub.f32 %v928_v3, %v984_v13 }
 0x195   : > { %v988_v21 = vsub.f32 %v927_v5, %v984_v13  ;;  %v987_v23 = vsub.f32 %v926_v6, %v984_v13  ;;  %v986_v25 = vsub.f32 %v925_v7, %v984_v13  ;;  %v985_v27 = vsub.f32 %v924_v8, %v984_v13 }
 0x196   : > { %v1000_v16 = vmul.f32 %v992_v14, %v992_v14  ;;  %v999_v18 = vmul.f32 %v991_v15, %v991_v15  ;;  %v998_v20 = vmul.f32 %v990_v17, %v990_v17  ;;  %v997_v22 = vmul.f32 %v989_v19, %v989_v19 }
 0x197   : > { %v996_v24 = vmul.f32 %v988_v21, %v988_v21  ;;  %v995_v26 = vmul.f32 %v987_v23, %v987_v23  ;;  %v994_v28 = vmul.f32 %v986_v25, %v986_v25  ;;  %v993_v29 = vmul.f32 %v985_v27, %v985_v27 }
 0x198   : > { %1009 = vmatpush.msrb.mxu0 %v1000_v16 }
 0x19a   : > { %1010 = vmatpush.msrb.mxu0 %v999_v18 }
 0x19c   : > { %1011 = vmatpush.msrb.mxu0 %v998_v20  ;;  %v7347_v20 = vmov 0.0  }
 0x19d   : > { %1237 = vst.msk [vmem:[#allocation2] sm:$0xff] %vm7383_vm1, %v7347_v20 }
 0x19e   : > { %1012 = vmatpush.msrb.mxu0 %v997_v22  ;;  %1238 = vst.msk [vmem:[#allocation2 + $0x8] sm:$0xff] %vm7383_vm1, %v7347_v20 }
 0x19f   : > { %1239 = vst.msk [vmem:[#allocation2 + $0x10] sm:$0xff] %vm7383_vm1, %v7347_v20 }
 0x1a0   : > { %1013 = vmatpush.msrb.mxu0 %v996_v24  ;;  %v4467_v24 = vld [vmem:[%s7416_s24 + $0x38] sm:$0xff]  ;;  %1240 = vst.msk [vmem:[#allocation2 + $0x18] sm:$0xff] %vm7383_vm1, %v7347_v20 }
 0x1a1   : > { %1718 = vmatpush.msra.mxu2 %v4467_v24  ;;  %1241 = vst.msk [vmem:[#allocation2 + $0x20] sm:$0xff] %vm7383_vm1, %v7347_v20 }
 0x1a2   : > { %1014 = vmatpush.msrb.mxu0 %v995_v26  ;;  %1242 = vst.msk [vmem:[#allocation2 + $0x28] sm:$0xff] %vm7383_vm1, %v7347_v20 }
 0x1a3   : > { %1243 = vst.msk [vmem:[#allocation2 + $0x30] sm:$0xff] %vm7383_vm1, %v7347_v20 }
 0x1a4   : > { %1015 = vmatpush.msrb.mxu0 %v994_v28  ;;  %1244 = vst.msk [vmem:[#allocation2 + $0x38] sm:$0xff] %vm7383_vm1, %v7347_v20 }
 0x1a5   : > { %1245 = vst.msk [vmem:[#allocation2 + $0x40] sm:$0xff] %vm7383_vm1, %v7347_v20 }
 0x1a6   : > { %1016 = vmatpush.msrb.mxu0 %v993_v29  ;;  %1246 = vst.msk [vmem:[#allocation2 + $0x48] sm:$0xff] %vm7383_vm1, %v7347_v20 }
 0x1a7   : > { %4420 = vmatmul.msk.f32.vlgmr.msrb.gmra.mxu0 %vm7346_vm0, %v7349_v9 }
 0x224   : > { %v1018_v30 = vpop.f32.mrf.mxu0 }
 0x225   : > { %4421 = vmatmul.msk.f32.vlgmr.msra.gmra.mxu3 %vm7383_vm1, %v1018_v30  ;;  %v4456_v30 = vld [vmem:[%s7416_s24 + $0x20] sm:$0xff] }
 0x2a8   : > { %v1041_v31 = vpop.f32.mrf.mxu3 }
 0x2a9   : > { %v1042_v32 = vadd.f32 1e-05, %v1041_v31  ;;  %v4466_v31 = vld [vmem:[%s7416_s24 + $0x30] sm:$0xff] }
 0x2aa   : > { %1719 = vmatpush.msra.mxu2 %v4466_v31 }
 0x2ab   : > { %4881 = vrsqrt.f32 %v1042_v32  ;;  %vm1050_vm3 = vweird.f32 %v1042_v32 }
 0x2b1   : > { %v4882_v33 = vpop.eup %4881 }
 0x2b2   : > { %v1045_v34 = vmul.f32 %v4882_v33, %v1042_v32  ;;  %vm1051_vm2 = vweird.f32 %v4882_v33 }
 0x2b3   : > { %vm1052_vm4 = vmor %vm1050_vm3, %vm1051_vm2 }
 0x2b4   : > { %v1046_v35 = vmul.f32 %v4882_v33, %v1045_v34  ;;  %v1428_v34 = vld [vmem:[#allocation2 + $0x1] sm:$0xff] }
 0x2b6   : > { %v1047_v36 = vmul.f32 0.5, %v1046_v35  ;;  %v1257_v35 = vlaneseq }
 0x2b8   : > { %v1048_v37 = vsub.f32 1.5, %v1047_v36 }
 0x2ba   : > { %v1049_v38 = vmul.f32 %v4882_v33, %v1048_v37 }
 0x2bc   : > { %v1053_v39 = vsel %vm1052_vm4, %v4882_v33, %v1049_v38 }
 0x2bd   : > { %v1054_v40 = vperm.slane %v1053_v39, 0 }
 0x2bf   : > { %v1055_v42 = vmul.f32 %v1054_v40, %v985_v27  ;;  %v1056_v43 = vmul.f32 %v1054_v40, %v986_v25  ;;  %v1057_v44 = vmul.f32 %v1054_v40, %v987_v23  ;;  %v1058_v45 = vmul.f32 %v1054_v40, %v988_v21  ;;  %v4457_v23 = vld [vmem:[%s7416_s24 + $0x28] sm:$0xff] }
 0x2c0   : > { %v1059_v47 = vmul.f32 %v1054_v40, %v989_v19  ;;  %v1060_v48 = vmul.f32 %v1054_v40, %v990_v17  ;;  %v1061_v49 = vmul.f32 %v1054_v40, %v991_v15  ;;  %v1062_v50 = vmul.f32 %v1054_v40, %v992_v14  ;;  %v4439_v17 = vld [vmem:[%s7416_s24 + $0x18] sm:$0xff]  ;;  %v4438_v19 = vld [vmem:[%s7416_s24 + $0x10] sm:$0xff]  ;;  %1626 = vmatpush.msra.mxu0 %v4457_v23 }
 0x2c1   : > { %v1066_v51 = vmul.f32 %v4870_v41, %v1055_v42  ;;  %v1067_v52 = vmul.f32 %v4870_v41, %v1056_v43  ;;  %v1068_v53 = vmul.f32 %v4870_v41, %v1057_v44  ;;  %v1069_v54 = vmul.f32 %v4870_v41, %v1058_v45  ;;  %1477 = vmatpush.msrb.mxu1 %v4439_v17 }
 0x2c2   : > { %v1070_v55 = vmul.f32 %v4870_v41, %v1059_v47  ;;  %v1071_v56 = vmul.f32 %v4870_v41, %v1060_v48  ;;  %v1072_v57 = vmul.f32 %v4870_v41, %v1061_v49  ;;  %v1073_v58 = vmul.f32 %v4870_v41, %v1062_v50  ;;  %4674 = vmatpush.msrb.mxu3 %v4439_v17 }
 0x2c3   : > { %v5922_v59 = vadd.f32 %v4871_v46, %v1066_v51  ;;  %v5924_v60 = vadd.f32 %v4871_v46, %v1067_v52  ;;  %v5926_v61 = vadd.f32 %v4871_v46, %v1068_v53  ;;  %v5928_v62 = vadd.f32 %v4871_v46, %v1069_v54  ;;  %1478 = vmatpush.msrb.mxu1 %v4438_v19 }
 0x2c4   : > { %v5930_v63 = vadd.f32 %v4871_v46, %v1070_v55  ;;  %v5932_v0 = vadd.f32 %v4871_v46, %v1071_v56  ;;  %v5934_v1 = vadd.f32 %v4871_v46, %v1072_v57  ;;  %v5936_v2 = vadd.f32 %v4871_v46, %v1073_v58  ;;  %4675 = vmatpush.msrb.mxu3 %v4438_v19 }
 0x2c5   : > { %v1085_v3 = vsub.f32 0.0, %v5922_v59  ;;  %v1086_v4 = vsub.f32 0.0, %v5924_v60  ;;  %v1087_v5 = vsub.f32 0.0, %v5926_v61  ;;  %v1088_v6 = vsub.f32 0.0, %v5928_v62  ;;  %1627 = vmatpush.msra.mxu0 %v4456_v30  ;;  %4440 = vmatmul.msk.f32.vlgmr.msrb.gmra.mxu1 %vm7383_vm1, %v1428_v34 }
 0x2c6   : > { %v1089_v7 = vsub.f32 0.0, %v5930_v63  ;;  %v1090_v8 = vsub.f32 0.0, %v5932_v0  ;;  %v1091_v10 = vsub.f32 0.0, %v5934_v1  ;;  %v1092_v14 = vsub.f32 0.0, %v5936_v2 }
 0x2c7   : > { %v1093_v11 = vmul.f32 1.442695, %v1085_v3  ;;  %v1095_v12 = vmul.f32 1.442695, %v1086_v4  ;;  %v1097_v13 = vmul.f32 1.442695, %v1087_v5 }
 0x2c8   : > { %v1099_v15 = vmul.f32 1.442695, %v1088_v6  ;;  %v1101_v16 = vmul.f32 1.442695, %v1089_v7  ;;  %v1103_v18 = vmul.f32 1.442695, %v1090_v8 }
 0x2c9   : > { %4883 = vpow2.f32 %v1093_v11  ;;  %v1105_v21 = vmul.f32 1.442695, %v1091_v10  ;;  %v1107_v22 = vmul.f32 1.442695, %v1092_v14  ;;  %v6003_v45 = vshrl.u32 %v1257_v35, 7 }
 0x2ca   : > { %4885 = vpow2.f32 %v1095_v12 }
 0x2cb   : > { %4887 = vpow2.f32 %v1097_v13  ;;  %v1270_v49 = vand.u32 7, %v6003_v45 }
 0x2cc   : > { %4889 = vpow2.f32 %v1099_v15 }
 0x2cd   : > { %4891 = vpow2.f32 %v1101_v16  ;;  %vm6052_vm15 = vcmp.le.s32.totalorder %v1270_v49, 6  ;;  %vm6070_vm4 = vcmp.ge.s32.totalorder %v1270_v49, 1 }
 0x2ce   : > { %4893 = vpow2.f32 %v1103_v18  ;;  %v6137_v17 = vsel %vm6052_vm15, 1.0, %v7347_v20 }
 0x2cf   : > { %v4884_v25 = vpop.eup %4883  ;;  %4895 = vpow2.f32 %v1105_v21  ;;  %7431 = vst [vmem:[#allocation41_spill] sm:$0xff] %v6137_v17 }
 0x2d0   : > { %v4886_v26 = vpop.eup %4885  ;;  %4897 = vpow2.f32 %v1107_v22  ;;  %v5970_v27 = vadd.f32 1.0, %v4884_v25 }
 0x2d1   : > { %v4888_v28 = vpop.eup %4887  ;;  %v5974_v29 = vadd.f32 1.0, %v4886_v26 }
 0x2d2   : > { %v4890_v32 = vpop.eup %4889  ;;  %v5984_v33 = vadd.f32 1.0, %v4888_v28  ;;  %4899 = vrcp.f32 %v5970_v27  ;;  %v1126_v43 = vand.u32 2147483647, %v5970_v27  ;;  %v1128_v44 = vand.u32 2147483648, %v5970_v27 }
 0x2d3   : > { %v4892_v36 = vpop.eup %4891  ;;  %4901 = vrcp.f32 %v5974_v29  ;;  %v5993_v38 = vadd.f32 1.0, %v4890_v32  ;;  %vm1122_vm5 = vweird.f32 %v5970_v27  ;;  %v1141_v57 = vand.u32 2147483647, %v5974_v29 }
 0x2d4   : > { %v4894_v37 = vpop.eup %4893  ;;  %v5995_v39 = vadd.f32 1.0, %v4892_v36  ;;  %4903 = vrcp.f32 %v5984_v33  ;;  %vm6020_vm6 = vcmp.eq.f32.partialorder %v1126_v43, 8.507059e+37  ;;  %v1129_v55 = vor.u32 1.1754944e-38, %v1128_v44 }
 0x2d5   : > { %v4896_v40 = vpop.eup %4895  ;;  %v5997_v41 = vadd.f32 1.0, %v4894_v37  ;;  %v1143_v4 = vand.u32 2147483648, %v5974_v29  ;;  %vm1137_vm8 = vweird.f32 %v5974_v29  ;;  %vm6046_vm13 = vcmp.eq.f32.partialorder %v1141_v57, 8.507059e+37 }
 0x2d6   : > { %v4898_v42 = vpop.eup %4897  ;;  %4905 = vrcp.f32 %v5995_v39  ;;  %v6005_v46 = vadd.f32 1.0, %v4896_v40  ;;  %v1186_v51 = vand.u32 2147483647, %v5995_v39  ;;  %v1188_v52 = vand.u32 2147483648, %v5995_v39  ;;  %v1427_v40 = vld [vmem:[%s7416_s24 + $0x8] sm:$0xff] }
 0x2d7   : > { %v6007_v47 = vadd.f32 1.0, %v4898_v42  ;;  %4907 = vrcp.f32 %v5997_v41  ;;  %vm1182_vm7 = vweird.f32 %v5995_v39  ;;  %v1144_v24 = vor.u32 1.1754944e-38, %v1143_v4  ;;  %v1426_v42 = vld [vmem:[%s7416_s24] sm:$0xff]  ;;  %1542 = vmatpush.msra.mxu3 %v1427_v40 }
 0x2d8   : > { %v6010_v48 = vpop.eup %4899  ;;  %4909 = vrcp.f32 %v5993_v38  ;;  %vm6037_vm9 = vcmp.eq.f32.partialorder %v1186_v51, 8.507059e+37  ;;  %v1189_v13 = vor.u32 1.1754944e-38, %v1188_v52  ;;  %v1201_v34 = vand.u32 2147483647, %v5997_v41 }
 0x2d9   : > { %v4902_v50 = vpop.eup %4901  ;;  %4911 = vrcp.f32 %v6007_v47  ;;  %v1118_v53 = vmul.f32 %v6010_v48, %v5970_v27  ;;  %v1233_v3 = vand.u32 2147483648, %v6007_v47  ;;  %v1231_v6 = vand.u32 2147483647, %v6007_v47  ;;  %1543 = vmatpush.msra.mxu3 %v1426_v42 }
 0x2da   : > { %v1133_v56 = vmul.f32 %v4902_v50, %v5974_v29  ;;  %v6026_v58 = vpop.eup %4903  ;;  %4913 = vrcp.f32 %v6005_v46  ;;  %vm1123_vm10 = vweird.f32 %v6010_v48  ;;  %vm1138_vm11 = vweird.f32 %v4902_v50 }
 0x2db   : > { %v1119_v7 = vsub.f32 1.0, %v1118_v53  ;;  %vm1227_vm12 = vweird.f32 %v6007_v47  ;;  %v1234_v22 = vor.u32 1.1754944e-38, %v1233_v3  ;;  %vm6057_vm2 = vcmp.eq.f32.partialorder %v1231_v6, 8.507059e+37  ;;  %vm6066_vm3 = vmor %vm1122_vm5, %vm1123_vm10 }
 0x2dc   : > { %v4906_v5 = vpop.eup %4905  ;;  %v1134_v8 = vsub.f32 1.0, %v1133_v56  ;;  %vm1139_vm0 = vmor %vm1137_vm8, %vm1138_vm11  ;;  %v1203_v27 = vand.u32 2147483648, %v5997_v41  ;;  %v1148_v49 = vmul.f32 %v6026_v58, %v5984_v33  ;;  %v1158_v12 = vand.u32 2147483648, %v5984_v33 }
 0x2dd   : > { %v6034_v10 = vpop.eup %4907  ;;  %v1178_v11 = vmul.f32 %v4906_v5, %v5995_v39  ;;  %v1120_v15 = vmul.f32 %v6010_v48, %v1119_v7  ;;  %vm1183_vm14 = vweird.f32 %v4906_v5  ;;  %v1216_v31 = vand.u32 2147483647, %v6005_v46 }
 0x2de   : > { %v6042_v14 = vpop.eup %4909  ;;  %v1135_v16 = vmul.f32 %v4902_v50, %v1134_v8  ;;  %v1193_v18 = vmul.f32 %v6034_v10, %v5997_v41  ;;  %vm1198_vm5 = vweird.f32 %v6034_v10  ;;  %vm1184_vm8 = vmor %vm1182_vm7, %vm1183_vm14  ;;  %v1204_v39 = vor.u32 1.1754944e-38, %v1203_v27 }
 0x2df   : > { %v4912_v19 = vpop.eup %4911  ;;  %v1179_v21 = vsub.f32 1.0, %v1178_v11  ;;  %v1121_v28 = vadd.f32 %v6010_v48, %v1120_v15  ;;  %v1156_v11 = vand.u32 2147483647, %v5984_v33  ;;  %v4476_v15 = vld [vmem:[%s7416_s24 + $0x40] sm:$0xff]  ;;  %v1163_v23 = vmul.f32 %v6042_v14, %v5993_v38 }
 0x2e0   : > { %v1223_v25 = vmul.f32 %v4912_v19, %v6007_v47  ;;  %v1136_v32 = vadd.f32 %v4902_v50, %v1135_v16  ;;  %v6075_v35 = vpop.eup %4913  ;;  %v1194_v37 = vsub.f32 1.0, %v1193_v18  ;;  %vm1228_vm10 = vweird.f32 %v4912_v19 }
 0x2e1   : > { %v1180_v36 = vmul.f32 %v4906_v5, %v1179_v21  ;;  %v1125_v44 = vsel %vm6066_vm3, %v6010_v48, %v1121_v28  ;;  %vm1229_vm11 = vmor %vm1227_vm12, %vm1228_vm10  ;;  %vm1152_vm12 = vweird.f32 %v5984_v33  ;;  %v6144_v18 = vsel %vm6070_vm4, 1.0, %v7347_v20 }
 0x2e2   : > { %v1224_v43 = vsub.f32 1.0, %v1223_v25  ;;  %v1140_v29 = vsel %vm1139_vm0, %v4902_v50, %v1136_v32  ;;  %v1130_v52 = vsel %vm6020_vm6, %v1129_v55, %v1125_v44  ;;  %v1195_v56 = vmul.f32 %v6034_v10, %v1194_v37  ;;  %7432 = vst [vmem:[#allocation42_spill] sm:$0xff] %v6144_v18 }
 0x2e3   : > { %v1181_v51 = vadd.f32 %v4906_v5, %v1180_v36  ;;  %v1145_v53 = vsel %vm6046_vm13, %v1144_v24, %v1140_v29  ;;  %v1131_v48 = vmul.f32 %v1130_v52, %v5922_v59  ;;  %vm1197_vm0 = vweird.f32 %v5997_v41 }
 0x2e4   : > { %v1225_v57 = vmul.f32 %v4912_v19, %v1224_v43  ;;  %v1146_v50 = vmul.f32 %v1145_v53, %v5924_v60  ;;  %v1196_v54 = vadd.f32 %v6034_v10, %v1195_v56  ;;  %vm1202_vm6 = vcmp.eq.f32.partialorder %v1201_v34, 8.507059e+37  ;;  %vm1199_vm7 = vmor %vm1197_vm0, %vm1198_vm5 }
 0x2e5   : > { %v1185_v3 = vsel %vm1184_vm8, %v4906_v5, %v1181_v51  ;;  %1249 = vst.msk [vmem:[#allocation2 + $0x9] sm:$0xff] %vm7383_vm1, %v1131_v48  ;;  %v1149_v59 = vsub.f32 1.0, %v1148_v49  ;;  %v1259_v5 = vadd.s32 8, %v6003_v45  ;;  %vm1157_vm14 = vcmp.eq.f32.partialorder %v1156_v11, 8.507059e+37 }
 0x2e6   : > { %v1190_v55 = vsel %vm6037_vm9, %v1189_v13, %v1185_v3  ;;  %v1226_v4 = vadd.f32 %v4912_v19, %v1225_v57  ;;  %1250 = vst.msk [vmem:[#allocation2 + $0x11] sm:$0xff] %vm7383_vm1, %v1146_v50  ;;  %v1200_v41 = vsel %vm1199_vm7, %v6034_v10, %v1196_v54  ;;  %vm1153_vm9 = vweird.f32 %v6026_v58  ;;  %v4477_v13 = vld [vmem:[%s7416_s24 + $0x48] sm:$0xff] }
 0x2e7   : > { %v1191_v60 = vmul.f32 %v1190_v55, %v5930_v63  ;;  %v1205_v7 = vsel %vm1202_vm6, %v1204_v39, %v1200_v41  ;;  %v1150_v8 = vmul.f32 %v6026_v58, %v1149_v59  ;;  %v1208_v10 = vmul.f32 %v6075_v35, %v6005_v46  ;;  %1802 = vmatpush.msra.mxu1 %v4477_v13  ;;  %vm1154_vm13 = vmor %vm1152_vm12, %vm1153_vm9 }
 0x2e8   : > { %v1230_v6 = vsel %vm1229_vm11, %v4912_v19, %v1226_v4  ;;  %v1206_v47 = vmul.f32 %v1205_v7, %v5932_v0  ;;  %v1277_v19 = vand.u32 7, %v1259_v5  ;;  %v1218_v33 = vand.u32 2147483648, %v6005_v46 }
 0x2e9   : > { %v1235_v63 = vsel %vm6057_vm2, %v1234_v22, %v1230_v6  ;;  %1253 = vst.msk [vmem:[#allocation2 + $0x29] sm:$0xff] %vm7383_vm1, %v1191_v60  ;;  %v1151_v0 = vadd.f32 %v6026_v58, %v1150_v8  ;;  %v1209_v21 = vsub.f32 1.0, %v1208_v10  ;;  %1803 = vmatpush.msra.mxu1 %v4476_v15  ;;  %vm1213_vm15 = vweird.f32 %v6075_v35 }
 0x2ea   : > { %v1236_v16 = vmul.f32 %v1235_v63, %v5936_v2  ;;  %1254 = vst.msk [vmem:[#allocation2 + $0x31] sm:$0xff] %vm7383_vm1, %v1206_v47  ;;  %v1159_v2 = vor.u32 1.1754944e-38, %v1158_v12  ;;  %vm6167_vm2 = vcmp.le.s32.totalorder %v1277_v19, 6  ;;  %vm1212_vm3 = vweird.f32 %v6005_v46  ;;  %v1410_v12 = vld [vmem:[#allocation2] sm:$0xff] }
 0x2eb   : > { %v1155_v22 = vsel %vm1154_vm13, %v6026_v58, %v1151_v0  ;;  %v1210_v30 = vmul.f32 %v6075_v35, %v1209_v21  ;;  %vm6177_vm4 = vcmp.ge.s32.totalorder %v1277_v19, 1  ;;  %vm1214_vm5 = vmor %vm1212_vm3, %vm1213_vm15  ;;  %v1260_v42 = vadd.s32 16, %v6003_v45 }
 0x2ec   : > { %1256 = vst.msk [vmem:[#allocation2 + $0x41] sm:$0xff] %vm7383_vm1, %v1236_v16  ;;  %v6154_v24 = vld [vmem:[#allocation2 + $0x9] sm:$0xff]  ;;  %v1160_v28 = vsel %vm1157_vm14, %v1159_v2, %v1155_v22  ;;  %v1164_v43 = vsub.f32 1.0, %v1163_v23  ;;  %vm1217_vm8 = vcmp.eq.f32.partialorder %v1216_v31, 8.507059e+37  ;;  %v1173_v44 = vand.u32 2147483648, %v5993_v38 }
 0x2ed   : > { %v1569_v25 = vld [vmem:[#allocation2 + $0x2] sm:$0xff]  ;;  %4441 = vmatmul.msk.f32.gmra.mxu1 %vm7383_vm1, %v6154_v24  ;;  %v1161_v34 = vmul.f32 %v1160_v28, %v5926_v61  ;;  %v1211_v37 = vadd.f32 %v6075_v35, %v1210_v30  ;;  %v1219_v61 = vor.u32 1.1754944e-38, %v1218_v33  ;;  %vm1168_vm10 = vweird.f32 %v6042_v14  ;;  %v6195_v53 = vld [vmem:[#allocation2 + $0xa] sm:$0xff] }
 0x2ee   : > { %v6156_v26 = vld [vmem:[#allocation2 + $0x8] sm:$0xff]  ;;  %v1577_v58 = vmul.f32 %v6137_v17, %v1569_v25  ;;  %v1165_v49 = vmul.f32 %v6042_v14, %v1164_v43  ;;  %v1171_v51 = vand.u32 2147483647, %v5993_v38  ;;  %v6193_v52 = vsel %vm6167_vm2, 1.0, %v7347_v20  ;;  %v6202_v56 = vld [vmem:[#allocation2 + $0x10] sm:$0xff]  ;;  %v4507_v25 = vld [vmem:[%s7416_s24 + $0x78] sm:$0xff] }
 0x2ef   : > { %v1669_v32 = vmul.f32 %v6144_v18, %v6156_v26  ;;  %1251 = vst.msk [vmem:[#allocation2 + $0x19] sm:$0xff] %vm7383_vm1, %v1161_v34  ;;  %v1215_v46 = vsel %vm1214_vm5, %v6075_v35, %v1211_v37  ;;  %v6200_v35 = vsel %vm6177_vm4, 1.0, %v7347_v20  ;;  %v1284_v48 = vand.u32 7, %v1260_v42  ;;  %v6207_v3 = vld [vmem:[#allocation2 + $0x11] sm:$0xff]  ;;  %v4497_v23 = vld [vmem:[%s7416_s24 + $0x68] sm:$0xff]  ;;  %2070 = vmatpush.msrb.mxu2 %v4507_v25 }
 0x2f0   : > { %v6173_v27 = vld [vmem:[#allocation2 + $0x29] sm:$0xff]  ;;  %4458 = vmatmul.msk.f32.vlgmr.msra.gmra.mxu0 %vm7383_vm1, %v1577_v58  ;;  %v1220_v29 = vsel %vm1217_vm8, %v1219_v61, %v1215_v46  ;;  %7437 = vst [vmem:[#allocation43_spill] sm:$0xff] %v6193_v52  ;;  %v1166_v50 = vadd.f32 %v6042_v14, %v1165_v49  ;;  %vm1167_vm0 = vweird.f32 %v5993_v38  ;;  %v1174_v54 = vor.u32 1.1754944e-38, %v1173_v44 }
 0x2f1   : > { %4468 = vmatmul.msk.f32.vlgmr.msra.gmra.mxu2 %vm7383_vm1, %v1669_v32  ;;  %4445 = vmatmul.msk.f32.vlgmr.msrb.gmra.mxu3 %vm7383_vm1, %v6173_v27  ;;  %7438 = vst [vmem:[#allocation44_spill] sm:$0xff] %v6200_v35  ;;  %v1221_v57 = vmul.f32 %v1220_v29, %v5934_v1  ;;  %vm1169_vm6 = vmor %vm1167_vm0, %vm1168_vm10  ;;  %v1578_v55 = vmul.f32 %v6193_v52, %v6195_v53  ;;  %vm1172_vm7 = vcmp.eq.f32.partialorder %v1171_v51, 8.507059e+37  ;;  %v6217_v38 = vld [vmem:[#allocation2 + $0x31] sm:$0xff]  ;;  %vm1388_vm11 = vcmp.le.s32.totalorder %v1284_v48, 6 }
 0x2f2   : > { %v1670_v1 = vmul.f32 %v6200_v35, %v6202_v56  ;;  %v1170_v4 = vsel %vm1169_vm6, %v6042_v14, %v1166_v50  ;;  %vm1364_vm9 = vcmp.ge.s32.totalorder %v1284_v48, 1  ;;  %v1261_v60 = vadd.s32 24, %v6003_v45  ;;  %1986 = vmatpush.msrb.mxu0 %v4497_v23  ;;  %v4506_v61 = vld [vmem:[%s7416_s24 + $0x70] sm:$0xff]  ;;  %v4487_v48 = vld [vmem:[%s7416_s24 + $0x58] sm:$0xff] }
 0x2f3   : > { %1255 = vst.msk [vmem:[#allocation2 + $0x39] sm:$0xff] %vm7383_vm1, %v1221_v57  ;;  %v1175_v39 = vsel %vm1172_vm7, %v1174_v54, %v1170_v4  ;;  %v6227_v14 = vsel %vm1388_vm11, 1.0, %v7347_v20  ;;  %v6232_v5 = vsel %vm1364_vm9, 1.0, %v7347_v20  ;;  %v1262_v47 = vadd.s32 32, %v6003_v45  ;;  %2071 = vmatpush.msrb.mxu2 %v4506_v61  ;;  %v6311_v42 = vld [vmem:[#allocation2 + $0x2a] sm:$0xff]  ;;  %1894 = vmatpush.msrb.mxu3 %v4487_v48 }
 0x2f4   : > { %v1176_v59 = vmul.f32 %v1175_v39, %v5928_v62  ;;  %7439 = vst [vmem:[#allocation45_spill] sm:$0xff] %v6227_v14  ;;  %v1291_v7 = vand.u32 7, %v1261_v60  ;;  %v1418_v2 = vmul.f32 %v6144_v18, %v1410_v12  ;;  %v1263_v33 = vadd.s32 40, %v6003_v45  ;;  %v6316_v46 = vld [vmem:[#allocation2 + $0x30] sm:$0xff]  ;;  %v4517_v60 = vld [vmem:[%s7416_s24 + $0x88] sm:$0xff] }
 0x2f5   : > { %4442 = vmatmul.msk.f32.gmra.mxu1 %vm7383_vm1, %v6207_v3  ;;  %7440 = vst [vmem:[#allocation46_spill] sm:$0xff] %v6232_v5  ;;  %v1298_v0 = vand.u32 7, %v1262_v47  ;;  %v1419_v37 = vmul.f32 %v6200_v35, %v6156_v26  ;;  %v1264_v40 = vadd.s32 48, %v6003_v45  ;;  %v1420_v51 = vmul.f32 %v6232_v5, %v6202_v56 }
 0x2f6   : > { %1252 = vst.msk [vmem:[#allocation2 + $0x21] sm:$0xff] %vm7383_vm1, %v1176_v59  ;;  %v6229_v41 = vld [vmem:[#allocation2 + $0x12] sm:$0xff]  ;;  %vm1389_vm12 = vcmp.le.s32.totalorder %v1291_v7, 6  ;;  %vm1365_vm13 = vcmp.ge.s32.totalorder %v1291_v7, 1  ;;  %v1305_v32 = vand.u32 7, %v1263_v33  ;;  %v1265_v57 = vadd.s32 56, %v6003_v45  ;;  %2162 = vmatpush.msrb.mxu1 %v4517_v60 }
 0x2f7   : > { %v6234_v6 = vld [vmem:[#allocation2 + $0x18] sm:$0xff]  ;;  %v1579_v62 = vmul.f32 %v6227_v14, %v6229_v41  ;;  %v6252_v10 = vsel %vm1389_vm12, 1.0, %v7347_v20  ;;  %v6257_v15 = vsel %vm1365_vm13, 1.0, %v7347_v20  ;;  %vm1390_vm14 = vcmp.le.s32.totalorder %v1298_v0, 6  ;;  %v4486_v7 = vld [vmem:[%s7416_s24 + $0x50] sm:$0xff] }
 0x2f8   : > { %4459 = vmatmul.msk.f32.gmra.mxu0 %vm7383_vm1, %v1578_v55  ;;  %v6236_v8 = vld [vmem:[#allocation2 + $0x19] sm:$0xff]  ;;  %v1671_v11 = vmul.f32 %v6232_v5, %v6234_v6  ;;  %7441 = vst [vmem:[#allocation47_spill] sm:$0xff] %v6252_v10  ;;  %vm1366_vm15 = vcmp.ge.s32.totalorder %v1298_v0, 1  ;;  %v6281_v28 = vsel %vm1390_vm14, 1.0, %v7347_v20  ;;  %vm1391_vm2 = vcmp.le.s32.totalorder %v1305_v32, 6  ;;  %1895 = vmatpush.msrb.mxu3 %v4486_v7 }
 0x2f9   : > { %4469 = vmatmul.msk.f32.gmra.mxu2 %vm7383_vm1, %v1670_v1  ;;  %4446 = vmatmul.msk.f32.gmra.mxu3 %vm7383_vm1, %v6217_v38  ;;  %7442 = vst [vmem:[#allocation48_spill] sm:$0xff] %v6257_v15  ;;  %v6286_v31 = vsel %vm1366_vm15, 1.0, %v7347_v20  ;;  %vm1367_vm3 = vcmp.ge.s32.totalorder %v1305_v32, 1  ;;  %v6309_v26 = vsel %vm1391_vm2, 1.0, %v7347_v20  ;;  %v1312_v44 = vand.u32 7, %v1264_v40 }
 0x2fa   : > { %v6244_v63 = vld [vmem:[#allocation2 + $0x39] sm:$0xff]  ;;  %7443 = vst [vmem:[#allocation49_spill] sm:$0xff] %v6281_v28  ;;  %v6314_v43 = vsel %vm1367_vm3, 1.0, %v7347_v20  ;;  %v1582_v29 = vmul.f32 %v6309_v26, %v6311_v42  ;;  %v1319_v4 = vand.u32 7, %v1265_v57  ;;  %v1421_v59 = vmul.f32 %v6257_v15, %v6234_v6 }
 0x2fb   : > { %7444 = vst [vmem:[#allocation50_spill] sm:$0xff] %v6286_v31  ;;  %v1674_v49 = vmul.f32 %v6314_v43, %v6316_v46  ;;  %vm1392_vm4 = vcmp.le.s32.totalorder %v1312_v44, 6  ;;  %vm1368_vm5 = vcmp.ge.s32.totalorder %v1312_v44, 1  ;;  %v6336_v54 = vld [vmem:[#allocation2 + $0x32] sm:$0xff]  ;;  %v1668_v12 = vld [vmem:[#allocation2 + $0x40] sm:$0xff]  ;;  %v1937_v33 = vmul.f32 %v6144_v18, %v6202_v56 }
 0x2fc   : > { %7445 = vst [vmem:[#allocation51_spill] sm:$0xff] %v6309_v26  ;;  %v6334_v50 = vsel %vm1392_vm4, 1.0, %v7347_v20  ;;  %v6339_v55 = vsel %vm1368_vm5, 1.0, %v7347_v20  ;;  %v1667_v1 = vld [vmem:[#allocation2 + $0x38] sm:$0xff]  ;;  %vm1393_vm8 = vcmp.le.s32.totalorder %v1319_v4, 6  ;;  %vm1369_vm10 = vcmp.ge.s32.totalorder %v1319_v4, 1 }
 0x2fd   : > { %4443 = vmatmul.msk.f32.gmra.mxu1 %vm7383_vm1, %v6236_v8  ;;  %v6254_v13 = vld [vmem:[#allocation2 + $0x1a] sm:$0xff]  ;;  %v6283_v30 = vld [vmem:[#allocation2 + $0x22] sm:$0xff]  ;;  %7446 = vst [vmem:[#allocation52_spill] sm:$0xff] %v6314_v43  ;;  %v1583_v45 = vmul.f32 %v6334_v50, %v6336_v54  ;;  %v1675_v39 = vmul.f32 %v6339_v55, %v1667_v1  ;;  %v6363_v47 = vsel %vm1369_vm10, 1.0, %v7347_v20  ;;  %v1938_v25 = vmul.f32 %v6200_v35, %v6234_v6 }
 0x2fe   : > { %v6259_v16 = vld [vmem:[#allocation2 + $0x20] sm:$0xff]  ;;  %v1580_v21 = vmul.f32 %v6252_v10, %v6254_v13  ;;  %v6288_v58 = vld [vmem:[#allocation2 + $0x28] sm:$0xff]  ;;  %v1581_v34 = vmul.f32 %v6281_v28, %v6283_v30  ;;  %7447 = vst [vmem:[#allocation53_spill] sm:$0xff] %v6334_v50  ;;  %v1424_v32 = vmul.f32 %v6339_v55, %v6316_v46  ;;  %v2116_v40 = vmul.f32 %v6252_v10, %v6311_v42 }
 0x2ff   : > { %v6261_v19 = vld [vmem:[#allocation2 + $0x21] sm:$0xff]  ;;  %v1672_v22 = vmul.f32 %v6257_v15, %v6259_v16  ;;  %v1673_v36 = vmul.f32 %v6286_v31, %v6288_v58  ;;  %7448 = vst [vmem:[#allocation54_spill] sm:$0xff] %v6339_v55  ;;  %v1423_v23 = vmul.f32 %v6314_v43, %v6288_v58  ;;  %v1939_v56 = vmul.f32 %v6232_v5, %v6259_v16 }
 0x300   : > { %4460 = vmatmul.msk.f32.gmra.mxu0 %vm7383_vm1, %v1579_v62  ;;  %v6358_v62 = vsel %vm1393_vm8, 1.0, %v7347_v20  ;;  %7450 = vst [vmem:[#allocation56_spill] sm:$0xff] %v6363_v47  ;;  %v1760_v6 = vld [vmem:[#allocation2 + $0x41] sm:$0xff]  ;;  %vm1247_vm0 = vcmask 123904   ;;  %vm7476_vm6 = vcmask 523264   ;;  %vm7384_vm7 = vcmask 261120  }
 0x301   : > { %4470 = vmatmul.msk.f32.gmra.mxu2 %vm7383_vm1, %v1671_v11  ;;  %4447 = vmatmul.msk.f32.gmra.mxu3 %vm7383_vm1, %v6244_v63  ;;  %7449 = vst [vmem:[#allocation55_spill] sm:$0xff] %v6358_v62  ;;  %v6360_v11 = vld [vmem:[#allocation2 + $0x3a] sm:$0xff]  ;;  %vm7478_vm11 = vmmov %vm7476_vm6 }
 0x302   : > { %v1584_v0 = vmul.f32 %v6358_v62, %v6360_v11  ;;  %1248 = vst.msk [vmem:[#allocation2 + $0x50] sm:$0x3] %vm1247_vm0, %v7347_v20  ;;  %v2118_v48 = vmul.f32 %v6309_v26, %v6360_v11 }
 0x305   : > { %4444 = vmatmul.msk.f32.gmra.mxu1 %vm7383_vm1, %v6261_v19 }
 0x308   : > { %4461 = vmatmul.msk.f32.gmra.mxu0 %vm7383_vm1, %v1580_v21  ;;  %v1422_v21 = vmul.f32 %v6286_v31, %v6259_v16  ;;  %v2113_v16 = vmul.f32 %v6137_v17, %v6229_v41 }
 0x309   : > { %4471 = vmatmul.msk.f32.gmra.mxu2 %vm7383_vm1, %v1672_v22  ;;  %4448 = vmatmul.msk.f32.vlgmr.msra.gmra.mxu3 %vm7383_vm1, %v1418_v2  ;;  %v1676_v2 = vmul.f32 %v6363_v47, %v1668_v12  ;;  %v4516_v22 = vld [vmem:[%s7416_s24 + $0x80] sm:$0xff]  ;;  %v2028_v44 = vld [vmem:[#allocation2 + $0x49] sm:$0xff] }
 0x30a   : > { %2163 = vmatpush.msrb.mxu1 %v4516_v22 }
 0x30d   : > { %4478 = vmatmul.msk.f32.vlgmr.msra.gmra.mxu1 %vm7383_vm1, %v6154_v24  ;;  %v4496_v24 = vld [vmem:[%s7416_s24 + $0x60] sm:$0xff] }
 0x30e   : > { %1987 = vmatpush.msrb.mxu0 %v4496_v24 }
 0x310   : > { %4462 = vmatmul.msk.f32.gmra.mxu0 %vm7383_vm1, %v1581_v34  ;;  %v1845_v34 = vmul.f32 %v6137_v17, %v6195_v53  ;;  %v1942_v53 = vmul.f32 %v6314_v43, %v1667_v1 }
 0x311   : > { %4472 = vmatmul.msk.f32.gmra.mxu2 %vm7383_vm1, %v1673_v36  ;;  %4449 = vmatmul.msk.f32.gmra.mxu3 %vm7383_vm1, %v1419_v37  ;;  %v1847_v36 = vmul.f32 %v6227_v14, %v6254_v13  ;;  %v1848_v37 = vmul.f32 %v6252_v10, %v6283_v30 }
 0x315   : > { %4479 = vmatmul.msk.f32.gmra.mxu1 %vm7383_vm1, %v6207_v3 }
 0x318   : > { %4463 = vmatmul.msk.f32.gmra.mxu0 %vm7383_vm1, %v1582_v29  ;;  %v1850_v29 = vmul.f32 %v6309_v26, %v6336_v54 }
 0x319   : > { %4473 = vmatmul.msk.f32.gmra.mxu2 %vm7383_vm1, %v1674_v49  ;;  %4450 = vmatmul.msk.f32.gmra.mxu3 %vm7383_vm1, %v1420_v51 }
 0x31d   : > { %4480 = vmatmul.msk.f32.gmra.mxu1 %vm7383_vm1, %v6236_v8 }
 0x320   : > { %4464 = vmatmul.msk.f32.gmra.mxu0 %vm7383_vm1, %v1583_v45 }
 0x321   : > { %4474 = vmatmul.msk.f32.gmra.mxu2 %vm7383_vm1, %v1675_v39  ;;  %4451 = vmatmul.msk.f32.gmra.mxu3 %vm7383_vm1, %v1421_v59 }
 0x325   : > { %4481 = vmatmul.msk.f32.gmra.mxu1 %vm7383_vm1, %v6261_v19 }
 0x328   : > { %4465 = vmatmul.msk.f32.gmra.mxu0 %vm7383_vm1, %v1584_v0 }
 0x329   : > { %4475 = vmatmul.msk.f32.gmra.mxu2 %vm7383_vm1, %v1676_v2  ;;  %4452 = vmatmul.msk.f32.gmra.mxu3 %vm7383_vm1, %v1422_v21 }
 0x32d   : > { %4482 = vmatmul.msk.f32.gmra.mxu1 %vm7383_vm1, %v6173_v27 }
 0x330   : > { %4498 = vmatmul.msk.f32.vlgmr.msrb.gmra.mxu0 %vm7383_vm1, %v1937_v33 }
 0x331   : > { %4508 = vmatmul.msk.f32.vlgmr.msrb.gmra.mxu2 %vm7383_vm1, %v6207_v3  ;;  %4453 = vmatmul.msk.f32.gmra.mxu3 %vm7383_vm1, %v1423_v23  ;;  %v1425_v3 = vmul.f32 %v6363_v47, %v1667_v1  ;;  %v1851_v1 = vmul.f32 %v6334_v50, %v6360_v11 }
 0x335   : > { %4483 = vmatmul.msk.f32.gmra.mxu1 %vm7383_vm1, %v6217_v38 }
 0x338   : > { %4499 = vmatmul.msk.f32.gmra.mxu0 %vm7383_vm1, %v1938_v25 }
 0x339   : > { %4509 = vmatmul.msk.f32.gmra.mxu2 %vm7383_vm1, %v6236_v8  ;;  %4454 = vmatmul.msk.f32.gmra.mxu3 %vm7383_vm1, %v1424_v32  ;;  %v1940_v8 = vmul.f32 %v6257_v15, %v6288_v58  ;;  %v1846_v58 = vmul.f32 %v6193_v52, %v6229_v41  ;;  %v1943_v41 = vmul.f32 %v6339_v55, %v1668_v12  ;;  %v2112_v12 = vld [vmem:[#allocation2 + $0x4a] sm:$0xff] }
 0x33a   : > { %v2120_v11 = vmul.f32 %v6358_v62, %v2112_v12 }
 0x33d   : > { %4484 = vmatmul.msk.f32.gmra.mxu1 %vm7383_vm1, %v6244_v63 }
 0x340   : > { %4500 = vmatmul.msk.f32.gmra.mxu0 %vm7383_vm1, %v1939_v56 }
 0x341   : > { %4510 = vmatmul.msk.f32.gmra.mxu2 %vm7383_vm1, %v6261_v19  ;;  %4455 = vmatmul.msk.f32.gmra.mxu3 %vm7383_vm1, %v1425_v3  ;;  %v1941_v19 = vmul.f32 %v6286_v31, %v6316_v46  ;;  %v2117_v46 = vmul.f32 %v6281_v28, %v6336_v54  ;;  %v1844_v54 = vld [vmem:[#allocation2 + $0x42] sm:$0xff] }
 0x342   : > { %v2119_v60 = vmul.f32 %v6334_v50, %v1844_v54  ;;  %v1852_v7 = vmul.f32 %v6358_v62, %v1844_v54 }
 0x345   : > { %4485 = vmatmul.msk.f32.gmra.mxu1 %vm7383_vm1, %v1760_v6 }
 0x348   : > { %4501 = vmatmul.msk.f32.gmra.mxu0 %vm7383_vm1, %v1940_v8 }
 0x349   : > { %4511 = vmatmul.msk.f32.gmra.mxu2 %vm7383_vm1, %v6173_v27  ;;  %4488 = vmatmul.msk.f32.vlgmr.msrb.gmra.mxu3 %vm7383_vm1, %v1845_v34  ;;  %v2114_v27 = vmul.f32 %v6193_v52, %v6254_v13  ;;  %v6446_v13 = vpop.f32.mrf.mxu1 }
 0x34d   : > { %4518 = vmatmul.msk.f32.vlgmr.msrb.gmra.mxu1 %vm7383_vm1, %v2113_v16 }
 0x350   : > { %4502 = vmatmul.msk.f32.gmra.mxu0 %vm7383_vm1, %v1941_v19 }
 0x351   : > { %4512 = vmatmul.msk.f32.gmra.mxu2 %vm7383_vm1, %v6217_v38  ;;  %4489 = vmatmul.msk.f32.gmra.mxu3 %vm7383_vm1, %v1846_v58  ;;  %v2115_v38 = vmul.f32 %v6227_v14, %v6283_v30  ;;  %v1849_v30 = vmul.f32 %v6281_v28, %v6311_v42 }
 0x355   : > { %4519 = vmatmul.msk.f32.gmra.mxu1 %vm7383_vm1, %v2114_v27 }
 0x358   : > { %4503 = vmatmul.msk.f32.gmra.mxu0 %vm7383_vm1, %v1942_v53 }
 0x359   : > { %4513 = vmatmul.msk.f32.gmra.mxu2 %vm7383_vm1, %v6244_v63  ;;  %4490 = vmatmul.msk.f32.gmra.mxu3 %vm7383_vm1, %v1847_v36  ;;  %v1936_v63 = vld [vmem:[#allocation2 + $0x48] sm:$0xff] }
 0x35a   : > { %v1944_v24 = vmul.f32 %v6363_v47, %v1936_v63 }
 0x35d   : > { %4520 = vmatmul.msk.f32.gmra.mxu1 %vm7383_vm1, %v2115_v38 }
 0x360   : > { %4504 = vmatmul.msk.f32.gmra.mxu0 %vm7383_vm1, %v1943_v41 }
 0x361   : > { %4514 = vmatmul.msk.f32.gmra.mxu2 %vm7383_vm1, %v1760_v6  ;;  %4491 = vmatmul.msk.f32.gmra.mxu3 %vm7383_vm1, %v1848_v37 }
 0x365   : > { %4521 = vmatmul.msk.f32.gmra.mxu1 %vm7383_vm1, %v2116_v40 }
 0x368   : > { %4505 = vmatmul.msk.f32.gmra.mxu0 %vm7383_vm1, %v1944_v24 }
 0x369   : > { %4492 = vmatmul.msk.f32.gmra.mxu3 %vm7383_vm1, %v1849_v30  ;;  %4515 = vmatmul.msk.f32.gmra.mxu2 %vm7383_vm1, %v2028_v44 }
 0x36a   : > { %v6457_v61 = vpop.f32.mrf.mxu1 }
 0x36d   : > { %4522 = vmatmul.msk.f32.gmra.mxu1 %vm7383_vm1, %v2117_v46  ;;  %v6465_v49 = vpop.f32.mrf.mxu0 }
 0x371   : > { %4493 = vmatmul.msk.f32.gmra.mxu3 %vm7383_vm1, %v1850_v29 }
 0x372   : > { %v6468_v42 = vpop.f32.mrf.mxu1 }
 0x374   : > { %v6470_v51 = vpop.f32.mrf.mxu2  ;;  %v6472_v57 = vpop.f32.mrf.mxu3 }
 0x375   : > { %4523 = vmatmul.msk.f32.gmra.mxu1 %vm7383_vm1, %v2118_v48  ;;  %v6480_v4 = vpop.f32.mrf.mxu0 }
 0x379   : > { %4494 = vmatmul.msk.f32.gmra.mxu3 %vm7383_vm1, %v1851_v1 }
 0x37a   : > { %v6482_v45 = vpop.f32.mrf.mxu1 }
 0x37c   : > { %v1498_v39 = vpop.f32.mrf.mxu3  ;;  %v6484_v59 = vpop.f32.mrf.mxu2 }
 0x37d   : > { %4524 = vmatmul.msk.f32.gmra.mxu1 %vm7383_vm1, %v2119_v60  ;;  %v6491_v2 = vpop.f32.mrf.mxu0 }
 0x381   : > { %4495 = vmatmul.msk.f32.gmra.mxu3 %vm7383_vm1, %v1852_v7 }
 0x382   : > { %v1492_v0 = vpop.f32.mrf.mxu1 }
 0x384   : > { %v1501_v21 = vpop.f32.mrf.mxu3  ;;  %v6493_v22 = vpop.f32.mrf.mxu2 }
 0x385   : > { %4525 = vmatmul.msk.f32.gmra.mxu1 %vm7383_vm1, %v2120_v11  ;;  %v1638_v25 = vpop.f32.mrf.mxu0 }
 0x38a   : > { %v6496_v33 = vpop.f32.mrf.mxu1 }
 0x38c   : > { %v6498_v23 = vpop.f32.mrf.mxu3  ;;  %v6500_v32 = vpop.f32.mrf.mxu2 }
 0x38d   : > { %v1641_v6 = vpop.f32.mrf.mxu0 }
 0x392   : > { %v6502_v56 = vpop.f32.mrf.mxu1 }
 0x394   : > { %v1548_v3 = vpop.f32.mrf.mxu3  ;;  %v1733_v8 = vpop.f32.mrf.mxu2 }
 0x395   : > { %v1644_v19 = vpop.f32.mrf.mxu0 }
 0x39a   : > { %v6504_v34 = vpop.f32.mrf.mxu1 }
 0x39c   : > { %v1551_v16 = vpop.f32.mrf.mxu3  ;;  %v1736_v27 = vpop.f32.mrf.mxu2 }
 0x39d   : > { %v1647_v38 = vpop.f32.mrf.mxu0 }
 0x3a2   : > { %v6506_v58 = vpop.f32.mrf.mxu1 }
 0x3a4   : > { %v1554_v53 = vpop.f32.mrf.mxu3  ;;  %v1739_v37 = vpop.f32.mrf.mxu2 }
 0x3a5   : > { %v1650_v24 = vpop.f32.mrf.mxu0 }
 0x3aa   : > { %v6508_v36 = vpop.f32.mrf.mxu1 }
 0x3ac   : > { %v1557_v41 = vpop.f32.mrf.mxu3  ;;  %v1742_v30 = vpop.f32.mrf.mxu2 }
 0x3ad   : > { %v6510_v29 = vpop.f32.mrf.mxu0 }
 0x3ae   : > { %7451 = vst [vmem:[#allocation57_spill] sm:$0xff] %v6510_v29  ;;  %v1552_v29 = vadd.f32 %v1551_v16, %v6468_v42  ;;  %v6554_v42 = vld [vmem:[#allocation6 + $0x18] sm:$0xff] }
 0x3af   : > { %2311 = vmatpush.msra.mxu2 %v6554_v42 }
 0x3b2   : > { %v1820_v63 = vpop.f32.mrf.mxu1 }
 0x3b4   : > { %v1560_v40 = vpop.f32.mrf.mxu3  ;;  %v6512_v48 = vpop.f32.mrf.mxu2 }
 0x3b5   : > { %7452 = vst [vmem:[#allocation58_spill] sm:$0xff] %v6512_v48  ;;  %v6514_v60 = vpop.f32.mrf.mxu0  ;;  %v1561_v35 = vadd.f32 %v1560_v40, %v6472_v57  ;;  %v1546_v57 = vadd.f32 %v6498_v23, %v6446_v13  ;;  %v6559_v23 = vld [vmem:[#allocation6 + $0x10] sm:$0xff] }
 0x3b6   : > { %7453 = vst [vmem:[#allocation59_spill] sm:$0xff] %v6514_v60  ;;  %2312 = vmatpush.msra.mxu2 %v6559_v23 }
 0x3ba   : > { %v1823_v46 = vpop.f32.mrf.mxu1 }
 0x3bc   : > { %v1563_v44 = vpop.f32.mrf.mxu3  ;;  %v6518_v12 = vpop.f32.mrf.mxu2 }
 0x3bd   : > { %7455 = vst [vmem:[#allocation61_spill] sm:$0xff] %v6518_v12  ;;  %v6524_v9 = vpop.f32.mrf.mxu0  ;;  %v1564_v5 = vadd.f32 %v1563_v44, %v1498_v39  ;;  %v1555_v12 = vadd.f32 %v1554_v53, %v6482_v45 }
 0x3bf   : > { %v1656_v39 = vadd.f32 %v1638_v25, %v1555_v12  ;;  %v2210_v25 = vld [vmem:[#allocation6 + $0x8] sm:$0xff] }
 0x3c0   : > { %2313 = vmatpush.msra.mxu2 %v2210_v25 }
 0x3c2   : > { %v1826_v1 = vpop.f32.mrf.mxu1 }
 0x3c4   : > { %v1566_v54 = vpop.f32.mrf.mxu3  ;;  %v6528_v50 = vpop.f32.mrf.mxu2 }
 0x3c5   : > { %7457 = vst [vmem:[#allocation63_spill] sm:$0xff] %v6528_v50  ;;  %v6534_v55 = vpop.f32.mrf.mxu0  ;;  %v1567_v50 = vadd.f32 %v1566_v54, %v1501_v21  ;;  %v7464_v54 = vld [vmem:[#allocation59_spill] sm:$0xff] }
 0x3ca   : > { %v6516_v7 = vpop.f32.mrf.mxu1 }
 0x3cb   : > { %7454 = vst [vmem:[#allocation60_spill] sm:$0xff] %v6516_v7 }
 0x3cc   : > { %v6520_v11 = vpop.f32.mrf.mxu3  ;;  %v6536_v28 = vpop.f32.mrf.mxu2 }
 0x3cd   : > { %7459 = vst [vmem:[#allocation65_spill] sm:$0xff] %v6536_v28  ;;  %v2001_v31 = vpop.f32.mrf.mxu0 }
 0x3d2   : > { %v6522_v20 = vpop.f32.mrf.mxu1 }
 0x3d3   : > { %7456 = vst [vmem:[#allocation62_spill] sm:$0xff] %v6522_v20  ;;  %v1558_v20 = vadd.f32 %v1557_v41, %v1492_v0 }
 0x3d4   : > { %v6526_v62 = vpop.f32.mrf.mxu3  ;;  %v6540_v14 = vpop.f32.mrf.mxu2 }
 0x3d5   : > { %7461 = vst [vmem:[#allocation67_spill] sm:$0xff] %v6540_v14  ;;  %v2004_v17 = vpop.f32.mrf.mxu0  ;;  %v1657_v28 = vadd.f32 %v1641_v6, %v1558_v20  ;;  %v1660_v14 = vadd.f32 %v1650_v24, %v1567_v50  ;;  %v1748_v20 = vadd.f32 %v6500_v32, %v1656_v39  ;;  %v1653_v50 = vadd.f32 %v6465_v49, %v1546_v57  ;;  %v7466_v39 = vld [vmem:[#allocation57_spill] sm:$0xff] }
 0x3d7   : > { %v1749_v41 = vadd.f32 %v1733_v8, %v1657_v28  ;;  %v1745_v49 = vadd.f32 %v6470_v51, %v1653_v50 }
 0x3d9   : > { %v1829_v40 = vadd.f32 %v6496_v33, %v1745_v49 }
 0x3da   : > { %v6530_v47 = vpop.f32.mrf.mxu1 }
 0x3db   : > { %7458 = vst [vmem:[#allocation64_spill] sm:$0xff] %v6530_v47  ;;  %v1659_v47 = vadd.f32 %v1647_v38, %v1564_v5  ;;  %v1655_v38 = vadd.f32 %v6491_v2, %v1552_v29  ;;  %v1833_v2 = vadd.f32 %v6508_v36, %v1749_v41 }
 0x3dc   : > { %v6532_v26 = vpop.f32.mrf.mxu3  ;;  %v2088_v18 = vpop.f32.mrf.mxu2  ;;  %v7463_v29 = vld [vmem:[#allocation67_spill] sm:$0xff] }
 0x3dd   : > { %v1751_v60 = vadd.f32 %v1739_v37, %v1659_v47  ;;  %v2007_v0 = vpop.f32.mrf.mxu0  ;;  %v1747_v28 = vadd.f32 %v6493_v22, %v1655_v38 }
 0x3df   : > { %v1835_v45 = vadd.f32 %v1823_v46, %v1751_v60  ;;  %v1831_v16 = vadd.f32 %v6504_v34, %v1747_v28  ;;  %v4872_v46 = vld [vmem:[%s5859_s6] ss:$0 sm:$0xff]  ;;  %s7664_s6 = sld [smem:[#allocation81_spill]] }
 0x3e1   : > { %v1923_v37 = vadd.f32 %v6532_v26, %v1831_v16 }
 0x3e2   : > { %v6538_v43 = vpop.f32.mrf.mxu1 }
 0x3e3   : > { %7460 = vst [vmem:[#allocation66_spill] sm:$0xff] %v6538_v43  ;;  %v1658_v43 = vadd.f32 %v1644_v19, %v1561_v35 }
 0x3e4   : > { %v1906_v10 = vpop.f32.mrf.mxu3  ;;  %v2091_v21 = vpop.f32.mrf.mxu2 }
 0x3e5   : > { %v1750_v44 = vadd.f32 %v1736_v27, %v1658_v43  ;;  %v2010_v36 = vpop.f32.mrf.mxu0 }
 0x3e7   : > { %v1834_v47 = vadd.f32 %v1820_v63, %v1750_v44 }
 0x3ea   : > { %v6542_v52 = vpop.f32.mrf.mxu1  ;;  %v7470_v38 = vld [vmem:[#allocation66_spill] sm:$0xff] }
 0x3eb   : > { %7462 = vst [vmem:[#allocation68_spill] sm:$0xff] %v6542_v52  ;;  %v1549_v52 = vadd.f32 %v1548_v3, %v6457_v61  ;;  %v1752_v61 = vadd.f32 %v1742_v30, %v1660_v14  ;;  %v1832_v14 = vadd.f32 %v6506_v58, %v1748_v20  ;;  %v1921_v30 = vadd.f32 %v6520_v11, %v1829_v40  ;;  %v7472_v20 = vld [vmem:[#allocation64_spill] sm:$0xff] }
 0x3ec   : > { %v1909_v15 = vpop.f32.mrf.mxu3 }
 0x3ed   : > { %v1654_v35 = vadd.f32 %v6480_v4, %v1549_v52  ;;  %v1836_v32 = vadd.f32 %v1826_v1, %v1752_v61  ;;  %v1925_v3 = vadd.f32 %v1909_v15, %v1833_v2  ;;  %v1924_v22 = vadd.f32 %v1906_v10, %v1832_v14  ;;  %v7473_v61 = vld [vmem:[#allocation62_spill] sm:$0xff] }
 0x3ee   : > { %v7475_v14 = vmov 1.0  }
 0x3ef   : > { %v1746_v4 = vadd.f32 %v6484_v59, %v1654_v35  ;;  %v2094_v59 = vpop.f32.mrf.mxu2  ;;  %v2017_v58 = vadd.f32 %v2001_v31, %v1925_v3  ;;  %v2016_v34 = vadd.f32 %v6534_v55, %v1924_v22  ;;  %v2013_v55 = vadd.f32 %v7466_v39, %v1921_v30  ;;  %v7471_v35 = vld [vmem:[#allocation58_spill] sm:$0xff] }
 0x3f0   : > { %v7477_v3 = vmov 0.0  }
 0x3f1   : > { %v1830_v53 = vadd.f32 %v6502_v56, %v1746_v4  ;;  %v2015_v56 = vadd.f32 %v6524_v9, %v1923_v37  ;;  %v2101_v1 = vadd.f32 %v7463_v29, %v2017_v58  ;;  %v7469_v9 = vld [vmem:[#allocation61_spill] sm:$0xff]  ;;  %2512 = vst.msk [vmem:[#allocation3] sm:$0xff] %vm7384_vm7, %v7477_v3 }
 0x3f2   : > { %v6545_v48 = vpop.f32.mrf.mxu1  ;;  %v7468_v57 = vld [vmem:[#allocation68_spill] sm:$0xff]  ;;  %2513 = vst.msk [vmem:[#allocation3 + $0x8] sm:$0xff] %vm7384_vm7, %v7477_v3 }
 0x3f3   : > { %v1922_v51 = vadd.f32 %v6526_v62, %v1830_v53  ;;  %v2193_v11 = vadd.f32 %v7468_v57, %v2101_v1  ;;  %2514 = vst.msk [vmem:[#allocation3 + $0x10] sm:$0xff] %vm7384_vm7, %v7477_v3 }
 0x3f4   : > { %v1912_v7 = vpop.f32.mrf.mxu3  ;;  %2515 = vst.msk [vmem:[#allocation3 + $0x18] sm:$0xff] %vm7384_vm7, %v7477_v3 }
 0x3f5   : > { %v1926_v52 = vadd.f32 %v1912_v7, %v1834_v47  ;;  %v2014_v60 = vadd.f32 %v7464_v54, %v1922_v51  ;;  %v7465_v7 = vld [vmem:[#allocation65_spill] sm:$0xff]  ;;  %2516 = vst.msk [vmem:[#allocation3 + $0x20] sm:$0xff] %vm7384_vm7, %v7477_v3 }
 0x3f6   : > { %v2100_v33 = vadd.f32 %v7465_v7, %v2016_v34  ;;  %2517 = vst.msk [vmem:[#allocation3 + $0x28] sm:$0xff] %vm7384_vm7, %v7477_v3  ;;  %v4873_v54 = vld [vmem:[#allocation11] ss:$0 sm:$0xff] }
 0x3f7   : > { %v2018_v19 = vadd.f32 %v2004_v17, %v1926_v52  ;;  %2518 = vst.msk [vmem:[#allocation3 + $0x30] sm:$0xff] %vm7384_vm7, %v7477_v3 }
 0x3f8   : > { %v2192_v41 = vadd.f32 %v7470_v38, %v2100_v33  ;;  %2519 = vst.msk [vmem:[#allocation3 + $0x38] sm:$0xff] %vm7384_vm7, %v7477_v3 }
 0x3f9   : > { %v2102_v10 = vadd.f32 %v2088_v18, %v2018_v19  ;;  %v7467_v18 = vld [vmem:[#allocation63_spill] sm:$0xff]  ;;  %2520 = vst.msk [vmem:[#allocation3 + $0x40] sm:$0xff] %vm7384_vm7, %v7477_v3 }
 0x3fa   : > { %v2183_v13 = vpop.f32.mrf.mxu1  ;;  %v2099_v44 = vadd.f32 %v7467_v18, %v2015_v56  ;;  %v2204_v50 = vadd.f32 %v4872_v46, %v2192_v41  ;;  %2521 = vst.msk [vmem:[#allocation3 + $0x48] sm:$0xff] %vm7384_vm7, %v7477_v3 }
 0x3fb   : > { %v2194_v12 = vadd.f32 %v6545_v48, %v2102_v10  ;;  %v2205_v48 = vadd.f32 %v4872_v46, %v2193_v11 }
 0x3fc   : > { %v1915_v5 = vpop.f32.mrf.mxu3  ;;  %v2191_v47 = vadd.f32 %v7472_v20, %v2099_v44 }
 0x3fd   : > { %v1927_v43 = vadd.f32 %v1915_v5, %v1835_v45  ;;  %v2098_v5 = vadd.f32 %v7469_v9, %v2014_v60  ;;  %v2206_v45 = vadd.f32 %v4872_v46, %v2194_v12 }
 0x3fe   : > { %v2203_v2 = vadd.f32 %v4872_v46, %v2191_v47 }
 0x3ff   : > { %v2019_v6 = vadd.f32 %v2007_v0, %v1927_v43  ;;  %v2190_v43 = vadd.f32 %v7473_v61, %v2098_v5 }
 0x401   : > { %v2103_v63 = vadd.f32 %v2091_v21, %v2019_v6  ;;  %v2097_v21 = vadd.f32 %v7471_v35, %v2013_v55  ;;  %v2202_v52 = vadd.f32 %v4872_v46, %v2190_v43 }
 0x402   : > { %v2186_v24 = vpop.f32.mrf.mxu1 }
 0x403   : > { %v2195_v26 = vadd.f32 %v2183_v13, %v2103_v63  ;;  %v7474_v13 = vld [vmem:[#allocation60_spill] sm:$0xff] }
 0x404   : > { %v1918_v8 = vpop.f32.mrf.mxu3  ;;  %v2189_v28 = vadd.f32 %v7474_v13, %v2097_v21 }
 0x405   : > { %v1928_v27 = vadd.f32 %v1918_v8, %v1836_v32  ;;  %v2207_v0 = vadd.f32 %v4872_v46, %v2195_v26  ;;  %v2209_v32 = vld [vmem:[#allocation6] sm:$0xff] }
 0x406   : > { %v2201_v4 = vadd.f32 %v4872_v46, %v2189_v28  ;;  %2314 = vmatpush.msra.mxu2 %v2209_v32 }
 0x407   : > { %v2020_v15 = vadd.f32 %v2010_v36, %v1928_v27 }
 0x409   : > { %v2104_v17 = vadd.f32 %v2094_v59, %v2020_v15 }
 0x40b   : > { %v2196_v31 = vadd.f32 %v2186_v24, %v2104_v17 }
 0x40d   : > { %v2208_v62 = vadd.f32 %v4872_v46, %v2196_v31 }
 0x40f   : > { %2223 = vmatpush.msra.mxu3 %v2208_v62 }
 0x411   : > { %2224 = vmatpush.msra.mxu3 %v2207_v0 }
 0x413   : > { %2225 = vmatpush.msra.mxu3 %v2206_v45 }
 0x415   : > { %2226 = vmatpush.msra.mxu3 %v2205_v48 }
 0x417   : > { %2227 = vmatpush.msra.mxu3 %v2204_v50 }
 0x419   : > { %2228 = vmatpush.msra.mxu3 %v2203_v2 }
 0x41b   : > { %2229 = vmatpush.msra.mxu3 %v2202_v52 }
 0x41d   : > { %2230 = vmatpush.msra.mxu3 %v2201_v4 }
 0x41e   : > { %4526 = vmatmul.msk.f32.vlgmr.msra.gmra.mxu3 %vm7476_vm6, %v7475_v14 }
 0x41f   : > { %2251 = vmatpush.msrb.mxu3 %v6554_v42 }
 0x421   : > { %2252 = vmatpush.msrb.mxu3 %v6559_v23 }
 0x423   : > { %2253 = vmatpush.msrb.mxu3 %v2210_v25 }
 0x425   : > { %2254 = vmatpush.msrb.mxu3 %v2209_v32 }
 0x4a1   : > { %v2232_v42 = vpop.f32.mrf.mxu3 }
 0x4a2   : > { %4527 = vmatmul.msk.f32.vlgmr.msrb.gmra.mxu3 %vm7384_vm7, %v2232_v42 }
 0x525   : > { %v2256_v23 = vpop.f32.mrf.mxu3 }
 0x526   : > { %v2259_v25 = vperm.slane %v2256_v23, 0 }
 0x528   : > { %v2267_v6 = vsub.f32 %v2208_v62, %v2259_v25  ;;  %v2266_v49 = vsub.f32 %v2207_v0, %v2259_v25  ;;  %v2265_v16 = vsub.f32 %v2206_v45, %v2259_v25  ;;  %v2264_v19 = vsub.f32 %v2205_v48, %v2259_v25  ;;  %v4874_v62 = vld [vmem:[#allocation12] ss:$0 sm:$0xff] }
 0x529   : > { %v2263_v53 = vsub.f32 %v2204_v50, %v2259_v25  ;;  %v2262_v59 = vsub.f32 %v2203_v2, %v2259_v25  ;;  %v2261_v58 = vsub.f32 %v2202_v52, %v2259_v25  ;;  %v2260_v15 = vsub.f32 %v2201_v4, %v2259_v25 }
 0x52a   : > { %v2275_v8 = vmul.f32 %v2267_v6, %v2267_v6  ;;  %v2274_v22 = vmul.f32 %v2266_v49, %v2266_v49  ;;  %v2273_v27 = vmul.f32 %v2265_v16, %v2265_v16  ;;  %v2272_v36 = vmul.f32 %v2264_v19, %v2264_v19 }
 0x52b   : > { %v2271_v37 = vmul.f32 %v2263_v53, %v2263_v53  ;;  %v2270_v63 = vmul.f32 %v2262_v59, %v2262_v59  ;;  %v2269_v40 = vmul.f32 %v2261_v58, %v2261_v58  ;;  %v2268_v24 = vmul.f32 %v2260_v15, %v2260_v15 }
 0x52c   : > { %2284 = vmatpush.msra.mxu0 %v2275_v8 }
 0x52e   : > { %2285 = vmatpush.msra.mxu0 %v2274_v22 }
 0x530   : > { %2286 = vmatpush.msra.mxu0 %v2273_v27 }
 0x532   : > { %2287 = vmatpush.msra.mxu0 %v2272_v36 }
 0x534   : > { %2288 = vmatpush.msra.mxu0 %v2271_v37 }
 0x536   : > { %2289 = vmatpush.msra.mxu0 %v2270_v63 }
 0x538   : > { %2290 = vmatpush.msra.mxu0 %v2269_v40 }
 0x53a   : > { %2291 = vmatpush.msra.mxu0 %v2268_v24 }
 0x53b   : > { %4528 = vmatmul.msk.f32.vlgmr.msra.gmra.mxu0 %vm7478_vm11, %v7475_v14 }
 0x5b8   : > { %v2293_v51 = vpop.f32.mrf.mxu0 }
 0x5b9   : > { %4529 = vmatmul.msk.f32.vlgmr.msra.gmra.mxu2 %vm7384_vm7, %v2293_v51 }
 0x63c   : > { %v2316_v34 = vpop.f32.mrf.mxu2 }
 0x63d   : > { %v2317_v10 = vadd.f32 1e-05, %v2316_v34 }
 0x63f   : > { %4915 = vrsqrt.f32 %v2317_v10  ;;  %vm2325_vm12 = vweird.f32 %v2317_v10 }
 0x645   : > { %v4916_v17 = vpop.eup %4915 }
 0x646   : > { %v2320_v30 = vmul.f32 %v4916_v17, %v2317_v10  ;;  %vm2326_vm9 = vweird.f32 %v4916_v17 }
 0x647   : > { %vm2327_vm13 = vmor %vm2325_vm12, %vm2326_vm9 }
 0x648   : > { %v2321_v46 = vmul.f32 %v4916_v17, %v2320_v30  ;;  %v2564_v30 = vld [vmem:[#allocation14 + $0x38] sm:$0xff] }
 0x649   : > { %2601 = vmatpush.msra.mxu3 %v2564_v30 }
 0x64a   : > { %v2322_v56 = vmul.f32 0.5, %v2321_v46 }
 0x64c   : > { %v2323_v29 = vsub.f32 1.5, %v2322_v56 }
 0x64e   : > { %v2324_v1 = vmul.f32 %v4916_v17, %v2323_v29  ;;  %v2563_v29 = vld [vmem:[#allocation14 + $0x30] sm:$0xff] }
 0x64f   : > { %2602 = vmatpush.msra.mxu3 %v2563_v29 }
 0x650   : > { %v2328_v26 = vsel %vm2327_vm13, %v4916_v17, %v2324_v1  ;;  %v2551_v1 = vld [vmem:[#allocation14 + $0x18] sm:$0xff] }
 0x651   : > { %v2329_v31 = vperm.slane %v2328_v26, 0  ;;  %2666 = vmatpush.msrb.mxu0 %v2551_v1  ;;  %v2806_v1 = vld [vmem:[#allocation14 + $0x60] sm:$0xff] }
 0x653   : > { %v2330_v60 = vmul.f32 %v2329_v31, %v2260_v15  ;;  %v2331_v7 = vmul.f32 %v2329_v31, %v2261_v58  ;;  %v2332_v33 = vmul.f32 %v2329_v31, %v2262_v59  ;;  %v2333_v12 = vmul.f32 %v2329_v31, %v2263_v53 }
 0x654   : > { %v2334_v39 = vmul.f32 %v2329_v31, %v2264_v19  ;;  %v2335_v55 = vmul.f32 %v2329_v31, %v2265_v16  ;;  %v2336_v18 = vmul.f32 %v2329_v31, %v2266_v49  ;;  %v2337_v44 = vmul.f32 %v2329_v31, %v2267_v6  ;;  %v2562_v31 = vld [vmem:[#allocation14 + $0x28] sm:$0xff] }
 0x655   : > { %v2341_v57 = vmul.f32 %v4873_v54, %v2330_v60  ;;  %v2342_v11 = vmul.f32 %v4873_v54, %v2331_v7  ;;  %v2343_v0 = vmul.f32 %v4873_v54, %v2332_v33  ;;  %v2344_v9 = vmul.f32 %v4873_v54, %v2333_v12  ;;  %v2549_v12 = vld [vmem:[#allocation14 + $0x8] sm:$0xff]  ;;  %2603 = vmatpush.msra.mxu3 %v2562_v31 }
 0x656   : > { %v2345_v5 = vmul.f32 %v4873_v54, %v2334_v39  ;;  %v2346_v38 = vmul.f32 %v4873_v54, %v2335_v55  ;;  %v2347_v41 = vmul.f32 %v4873_v54, %v2336_v18  ;;  %v2348_v45 = vmul.f32 %v4873_v54, %v2337_v44  ;;  %v2550_v54 = vld [vmem:[#allocation14 + $0x10] sm:$0xff]  ;;  %v2561_v55 = vld [vmem:[#allocation14 + $0x20] sm:$0xff]  ;;  %v2715_v44 = vld [vmem:[#allocation14 + $0x58] sm:$0xff] }
 0x657   : > { %v6617_v35 = vadd.f32 %v4874_v62, %v2341_v57  ;;  %v6619_v21 = vadd.f32 %v4874_v62, %v2342_v11  ;;  %v6621_v20 = vadd.f32 %v4874_v62, %v2343_v0  ;;  %v6623_v47 = vadd.f32 %v4874_v62, %v2344_v9  ;;  %2667 = vmatpush.msrb.mxu0 %v2550_v54  ;;  %v2552_v18 = vld [vmem:[#allocation3 + $0x1] sm:$0xff] }
 0x658   : > { %v6625_v48 = vadd.f32 %v4874_v62, %v2345_v5  ;;  %v6627_v61 = vadd.f32 %v4874_v62, %v2346_v38  ;;  %v6629_v43 = vadd.f32 %v4874_v62, %v2347_v41  ;;  %v6635_v52 = vadd.f32 %v4874_v62, %v2348_v45  ;;  %v2548_v41 = vld [vmem:[#allocation14] sm:$0xff]  ;;  %2752 = vmatpush.msrb.mxu2 %v2715_v44  ;;  %v2809_v45 = vld [vmem:[#allocation14 + $0x78] sm:$0xff] }
 0x659   : > { %v2360_v50 = vsub.f32 0.0, %v6617_v35  ;;  %v2361_v13 = vsub.f32 0.0, %v6619_v21  ;;  %v2362_v28 = vsub.f32 0.0, %v6621_v20  ;;  %v2363_v2 = vsub.f32 0.0, %v6623_v47  ;;  %2668 = vmatpush.msrb.mxu0 %v2549_v12  ;;  %2846 = vmatpush.msra.mxu1 %v2809_v45 }
 0x65a   : > { %v2364_v4 = vsub.f32 0.0, %v6625_v48  ;;  %v2365_v32 = vsub.f32 0.0, %v6627_v61  ;;  %v2366_v42 = vsub.f32 0.0, %v6629_v43  ;;  %v2367_v16 = vsub.f32 0.0, %v6635_v52  ;;  %2604 = vmatpush.msra.mxu3 %v2561_v55 }
 0x65b   : > { %v2368_v23 = vmul.f32 1.442695, %v2360_v50  ;;  %v2370_v25 = vmul.f32 1.442695, %v2361_v13  ;;  %v2372_v6 = vmul.f32 1.442695, %v2362_v28  ;;  %4530 = vmatmul.msk.f32.vlgmr.msra.gmra.mxu3 %vm7384_vm7, %v2552_v18  ;;  %2669 = vmatpush.msrb.mxu0 %v2548_v41 }
 0x65c   : > { %v2374_v49 = vmul.f32 1.442695, %v2363_v2  ;;  %v2376_v8 = vmul.f32 1.442695, %v2364_v4  ;;  %v2378_v22 = vmul.f32 1.442695, %v2365_v32 }
 0x65d   : > { %4917 = vpow2.f32 %v2368_v23  ;;  %v2380_v19 = vmul.f32 1.442695, %v2366_v42  ;;  %v2382_v27 = vmul.f32 1.442695, %v2367_v16  ;;  %v2714_v50 = vld [vmem:[#allocation14 + $0x50] sm:$0xff]  ;;  %v2713_v42 = vld [vmem:[#allocation14 + $0x48] sm:$0xff] }
 0x65e   : > { %4919 = vpow2.f32 %v2370_v25  ;;  %v2808_v32 = vld [vmem:[#allocation14 + $0x70] sm:$0xff]  ;;  %2753 = vmatpush.msrb.mxu2 %v2714_v50 }
 0x65f   : > { %4921 = vpow2.f32 %v2372_v6  ;;  %2847 = vmatpush.msra.mxu1 %v2808_v32 }
 0x660   : > { %4923 = vpow2.f32 %v2374_v49  ;;  %2754 = vmatpush.msrb.mxu2 %v2713_v42 }
 0x661   : > { %4925 = vpow2.f32 %v2376_v8 }
 0x662   : > { %4927 = vpow2.f32 %v2378_v22 }
 0x663   : > { %v4918_v53 = vpop.eup %4917  ;;  %4929 = vpow2.f32 %v2380_v19 }
 0x664   : > { %v4920_v36 = vpop.eup %4919  ;;  %4931 = vpow2.f32 %v2382_v27  ;;  %v6645_v40 = vadd.f32 1.0, %v4918_v53  ;;  %v2807_v27 = vld [vmem:[#allocation14 + $0x68] sm:$0xff] }
 0x665   : > { %v4922_v59 = vpop.eup %4921  ;;  %v6641_v37 = vadd.f32 1.0, %v4920_v36  ;;  %2848 = vmatpush.msra.mxu1 %v2807_v27 }
 0x666   : > { %v4924_v58 = vpop.eup %4923  ;;  %v6643_v63 = vadd.f32 1.0, %v4922_v59 }
 0x667   : > { %v4926_v15 = vpop.eup %4925  ;;  %v6647_v24 = vadd.f32 1.0, %v4924_v58  ;;  %4933 = vrcp.f32 %v6641_v37  ;;  %v2416_v46 = vand.u32 2147483647, %v6641_v37  ;;  %v2418_v56 = vand.u32 2147483648, %v6641_v37  ;;  %2849 = vmatpush.msra.mxu1 %v2806_v1 }
 0x668   : > { %v4928_v51 = vpop.eup %4927  ;;  %v6650_v34 = vadd.f32 1.0, %v4926_v15  ;;  %4935 = vrcp.f32 %v6643_v63  ;;  %v2431_v26 = vand.u32 2147483647, %v6643_v63  ;;  %v2433_v33 = vand.u32 2147483648, %v6643_v63  ;;  %v2712_v15 = vld [vmem:[#allocation14 + $0x40] sm:$0xff] }
 0x669   : > { %v4930_v10 = vpop.eup %4929  ;;  %v6653_v17 = vadd.f32 1.0, %v4928_v51  ;;  %4937 = vrcp.f32 %v6647_v24  ;;  %vm2412_vm14 = vweird.f32 %v6641_v37  ;;  %vm2427_vm15 = vweird.f32 %v6643_v63  ;;  %2755 = vmatpush.msrb.mxu2 %v2712_v15 }
 0x66a   : > { %4939 = vrcp.f32 %v6645_v40  ;;  %v4932_v60 = vpop.eup %4931  ;;  %v6660_v7 = vadd.f32 1.0, %v4930_v10  ;;  %v2446_v39 = vand.u32 2147483647, %v6647_v24  ;;  %vm6674_vm2 = vcmp.eq.f32.partialorder %v2416_v46, 8.507059e+37 }
 0x66b   : > { %4941 = vrcp.f32 %v6650_v34  ;;  %v6678_v9 = vor.u32 1.1754944e-38, %v2418_v56  ;;  %v2448_v5 = vand.u32 2147483648, %v6647_v24  ;;  %v2463_v38 = vand.u32 2147483648, %v6650_v34 }
 0x66c   : > { %4943 = vrcp.f32 %v6653_v17  ;;  %v6682_v13 = vadd.f32 1.0, %v4932_v60  ;;  %vm6686_vm3 = vcmp.eq.f32.partialorder %v2431_v26, 8.507059e+37  ;;  %vm2442_vm4 = vweird.f32 %v6647_v24 }
 0x66d   : > { %v6664_v62 = vpop.eup %4933  ;;  %v2461_v4 = vand.u32 2147483647, %v6650_v34  ;;  %v2434_v6 = vor.u32 1.1754944e-38, %v2433_v33  ;;  %v2476_v49 = vand.u32 2147483647, %v6653_v17  ;;  %4945 = vrcp.f32 %v6660_v7 }
 0x66e   : > { %v6670_v57 = vpop.eup %4935  ;;  %v2408_v11 = vmul.f32 %v6664_v62, %v6641_v37  ;;  %vm2413_vm5 = vweird.f32 %v6664_v62  ;;  %vm6701_vm8 = vcmp.eq.f32.partialorder %v2446_v39, 8.507059e+37  ;;  %vm2457_vm10 = vweird.f32 %v6650_v34 }
 0x66f   : > { %v2423_v28 = vmul.f32 %v6670_v57, %v6643_v63  ;;  %v6692_v23 = vpop.eup %4937  ;;  %vm2428_vm0 = vweird.f32 %v6670_v57  ;;  %v2449_v59 = vor.u32 1.1754944e-38, %v2448_v5  ;;  %v2464_v58 = vor.u32 1.1754944e-38, %v2463_v38  ;;  %vm2414_vm13 = vmor %vm2412_vm14, %vm2413_vm5 }
 0x670   : > { %v2409_v25 = vsub.f32 1.0, %v2408_v11  ;;  %v6696_v8 = vpop.eup %4939  ;;  %v2438_v22 = vmul.f32 %v6692_v23, %v6647_v24  ;;  %vm6715_vm11 = vcmp.eq.f32.partialorder %v2461_v4, 8.507059e+37  ;;  %v2478_v29 = vand.u32 2147483648, %v6653_v17  ;;  %vm2429_vm6 = vmor %vm2427_vm15, %vm2428_vm0 }
 0x671   : > { %v2424_v16 = vsub.f32 1.0, %v2423_v28  ;;  %v6707_v53 = vpop.eup %4941  ;;  %vm2443_vm9 = vweird.f32 %v6692_v23  ;;  %vm6723_vm12 = vcmp.eq.f32.partialorder %v2476_v49, 8.507059e+37  ;;  %4947 = vrcp.f32 %v6682_v13 }
 0x672   : > { %v2410_v36 = vmul.f32 %v6664_v62, %v2409_v25  ;;  %v4944_v51 = vpop.eup %4943  ;;  %v2439_v30 = vsub.f32 1.0, %v2438_v22  ;;  %v2453_v46 = vmul.f32 %v6707_v53, %v6650_v34  ;;  %vm2458_vm1 = vweird.f32 %v6707_v53  ;;  %vm2444_vm14 = vmor %vm2442_vm4, %vm2443_vm9  ;;  %v7492_v34 = vld [vmem:[#allocation42_spill] sm:$0xff] }
 0x673   : > { %v2425_v10 = vmul.f32 %v6670_v57, %v2424_v16  ;;  %v2468_v31 = vmul.f32 %v4944_v51, %v6653_v17  ;;  %v4946_v39 = vpop.eup %4945  ;;  %vm2473_vm7 = vweird.f32 %v4944_v51  ;;  %v2479_v50 = vor.u32 1.1754944e-38, %v2478_v29  ;;  %vm2459_vm15 = vmor %vm2457_vm10, %vm2458_vm1 }
 0x674   : > { %v2411_v26 = vadd.f32 %v6664_v62, %v2410_v36  ;;  %v2440_v33 = vmul.f32 %v6692_v23, %v2439_v30  ;;  %v2454_v12 = vsub.f32 1.0, %v2453_v46  ;;  %v2483_v0 = vmul.f32 %v4946_v39, %v6660_v7 }
 0x675   : > { %v2426_v60 = vadd.f32 %v6670_v57, %v2425_v10  ;;  %v2469_v18 = vsub.f32 1.0, %v2468_v31  ;;  %v2491_v2 = vand.u32 2147483647, %v6660_v7  ;;  %v2493_v32 = vand.u32 2147483648, %v6660_v7 }
 0x676   : > { %v2415_v55 = vsel %vm2414_vm13, %v6664_v62, %v2411_v26  ;;  %v2441_v11 = vadd.f32 %v6692_v23, %v2440_v33  ;;  %v2455_v62 = vmul.f32 %v6707_v53, %v2454_v12  ;;  %v2484_v28 = vsub.f32 1.0, %v2483_v0  ;;  %v2895_v0 = vld [vmem:[#allocation14 + $0x98] sm:$0xff] }
 0x677   : > { %v2420_v37 = vsel %vm6674_vm2, %v6678_v9, %v2415_v55  ;;  %v2430_v44 = vsel %vm2429_vm6, %v6670_v57, %v2426_v60  ;;  %v2470_v38 = vmul.f32 %v4944_v51, %v2469_v18  ;;  %v2532_v9 = vld [vmem:[#allocation3] sm:$0xff]  ;;  %vm7489_vm2 = vcmask 261120   ;;  %2932 = vmatpush.msrb.mxu3 %v2895_v0 }
 0x678   : > { %v2421_v5 = vmul.f32 %v2420_v37, %v6619_v21  ;;  %v2435_v63 = vsel %vm6686_vm3, %v2434_v6, %v2430_v44  ;;  %v2445_v41 = vsel %vm2444_vm14, %v6692_v23, %v2441_v11  ;;  %v2456_v45 = vadd.f32 %v6707_v53, %v2455_v62  ;;  %vm7491_vm5 = vmmov %vm7489_vm2  ;;  %v4948_v23 = vpop.eup %4947  ;;  %v7500_v55 = vld [vmem:[#allocation44_spill] sm:$0xff]  ;;  %v7506_v62 = vld [vmem:[#allocation46_spill] sm:$0xff] }
 0x679   : > { %v2436_v57 = vmul.f32 %v2435_v63, %v6621_v20  ;;  %v2450_v21 = vsel %vm6701_vm8, %v2449_v59, %v2445_v41  ;;  %v2471_v24 = vadd.f32 %v4944_v51, %v2470_v38  ;;  %vm7490_vm3 = vweird.f32 %v6653_v17  ;;  %vm7494_vm8 = vmmov %vm7489_vm2  ;;  %v7507_v63 = vld [vmem:[#allocation43_spill] sm:$0xff] }
 0x67a   : > { %2525 = vst.msk [vmem:[#allocation3 + $0x11] sm:$0xff] %vm7489_vm2, %v2421_v5  ;;  %v2451_v20 = vmul.f32 %v2450_v21, %v6623_v47  ;;  %v2460_v4 = vsel %vm2459_vm15, %v6707_v53, %v2456_v45  ;;  %vm2474_vm4 = vmor %vm7490_vm3, %vm2473_vm7  ;;  %v2540_v42 = vmul.f32 %v7492_v34, %v2532_v9  ;;  %v2485_v49 = vmul.f32 %v4946_v39, %v2484_v28 }
 0x67b   : > { %2526 = vst.msk [vmem:[#allocation3 + $0x19] sm:$0xff] %vm7491_vm5, %v2436_v57  ;;  %v2465_v25 = vsel %vm6715_vm11, %v2464_v58, %v2460_v4  ;;  %v2475_v6 = vsel %vm2474_vm4, %v4944_v51, %v2471_v24  ;;  %vm2488_vm1 = vweird.f32 %v4946_v39  ;;  %v2498_v17 = vmul.f32 %v4948_v23, %v6682_v13  ;;  %vm7493_vm7 = vmmov %vm7489_vm2  ;;  %v7513_v24 = vld [vmem:[#allocation45_spill] sm:$0xff]  ;;  %v2894_v4 = vld [vmem:[#allocation14 + $0x90] sm:$0xff] }
 0x67c   : > { %v2466_v47 = vmul.f32 %v2465_v25, %v6625_v48  ;;  %v2480_v16 = vsel %vm6723_vm12, %v2479_v50, %v2475_v6  ;;  %2527 = vst.msk [vmem:[#allocation3 + $0x21] sm:$0xff] %vm7493_vm7, %v2451_v20  ;;  %4538 = vmatmul.msk.f32.vlgmr.msrb.gmra.mxu0 %vm7494_vm8, %v2540_v42  ;;  %v2486_v19 = vadd.f32 %v4946_v39, %v2485_v49  ;;  %vm2487_vm10 = vweird.f32 %v6660_v7  ;;  %vm7495_vm11 = vmmov %vm7489_vm2  ;;  %v7512_v50 = vld [vmem:[#allocation48_spill] sm:$0xff]  ;;  %v2892_v49 = vld [vmem:[#allocation14 + $0x80] sm:$0xff] }
 0x67d   : > { %v2481_v22 = vmul.f32 %v2480_v16, %v6627_v61  ;;  %v2393_v27 = vmul.f32 %v6696_v8, %v6645_v40  ;;  %vm2489_vm0 = vmor %vm2487_vm10, %vm2488_vm1  ;;  %vm2492_vm6 = vcmp.eq.f32.partialorder %v2491_v2, 8.507059e+37  ;;  %v2494_v48 = vor.u32 1.1754944e-38, %v2493_v32  ;;  %v2989_v2 = vld [vmem:[#allocation14 + $0xb8] sm:$0xff]  ;;  %v2893_v32 = vld [vmem:[#allocation14 + $0x88] sm:$0xff]  ;;  %2933 = vmatpush.msrb.mxu3 %v2894_v4 }
 0x67e   : > { %v2499_v53 = vsub.f32 1.0, %v2498_v17  ;;  %2528 = vst.msk [vmem:[#allocation3 + $0x29] sm:$0xff] %vm7495_vm11, %v2466_v47  ;;  %v2490_v36 = vsel %vm2489_vm0, %v4946_v39, %v2486_v19  ;;  %v2506_v59 = vand.u32 2147483647, %v6682_v13  ;;  %v2508_v58 = vand.u32 2147483648, %v6682_v13  ;;  %vm7496_vm9 = vmmov %vm7489_vm2  ;;  %3026 = vmatpush.msra.mxu0 %v2989_v2  ;;  %v2988_v42 = vld [vmem:[#allocation14 + $0xb0] sm:$0xff] }
 0x67f   : > { %2529 = vst.msk [vmem:[#allocation3 + $0x31] sm:$0xff] %vm7496_vm9, %v2481_v22  ;;  %v2394_v61 = vsub.f32 1.0, %v2393_v27  ;;  %v2495_v15 = vsel %vm2492_vm6, %v2494_v48, %v2490_v36  ;;  %vm2503_vm12 = vweird.f32 %v4948_v23  ;;  %v2403_v7 = vand.u32 2147483648, %v6645_v40  ;;  %vm7497_vm7 = vmmov %vm7489_vm2  ;;  %2934 = vmatpush.msrb.mxu3 %v2893_v32  ;;  %v7518_v16 = vld [vmem:[#allocation50_spill] sm:$0xff]  ;;  %v7519_v22 = vld [vmem:[#allocation47_spill] sm:$0xff] }
 0x680   : > { %v2500_v51 = vmul.f32 %v4948_v23, %v2499_v53  ;;  %v2496_v10 = vmul.f32 %v2495_v15, %v6629_v43  ;;  %vm2398_vm13 = vweird.f32 %v6696_v8  ;;  %v2401_v46 = vand.u32 2147483647, %v6645_v40  ;;  %vm7498_vm8 = vmmov %vm7489_vm2  ;;  %3027 = vmatpush.msra.mxu0 %v2988_v42  ;;  %v2986_v27 = vld [vmem:[#allocation14 + $0xa0] sm:$0xff]  ;;  %v3083_v53 = vld [vmem:[#allocation14 + $0xd8] sm:$0xff] }
 0x681   : > { %v2395_v30 = vmul.f32 %v6696_v8, %v2394_v61  ;;  %vm2502_vm14 = vweird.f32 %v6682_v13  ;;  %v2509_v29 = vor.u32 1.1754944e-38, %v2508_v58  ;;  %vm2397_vm3 = vweird.f32 %v6645_v40  ;;  %vm7499_vm10 = vmmov %vm7489_vm2  ;;  %v6817_v11 = vld [vmem:[#allocation3 + $0x11] sm:$0xff]  ;;  %2935 = vmatpush.msrb.mxu3 %v2892_v49  ;;  %v3169_v36 = vld [vmem:[#allocation14 + $0xf8] sm:$0xff]  ;;  %3120 = vmatpush.msra.mxu2 %v3083_v53 }
 0x682   : > { %v2501_v56 = vadd.f32 %v4948_v23, %v2500_v51  ;;  %vm2504_vm15 = vmor %vm2502_vm14, %vm2503_vm12  ;;  %2530 = vst.msk [vmem:[#allocation3 + $0x39] sm:$0xff] %vm7489_vm2, %v2496_v10  ;;  %vm2507_vm4 = vcmp.eq.f32.partialorder %v2506_v59, 8.507059e+37  ;;  %v2404_v43 = vor.u32 1.1754944e-38, %v2403_v7  ;;  %vm2402_vm1 = vcmp.eq.f32.partialorder %v2401_v46, 8.507059e+37  ;;  %v6830_v57 = vld [vmem:[#allocation3 + $0x18] sm:$0xff]  ;;  %v3082_v59 = vld [vmem:[#allocation14 + $0xd0] sm:$0xff]  ;;  %3206 = vmatpush.msrb.mxu1 %v3169_v36 }
 0x683   : > { %v2396_v1 = vadd.f32 %v6696_v8, %v2395_v30  ;;  %vm2399_vm5 = vmor %vm2397_vm3, %vm2398_vm13  ;;  %v6832_v41 = vld [vmem:[#allocation3 + $0x12] sm:$0xff]  ;;  %v2543_v21 = vmul.f32 %v7512_v50, %v6830_v57  ;;  %v2799_v20 = vmul.f32 %v7506_v62, %v6830_v57  ;;  %v6847_v25 = vld [vmem:[#allocation3 + $0x20] sm:$0xff]  ;;  %3121 = vmatpush.msra.mxu2 %v3082_v59 }
 0x684   : > { %v2505_v26 = vsel %vm2504_vm15, %v4948_v23, %v2501_v56  ;;  %vm7502_vm0 = vmmov %vm7489_vm2  ;;  %v6834_v45 = vld [vmem:[#allocation3 + $0x19] sm:$0xff]  ;;  %v2705_v28 = vmul.f32 %v7513_v24, %v6832_v41  ;;  %v6851_v47 = vld [vmem:[#allocation3 + $0x21] sm:$0xff]  ;;  %v2544_v17 = vmul.f32 %v7518_v16, %v6847_v25  ;;  %v2800_v48 = vmul.f32 %v7512_v50, %v6847_v25 }
 0x685   : > { %v2510_v31 = vsel %vm2507_vm4, %v2509_v29, %v2505_v26  ;;  %v2400_v54 = vsel %vm2399_vm5, %v6696_v8, %v2396_v1  ;;  %v7501_v8 = vld [vmem:[#allocation41_spill] sm:$0xff]  ;;  %vm7503_vm6 = vmmov %vm7502_vm0  ;;  %v2987_v23 = vld [vmem:[#allocation14 + $0xa8] sm:$0xff] }
 0x686   : > { %v2511_v60 = vmul.f32 %v2510_v31, %v6635_v52  ;;  %v2405_v33 = vsel %vm2402_vm1, %v2404_v43, %v2400_v54  ;;  %vm7504_vm11 = vmmov %vm7502_vm0  ;;  %v6849_v6 = vld [vmem:[#allocation3 + $0x1a] sm:$0xff]  ;;  %3028 = vmatpush.msra.mxu0 %v2987_v23  ;;  %v6864_v61 = vld [vmem:[#allocation3 + $0x28] sm:$0xff] }
 0x687   : > { %v2406_v13 = vmul.f32 %v2405_v33, %v6617_v35  ;;  %vm7505_vm9 = vmmov %vm7502_vm0  ;;  %v2706_v19 = vmul.f32 %v7519_v22, %v6849_v6  ;;  %v3168_v58 = vld [vmem:[#allocation14 + $0xf0] sm:$0xff]  ;;  %v3081_v51 = vld [vmem:[#allocation14 + $0xc8] sm:$0xff]  ;;  %v2801_v26 = vmul.f32 %v7518_v16, %v6864_v61 }
 0x688   : > { %2531 = vst.msk [vmem:[#allocation3 + $0x41] sm:$0xff] %vm7497_vm7, %v2511_v60  ;;  %vm7508_vm12 = vmmov %vm7502_vm0  ;;  %3029 = vmatpush.msra.mxu0 %v2986_v27  ;;  %v6866_v15 = vld [vmem:[#allocation3 + $0x22] sm:$0xff]  ;;  %3207 = vmatpush.msrb.mxu1 %v3168_v58  ;;  %v3167_v7 = vld [vmem:[#allocation14 + $0xe8] sm:$0xff] }
 0x689   : > { %2524 = vst.msk [vmem:[#allocation3 + $0x9] sm:$0xff] %vm7498_vm8, %v2406_v13  ;;  %vm7509_vm13 = vmmov %vm7502_vm0  ;;  %v6868_v10 = vld [vmem:[#allocation3 + $0x29] sm:$0xff]  ;;  %3122 = vmatpush.msra.mxu2 %v3081_v51  ;;  %v6885_v60 = vld [vmem:[#allocation3 + $0x31] sm:$0xff]  ;;  %v3251_v51 = vmul.f32 %v7501_v8, %v6832_v41 }
 0x68a   : > { %vm7510_vm14 = vmmov %vm7502_vm0  ;;  %v7524_v30 = vld [vmem:[#allocation52_spill] sm:$0xff]  ;;  %v7525_v56 = vld [vmem:[#allocation49_spill] sm:$0xff]  ;;  %3208 = vmatpush.msrb.mxu1 %v3167_v7 }
 0x68b   : > { %vm7511_vm15 = vmmov %vm7502_vm0  ;;  %v2545_v46 = vmul.f32 %v7524_v30, %v6864_v61  ;;  %v2707_v29 = vmul.f32 %v7525_v56, %v6866_v15  ;;  %v3080_v1 = vld [vmem:[#allocation14 + $0xc0] sm:$0xff]  ;;  %v7541_v4 = vld [vmem:[#allocation55_spill] sm:$0xff] }
 0x68c   : > { %vm7514_vm2 = vmmov %vm7502_vm0  ;;  %v3166_v43 = vld [vmem:[#allocation14 + $0xe0] sm:$0xff]  ;;  %3123 = vmatpush.msra.mxu2 %v3080_v1 }
 0x68d   : > { %vm7515_vm3 = vmmov %vm7502_vm0  ;;  %3209 = vmatpush.msrb.mxu1 %v3166_v43  ;;  %v6881_v31 = vld [vmem:[#allocation3 + $0x30] sm:$0xff] }
 0x68e   : > { %vm7516_vm4 = vmmov %vm7502_vm0  ;;  %v6883_v54 = vld [vmem:[#allocation3 + $0x2a] sm:$0xff]  ;;  %v7529_v33 = vld [vmem:[#allocation54_spill] sm:$0xff]  ;;  %v3075_v27 = vmul.f32 %v7518_v16, %v6881_v31 }
 0x68f   : > { %vm7517_vm5 = vmmov %vm7502_vm0  ;;  %v2546_v13 = vmul.f32 %v7529_v33, %v6881_v31  ;;  %v6915_v2 = vld [vmem:[#allocation3 + $0x3a] sm:$0xff] }
 0x690   : > { %v6803_v12 = vld [vmem:[#allocation3 + $0x9] sm:$0xff]  ;;  %vm7520_vm1 = vmmov %vm7502_vm0  ;;  %v2710_v32 = vmul.f32 %v7541_v4, %v6915_v2  ;;  %v2890_v53 = vld [vmem:[#allocation3 + $0x41] sm:$0xff] }
 0x691   : > { %v2533_v40 = vld [vmem:[#allocation3 + $0x8] sm:$0xff]  ;;  %4531 = vmatmul.msk.f32.gmra.mxu3 %vm7499_vm10, %v6803_v12  ;;  %v6813_v35 = vld [vmem:[#allocation3 + $0x10] sm:$0xff]  ;;  %vm7521_vm7 = vmmov %vm7502_vm0 }
 0x692   : > { %v2695_v39 = vld [vmem:[#allocation3 + $0x2] sm:$0xff]  ;;  %v2541_v18 = vmul.f32 %v7500_v55, %v2533_v40  ;;  %v2797_v52 = vmul.f32 %v7492_v34, %v2533_v40  ;;  %v6815_v44 = vld [vmem:[#allocation3 + $0xa] sm:$0xff]  ;;  %v2542_v5 = vmul.f32 %v7506_v62, %v6813_v35  ;;  %v2798_v9 = vmul.f32 %v7500_v55, %v6813_v35  ;;  %vm7522_vm8 = vmmov %vm7502_vm0 }
 0x693   : > { %v2703_v37 = vmul.f32 %v7501_v8, %v2695_v39  ;;  %v2704_v38 = vmul.f32 %v7507_v63, %v6815_v44  ;;  %vm7523_vm10 = vmmov %vm7502_vm0  ;;  %v7530_v40 = vld [vmem:[#allocation51_spill] sm:$0xff]  ;;  %v2977_v42 = vmul.f32 %v7501_v8, %v6815_v44  ;;  %v3071_v49 = vmul.f32 %v7492_v34, %v6813_v35  ;;  %v4984_v8 = vld [vmem:[%s5903_s5 + $0x8] sm:$0xff] }
 0x694   : > { %4539 = vmatmul.msk.f32.gmra.mxu0 %vm7502_vm0, %v2541_v18  ;;  %4554 = vmatmul.msk.f32.vlgmr.msra.gmra.mxu1 %vm7504_vm11, %v2797_v52  ;;  %vm7527_vm11 = vmmov %vm7502_vm0  ;;  %v2708_v39 = vmul.f32 %v7530_v40, %v6883_v54  ;;  %v2802_v18 = vmul.f32 %v7524_v30, %v6881_v31  ;;  %v6900_v52 = vld [vmem:[#allocation3 + $0x32] sm:$0xff]  ;;  %v2979_v44 = vmul.f32 %v7513_v24, %v6849_v6 }
 0x695   : > { %4546 = vmatmul.msk.f32.vlgmr.msrb.gmra.mxu2 %vm7503_vm6, %v2703_v37  ;;  %vm7526_vm6 = vmmov %vm7502_vm0  ;;  %v6898_v37 = vld [vmem:[#allocation3 + $0x38] sm:$0xff]  ;;  %v2980_v34 = vmul.f32 %v7519_v22, %v6866_v15  ;;  %v3073_v35 = vmul.f32 %v7506_v62, %v6847_v25  ;;  %v2981_v62 = vmul.f32 %v7525_v56, %v6883_v54  ;;  %v3074_v25 = vmul.f32 %v7512_v50, %v6864_v61  ;;  %v3070_v61 = vld [vmem:[#allocation3 + $0x48] sm:$0xff] }
 0x696   : > { %v3076_v16 = vmul.f32 %v7524_v30, %v6898_v37  ;;  %v3253_v31 = vmul.f32 %v7513_v24, %v6866_v15 }
 0x699   : > { %4532 = vmatmul.msk.f32.gmra.mxu3 %vm7505_vm9, %v6817_v11  ;;  %vm7528_vm9 = vmmov %vm7502_vm0 }
 0x69c   : > { %4540 = vmatmul.msk.f32.gmra.mxu0 %vm7508_vm12, %v2542_v5  ;;  %4555 = vmatmul.msk.f32.gmra.mxu1 %vm7510_vm14, %v2798_v9  ;;  %vm7531_vm12 = vmmov %vm7502_vm0  ;;  %v6902_v5 = vld [vmem:[#allocation3 + $0x39] sm:$0xff]  ;;  %v7536_v9 = vld [vmem:[#allocation53_spill] sm:$0xff] }
 0x69d   : > { %4547 = vmatmul.msk.f32.gmra.mxu2 %vm7509_vm13, %v2704_v38  ;;  %vm7532_vm13 = vmmov %vm7502_vm0  ;;  %v7535_v38 = vld [vmem:[#allocation56_spill] sm:$0xff]  ;;  %v2983_v50 = vmul.f32 %v7536_v9, %v6915_v2 }
 0x69e   : > { %vm7533_vm14 = vmmov %vm7502_vm0  ;;  %v2547_v0 = vmul.f32 %v7535_v38, %v6898_v37  ;;  %v3078_v7 = vmul.f32 %v7535_v38, %v3070_v61 }
 0x6a1   : > { %4533 = vmatmul.msk.f32.gmra.mxu3 %vm7511_vm15, %v6834_v45  ;;  %vm7534_vm15 = vmmov %vm7502_vm0 }
 0x6a4   : > { %4541 = vmatmul.msk.f32.gmra.mxu0 %vm7514_vm2, %v2543_v21  ;;  %4556 = vmatmul.msk.f32.gmra.mxu1 %vm7516_vm4, %v2799_v20  ;;  %v2709_v21 = vmul.f32 %v7536_v9, %v6900_v52  ;;  %vm7537_vm2 = vmmov %vm7502_vm0  ;;  %v2796_v20 = vld [vmem:[#allocation3 + $0x40] sm:$0xff] }
 0x6a5   : > { %4548 = vmatmul.msk.f32.gmra.mxu2 %vm7515_vm3, %v2705_v28  ;;  %v2803_v28 = vmul.f32 %v7529_v33, %v6898_v37  ;;  %vm7538_vm3 = vmmov %vm7502_vm0  ;;  %v2804_v23 = vmul.f32 %v7535_v38, %v2796_v20  ;;  %v3077_v59 = vmul.f32 %v7529_v33, %v2796_v20  ;;  %v3255_v38 = vmul.f32 %v7525_v56, %v6900_v52  ;;  %v4988_v56 = vld [vmem:[%s5903_s5 + $0x28] sm:$0xff] }
 0x6a6   : > { %vm7539_vm4 = vmmov %vm7502_vm0  ;;  %v3256_v20 = vmul.f32 %v7530_v40, %v6915_v2 }
 0x6a9   : > { %4534 = vmatmul.msk.f32.gmra.mxu3 %vm7517_vm5, %v6851_v47  ;;  %vm7540_vm5 = vmmov %vm7502_vm0 }
 0x6ac   : > { %4542 = vmatmul.msk.f32.gmra.mxu0 %vm7520_vm1, %v2544_v17  ;;  %4557 = vmatmul.msk.f32.gmra.mxu1 %vm7522_vm8, %v2800_v48  ;;  %vm7542_vm1 = vmmov %vm7502_vm0  ;;  %v3072_v17 = vmul.f32 %v7500_v55, %v6830_v57  ;;  %v3262_v55 = vld [vmem:[#allocation14 + $0x110] sm:$0xff]  ;;  %v3261_v57 = vld [vmem:[#allocation14 + $0x108] sm:$0xff] }
 0x6ad   : > { %4549 = vmatmul.msk.f32.gmra.mxu2 %vm7521_vm7, %v2706_v19  ;;  %vm7543_vm7 = vmmov %vm7502_vm0  ;;  %v3263_v19 = vld [vmem:[#allocation14 + $0x118] sm:$0xff]  ;;  %v3349_v48 = vld [vmem:[#allocation17] sm:$0xff] }
 0x6ae   : > { %vm7544_vm8 = vmmov %vm7502_vm0  ;;  %3300 = vmatpush.msra.mxu3 %v3263_v19  ;;  %v4989_v19 = vld [vmem:[%s5903_s5 + $0x30] sm:$0xff] }
 0x6b0   : > { %3301 = vmatpush.msra.mxu3 %v3262_v55 }
 0x6b1   : > { %4535 = vmatmul.msk.f32.gmra.mxu3 %vm7523_vm10, %v6868_v10  ;;  %vm7545_vm10 = vmmov %vm7502_vm0 }
 0x6b2   : > { %3302 = vmatpush.msra.mxu3 %v3261_v57 }
 0x6b4   : > { %4543 = vmatmul.msk.f32.gmra.mxu0 %vm7502_vm0, %v2545_v46  ;;  %4558 = vmatmul.msk.f32.gmra.mxu1 %vm7527_vm11, %v2801_v26  ;;  %vm7547_vm11 = vmmov %vm7502_vm0  ;;  %v4983_v46 = vld [vmem:[%s5903_s5] sm:$0xff] }
 0x6b5   : > { %4550 = vmatmul.msk.f32.gmra.mxu2 %vm7526_vm6, %v2707_v29  ;;  %vm7546_vm6 = vmmov %vm7502_vm0  ;;  %v3252_v29 = vmul.f32 %v7507_v63, %v6849_v6 }
 0x6b9   : > { %4536 = vmatmul.msk.f32.gmra.mxu3 %vm7528_vm9, %v6885_v60  ;;  %vm7548_vm9 = vmmov %vm7502_vm0 }
 0x6bc   : > { %4544 = vmatmul.msk.f32.gmra.mxu0 %vm7531_vm12, %v2546_v13  ;;  %4559 = vmatmul.msk.f32.gmra.mxu1 %vm7533_vm14, %v2802_v18  ;;  %vm7549_vm12 = vmmov %vm7502_vm0  ;;  %v4985_v13 = vld [vmem:[%s5903_s5 + $0x10] sm:$0xff] }
 0x6bd   : > { %4551 = vmatmul.msk.f32.gmra.mxu2 %vm7532_vm13, %v2708_v39  ;;  %vm7550_vm13 = vmmov %vm7502_vm0  ;;  %v3254_v39 = vmul.f32 %v7519_v22, %v6883_v54  ;;  %v4987_v22 = vld [vmem:[%s5903_s5 + $0x20] sm:$0xff] }
 0x6be   : > { %vm7551_vm14 = vmmov %vm7502_vm0 }
 0x6c1   : > { %4537 = vmatmul.msk.f32.gmra.mxu3 %vm7534_vm15, %v6902_v5  ;;  %vm7552_vm15 = vmmov %vm7502_vm0 }
 0x6c4   : > { %4545 = vmatmul.msk.f32.gmra.mxu0 %vm7537_vm2, %v2547_v0  ;;  %4560 = vmatmul.msk.f32.gmra.mxu1 %vm7539_vm4, %v2803_v28  ;;  %vm7553_vm2 = vmmov %vm7502_vm0 }
 0x6c5   : > { %4552 = vmatmul.msk.f32.gmra.mxu2 %vm7538_vm3, %v2709_v21  ;;  %vm7554_vm3 = vmmov %vm7502_vm0 }
 0x6c6   : > { %vm7555_vm4 = vmmov %vm7502_vm0 }
 0x6c9   : > { %4562 = vmatmul.msk.f32.vlgmr.msrb.gmra.mxu3 %vm7540_vm5, %v6803_v12  ;;  %v2978_v12 = vmul.f32 %v7507_v63, %v6832_v41  ;;  %vm7556_vm5 = vmmov %vm7502_vm0 }
 0x6cc   : > { %4570 = vmatmul.msk.f32.vlgmr.msra.gmra.mxu0 %vm7543_vm7, %v2977_v42  ;;  %4561 = vmatmul.msk.f32.gmra.mxu1 %vm7544_vm8, %v2804_v23  ;;  %vm7558_vm7 = vmmov %vm7502_vm0 }
 0x6cd   : > { %4553 = vmatmul.msk.f32.gmra.mxu2 %vm7542_vm1, %v2710_v32  ;;  %vm7557_vm1 = vmmov %vm7502_vm0 }
 0x6ce   : > { %vm7559_vm8 = vmmov %vm7502_vm0 }
 0x6d1   : > { %4563 = vmatmul.msk.f32.gmra.mxu3 %vm7545_vm10, %v6817_v11  ;;  %vm7560_vm10 = vmmov %vm7502_vm0 }
 0x6d4   : > { %4571 = vmatmul.msk.f32.gmra.mxu0 %vm7502_vm0, %v2978_v12  ;;  %4586 = vmatmul.msk.f32.vlgmr.msrb.gmra.mxu1 %vm7547_vm11, %v6817_v11  ;;  %v3350_v11 = vld [vmem:[#allocation17 + $0x8] sm:$0xff]  ;;  %vm2522_vm0 = vcmask 254976   ;;  %vm7562_vm11 = vmmov %vm7557_vm1 }
 0x6d5   : > { %4578 = vmatmul.msk.f32.vlgmr.msra.gmra.mxu2 %vm7546_vm6, %v3071_v49  ;;  %3393 = vmatpush.msrb.mxu0 %v3350_v11  ;;  %2523 = vst.msk [vmem:[#allocation3 + $0x50] sm:$0x3] %vm2522_vm0, %v7477_v3  ;;  %vm7561_vm6 = vmmov %vm7557_vm1  ;;  %v2976_v3 = vld [vmem:[#allocation3 + $0x42] sm:$0xff] }
 0x6d6   : > { %v2984_v36 = vmul.f32 %v7541_v4, %v2976_v3  ;;  %vm7575_vm0 = vmmov %vm7557_vm1  ;;  %v3257_v12 = vmul.f32 %v7536_v9, %v2976_v3  ;;  %v4990_v11 = vld [vmem:[%s5903_s5 + $0x38] sm:$0xff] }
 0x6d7   : > { %3394 = vmatpush.msrb.mxu0 %v3349_v48 }
 0x6d9   : > { %4564 = vmatmul.msk.f32.gmra.mxu3 %vm7548_vm9, %v6834_v45  ;;  %vm7563_vm9 = vmmov %vm7557_vm1 }
 0x6dc   : > { %4572 = vmatmul.msk.f32.gmra.mxu0 %vm7549_vm12, %v2979_v44  ;;  %4587 = vmatmul.msk.f32.gmra.mxu1 %vm7551_vm14, %v6834_v45  ;;  %v3260_v45 = vld [vmem:[#allocation14 + $0x100] sm:$0xff]  ;;  %vm7564_vm12 = vmmov %vm7557_vm1 }
 0x6dd   : > { %4579 = vmatmul.msk.f32.gmra.mxu2 %vm7550_vm13, %v3072_v17  ;;  %3303 = vmatpush.msra.mxu3 %v3260_v45  ;;  %vm7565_vm13 = vmmov %vm7557_vm1  ;;  %v3250_v17 = vld [vmem:[#allocation3 + $0x4a] sm:$0xff] }
 0x6de   : > { %vm7566_vm14 = vmmov %vm7557_vm1  ;;  %v2606_v30 = vpop.f32.mrf.mxu3  ;;  %v3258_v2 = vmul.f32 %v7541_v4, %v3250_v17 }
 0x6e1   : > { %4565 = vmatmul.msk.f32.gmra.mxu3 %vm7552_vm15, %v6851_v47  ;;  %vm7567_vm15 = vmmov %vm7557_vm1 }
 0x6e4   : > { %4573 = vmatmul.msk.f32.gmra.mxu0 %vm7553_vm2, %v2980_v34  ;;  %4588 = vmatmul.msk.f32.gmra.mxu1 %vm7555_vm4, %v6851_v47  ;;  %v2982_v47 = vmul.f32 %v7530_v40, %v6900_v52  ;;  %vm7568_vm2 = vmmov %vm7557_vm1 }
 0x6e5   : > { %4580 = vmatmul.msk.f32.gmra.mxu2 %vm7554_vm3, %v3073_v35  ;;  %vm7569_vm3 = vmmov %vm7557_vm1 }
 0x6e6   : > { %vm7570_vm4 = vmmov %vm7557_vm1 }
 0x6e9   : > { %4566 = vmatmul.msk.f32.gmra.mxu3 %vm7556_vm5, %v6868_v10  ;;  %vm7571_vm5 = vmmov %vm7557_vm1 }
 0x6ec   : > { %4574 = vmatmul.msk.f32.gmra.mxu0 %vm7557_vm1, %v2981_v62  ;;  %4589 = vmatmul.msk.f32.gmra.mxu1 %vm7559_vm8, %v6868_v10  ;;  %v3164_v10 = vld [vmem:[#allocation3 + $0x49] sm:$0xff]  ;;  %vm7573_vm8 = vcmask 130048  }
 0x6ed   : > { %4581 = vmatmul.msk.f32.gmra.mxu2 %vm7558_vm7, %v3074_v25  ;;  %vm7572_vm7 = vmmov %vm7557_vm1 }
 0x6f1   : > { %4567 = vmatmul.msk.f32.gmra.mxu3 %vm7560_vm10, %v6885_v60  ;;  %vm7574_vm10 = vmmov %vm7557_vm1 }
 0x6f4   : > { %4575 = vmatmul.msk.f32.gmra.mxu0 %vm7561_vm6, %v2982_v47  ;;  %4590 = vmatmul.msk.f32.gmra.mxu1 %vm7563_vm9, %v6885_v60  ;;  %vm7576_vm6 = vmmov %vm7573_vm8 }
 0x6f5   : > { %4582 = vmatmul.msk.f32.gmra.mxu2 %vm7562_vm11, %v3075_v27  ;;  %vm7577_vm11 = vmmov %vm7575_vm0 }
 0x6f6   : > { %vm7578_vm9 = vmmov %vm7576_vm6 }
 0x6f9   : > { %4568 = vmatmul.msk.f32.gmra.mxu3 %vm7564_vm12, %v6902_v5  ;;  %v6994_v58 = vpop.f32.mrf.mxu0  ;;  %vm7579_vm12 = vmmov %vm7575_vm0 }
 0x6fa   : > { %v2672_v57 = vadd.f32 %v6994_v58, %v2606_v30 }
 0x6fc   : > { %4576 = vmatmul.msk.f32.gmra.mxu0 %vm7565_vm13, %v2983_v50  ;;  %4591 = vmatmul.msk.f32.gmra.mxu1 %vm7567_vm15, %v6902_v5  ;;  %v4986_v5 = vld [vmem:[%s5903_s5 + $0x18] sm:$0xff]  ;;  %vm7580_vm13 = vmmov %vm7576_vm6  ;;  %s923_s5 = scalar_lea.vmem %s7664_s6, %s4672_s20 }
 0x6fd   : > { %4583 = vmatmul.msk.f32.gmra.mxu2 %vm7566_vm14, %v3076_v16  ;;  %vm7581_vm14 = vmmov %vm7575_vm0 }
 0x6fe   : > { %vm7582_vm15 = vmmov %vm7576_vm6 }
 0x701   : > { %4569 = vmatmul.msk.f32.gmra.mxu3 %vm7568_vm2, %v2890_v53  ;;  %vm7583_vm2 = vmmov %vm7575_vm0 }
 0x704   : > { %4577 = vmatmul.msk.f32.gmra.mxu0 %vm7569_vm3, %v2984_v36  ;;  %4592 = vmatmul.msk.f32.gmra.mxu1 %vm7571_vm5, %v2890_v53  ;;  %vm7584_vm3 = vmmov %vm7576_vm6 }
 0x705   : > { %4584 = vmatmul.msk.f32.gmra.mxu2 %vm7570_vm4, %v3077_v59  ;;  %vm7585_vm4 = vmmov %vm7575_vm0 }
 0x706   : > { %vm7586_vm5 = vmmov %vm7584_vm3 }
 0x709   : > { %4594 = vmatmul.msk.f32.vlgmr.msra.gmra.mxu3 %vm7557_vm1, %v3251_v51  ;;  %vm7587_vm1 = vmmov %vm7575_vm0 }
 0x70c   : > { %4602 = vmatmul.msk.f32.vlgmr.msrb.gmra.mxu0 %vm7573_vm8, %v4983_v46  ;;  %4593 = vmatmul.msk.f32.gmra.mxu1 %vm7574_vm10, %v3164_v10  ;;  %vm7589_vm8 = vcmask 523264   ;;  %vm7590_vm10 = vmmov %vm7575_vm0 }
 0x70d   : > { %4585 = vmatmul.msk.f32.gmra.mxu2 %vm7572_vm7, %v3078_v7  ;;  %vm7588_vm7 = vmmov %vm7584_vm3 }
 0x711   : > { %v2674_v1 = vpop.f32.mrf.mxu0  ;;  %v2851_v26 = vpop.f32.mrf.mxu1  ;;  %4595 = vmatmul.msk.f32.gmra.mxu3 %vm7575_vm0, %v3252_v29  ;;  %vm7591_vm0 = vmmov %vm7589_vm8 }
 0x714   : > { %4603 = vmatmul.msk.f32.gmra.mxu0 %vm7576_vm6, %v4984_v8  ;;  %v2609_v41 = vpop.f32.mrf.mxu3  ;;  %vm7592_vm6 = vmmov %vm7587_vm1 }
 0x715   : > { %v2675_v48 = vadd.f32 %v2674_v1, %v2609_v41 }
 0x718   : > { %v2757_v43 = vpop.f32.mrf.mxu2 }
 0x719   : > { %v2677_v60 = vpop.f32.mrf.mxu0  ;;  %v2854_v33 = vpop.f32.mrf.mxu1  ;;  %4596 = vmatmul.msk.f32.gmra.mxu3 %vm7577_vm11, %v3253_v31  ;;  %v2781_v62 = vadd.f32 %v2757_v43, %v2672_v57 }
 0x71b   : > { %v2875_v47 = vadd.f32 %v2851_v26, %v2781_v62 }
 0x71c   : > { %4604 = vmatmul.msk.f32.gmra.mxu0 %vm7578_vm9, %v4985_v13  ;;  %v2612_v63 = vpop.f32.mrf.mxu3 }
 0x71d   : > { %v2678_v51 = vadd.f32 %v2677_v60, %v2612_v63 }
 0x720   : > { %v2760_v6 = vpop.f32.mrf.mxu2 }
 0x721   : > { %v7016_v18 = vpop.f32.mrf.mxu0  ;;  %v2857_v37 = vpop.f32.mrf.mxu1  ;;  %4597 = vmatmul.msk.f32.gmra.mxu3 %vm7579_vm12, %v3254_v39  ;;  %v2782_v3 = vadd.f32 %v2760_v6, %v2675_v48 }
 0x723   : > { %v2876_v59 = vadd.f32 %v2854_v33, %v2782_v3 }
 0x724   : > { %4605 = vmatmul.msk.f32.gmra.mxu0 %vm7580_vm13, %v4986_v5  ;;  %v2615_v24 = vpop.f32.mrf.mxu3  ;;  %vm7593_vm13 = vmmov %vm7587_vm1 }
 0x725   : > { %v2681_v43 = vadd.f32 %v7016_v18, %v2615_v24 }
 0x728   : > { %v2763_v15 = vpop.f32.mrf.mxu2 }
 0x729   : > { %v7023_v0 = vpop.f32.mrf.mxu0  ;;  %v2860_v21 = vpop.f32.mrf.mxu1  ;;  %4598 = vmatmul.msk.f32.gmra.mxu3 %vm7581_vm14, %v3255_v38  ;;  %v2783_v58 = vadd.f32 %v2763_v15, %v2678_v51  ;;  %vm7594_vm14 = vmmov %vm7587_vm1 }
 0x72b   : > { %v2877_v8 = vadd.f32 %v2857_v37, %v2783_v58 }
 0x72c   : > { %4606 = vmatmul.msk.f32.gmra.mxu0 %vm7582_vm15, %v4987_v22  ;;  %v2618_v54 = vpop.f32.mrf.mxu3  ;;  %vm7595_vm15 = vmmov %vm7587_vm1 }
 0x72d   : > { %v2684_v63 = vadd.f32 %v7023_v0, %v2618_v54 }
 0x730   : > { %v2766_v28 = vpop.f32.mrf.mxu2 }
 0x731   : > { %v7030_v32 = vpop.f32.mrf.mxu0  ;;  %v2863_v42 = vpop.f32.mrf.mxu1  ;;  %4599 = vmatmul.msk.f32.gmra.mxu3 %vm7583_vm2, %v3256_v20  ;;  %v2784_v13 = vadd.f32 %v2766_v28, %v2681_v43  ;;  %vm7596_vm2 = vmmov %vm7587_vm1 }
 0x733   : > { %v2878_v39 = vadd.f32 %v2860_v21, %v2784_v13 }
 0x734   : > { %4607 = vmatmul.msk.f32.gmra.mxu0 %vm7584_vm3, %v4988_v56  ;;  %v2621_v52 = vpop.f32.mrf.mxu3  ;;  %vm7597_vm3 = vmmov %vm7587_vm1 }
 0x735   : > { %v2687_v37 = vadd.f32 %v7030_v32, %v2621_v52  ;;  %v7063_v52 = vld [vmem:[#allocation18] ss:$0 sm:$0xff] }
 0x738   : > { %v2769_v23 = vpop.f32.mrf.mxu2 }
 0x739   : > { %v2689_v49 = vpop.f32.mrf.mxu0  ;;  %4600 = vmatmul.msk.f32.gmra.mxu3 %vm7585_vm4, %v3257_v12  ;;  %v2866_v44 = vpop.f32.mrf.mxu1  ;;  %v2785_v15 = vadd.f32 %v2769_v23, %v2684_v63  ;;  %vm7598_vm4 = vmmov %vm7587_vm1 }
 0x73b   : > { %v2879_v20 = vadd.f32 %v2863_v42, %v2785_v15 }
 0x73c   : > { %4608 = vmatmul.msk.f32.gmra.mxu0 %vm7586_vm5, %v4989_v19  ;;  %v2624_v40 = vpop.f32.mrf.mxu3  ;;  %vm7599_vm5 = vmmov %vm7587_vm1 }
 0x740   : > { %v2772_v34 = vpop.f32.mrf.mxu2 }
 0x741   : > { %v7040_v35 = vpop.f32.mrf.mxu0  ;;  %4601 = vmatmul.msk.f32.gmra.mxu3 %vm7587_vm1, %v3258_v2  ;;  %v2869_v9 = vpop.f32.mrf.mxu1  ;;  %v2786_v18 = vadd.f32 %v2772_v34, %v2687_v37  ;;  %v2690_v2 = vadd.f32 %v2689_v49, %v2624_v40 }
 0x743   : > { %v2880_v17 = vadd.f32 %v2866_v44, %v2786_v18  ;;  %v7065_v44 = vld [vmem:[#allocation15] ss:$0 sm:$0xff] }
 0x744   : > { %4609 = vmatmul.msk.f32.gmra.mxu0 %vm7588_vm7, %v4990_v11  ;;  %v7045_v55 = vpop.f32.mrf.mxu3  ;;  %vm7600_vm7 = vmmov %vm7587_vm1 }
 0x748   : > { %v2775_v45 = vpop.f32.mrf.mxu2 }
 0x749   : > { %v3031_v25 = vpop.f32.mrf.mxu0  ;;  %v7048_v50 = vpop.f32.mrf.mxu1  ;;  %v2787_v11 = vadd.f32 %v2775_v45, %v2690_v2 }
 0x74b   : > { %v2881_v54 = vadd.f32 %v2869_v9, %v2787_v11 }
 0x74c   : > { %v2937_v27 = vpop.f32.mrf.mxu3 }
 0x74d   : > { %v2961_v4 = vadd.f32 %v2937_v27, %v2875_v47 }
 0x74f   : > { %v3055_v53 = vadd.f32 %v3031_v25, %v2961_v4 }
 0x750   : > { %v7050_v16 = vpop.f32.mrf.mxu2 }
 0x751   : > { %v3034_v36 = vpop.f32.mrf.mxu0  ;;  %v3211_v29 = vpop.f32.mrf.mxu1 }
 0x754   : > { %v2940_v61 = vpop.f32.mrf.mxu3 }
 0x755   : > { %v2962_v7 = vadd.f32 %v2940_v61, %v2876_v59 }
 0x757   : > { %v7052_v30 = vadd.f32 %v3034_v36, %v2962_v7 }
 0x758   : > { %v3125_v10 = vpop.f32.mrf.mxu2 }
 0x759   : > { %v3149_v46 = vadd.f32 %v3125_v10, %v3055_v53  ;;  %v3037_v26 = vpop.f32.mrf.mxu0  ;;  %v7061_v48 = vpop.f32.mrf.mxu1 }
 0x75b   : > { %v3235_v1 = vadd.f32 %v3211_v29, %v3149_v46 }
 0x75c   : > { %v2943_v41 = vpop.f32.mrf.mxu3 }
 0x75d   : > { %v2963_v31 = vadd.f32 %v2943_v41, %v2877_v8 }
 0x75f   : > { %v7055_v6 = vadd.f32 %v3037_v26, %v2963_v31  ;;  %v2693_v31 = vadd.f32 %v7040_v35, %v7045_v55 }
 0x760   : > { %v3128_v47 = vpop.f32.mrf.mxu2 }
 0x761   : > { %v3040_v33 = vpop.f32.mrf.mxu0  ;;  %v3217_v4 = vpop.f32.mrf.mxu1 }
 0x764   : > { %v2946_v60 = vpop.f32.mrf.mxu3 }
 0x765   : > { %v2964_v5 = vadd.f32 %v2946_v60, %v2878_v39 }
 0x767   : > { %v7058_v38 = vadd.f32 %v3040_v33, %v2964_v5  ;;  %v2788_v33 = vadd.f32 %v7050_v16, %v2693_v31 }
 0x768   : > { %v3131_v34 = vpop.f32.mrf.mxu2 }
 0x769   : > { %v3043_v22 = vpop.f32.mrf.mxu0  ;;  %v3220_v51 = vpop.f32.mrf.mxu1  ;;  %v2882_v60 = vadd.f32 %v7048_v50, %v2788_v33  ;;  %v3151_v50 = vadd.f32 %v3131_v34, %v7055_v6 }
 0x76c   : > { %v2949_v56 = vpop.f32.mrf.mxu3 }
 0x76d   : > { %v2965_v12 = vadd.f32 %v2949_v56, %v2879_v20 }
 0x76f   : > { %v3059_v24 = vadd.f32 %v3043_v22, %v2965_v12 }
 0x770   : > { %v3134_v36 = vpop.f32.mrf.mxu2 }
 0x771   : > { %v3046_v28 = vpop.f32.mrf.mxu0  ;;  %v3223_v46 = vpop.f32.mrf.mxu1  ;;  %v3152_v35 = vadd.f32 %v3134_v36, %v7058_v38 }
 0x774   : > { %v2952_v19 = vpop.f32.mrf.mxu3 }
 0x775   : > { %v2966_v21 = vadd.f32 %v2952_v19, %v2880_v17 }
 0x777   : > { %v3060_v57 = vadd.f32 %v3046_v28, %v2966_v21 }
 0x778   : > { %v3137_v10 = vpop.f32.mrf.mxu2 }
 0x779   : > { %v3049_v0 = vpop.f32.mrf.mxu0  ;;  %v3226_v41 = vpop.f32.mrf.mxu1  ;;  %v3153_v17 = vadd.f32 %v3137_v10, %v3059_v24 }
 0x77c   : > { %v2955_v23 = vpop.f32.mrf.mxu3 }
 0x77d   : > { %v2967_v62 = vadd.f32 %v2955_v23, %v2881_v54 }
 0x77f   : > { %v3061_v25 = vadd.f32 %v3049_v0, %v2967_v62  ;;  %v3239_v0 = vadd.f32 %v3223_v46, %v3153_v17 }
 0x780   : > { %v3140_v26 = vpop.f32.mrf.mxu2 }
 0x781   : > { %v3052_v42 = vpop.f32.mrf.mxu0  ;;  %v3229_v63 = vpop.f32.mrf.mxu1  ;;  %v3154_v12 = vadd.f32 %v3140_v26, %v3060_v57  ;;  %v3150_v57 = vadd.f32 %v3128_v47, %v7052_v30 }
 0x783   : > { %v3240_v16 = vadd.f32 %v3226_v41, %v3154_v12 }
 0x784   : > { %v2958_v27 = vpop.f32.mrf.mxu3 }
 0x785   : > { %v2968_v15 = vadd.f32 %v2958_v27, %v2882_v60 }
 0x787   : > { %v3062_v37 = vadd.f32 %v3052_v42, %v2968_v15 }
 0x788   : > { %v3143_v13 = vpop.f32.mrf.mxu2 }
 0x789   : > { %v3396_v32 = vpop.f32.mrf.mxu0  ;;  %v3155_v56 = vadd.f32 %v3143_v13, %v3061_v25  ;;  %v3232_v28 = vpop.f32.mrf.mxu1  ;;  %v3238_v25 = vadd.f32 %v3220_v51, %v3152_v35 }
 0x78a   : > { %v3397_v45 = vadd.f32 %v7063_v52, %v3396_v32  ;;  %v3237_v32 = vadd.f32 %v3217_v4, %v3151_v50  ;;  %v3629_v50 = vld [vmem:[#allocation21 + $0x10] sm:$0xff] }
 0x78b   : > { %v3241_v19 = vadd.f32 %v3229_v63, %v3155_v56 }
 0x78c   : > { %v3305_v49 = vpop.f32.mrf.mxu3 }
 0x78d   : > { %v3329_v40 = vadd.f32 %v3305_v49, %v3235_v1 }
 0x78f   : > { %v3341_v9 = vadd.f32 %v7065_v44, %v3329_v40 }
 0x790   : > { %v3146_v22 = vpop.f32.mrf.mxu2 }
 0x791   : > { %v7069_v3 = vpop.f32.mrf.mxu0  ;;  %v7071_v53 = vadd.f32 %v3397_v45, %v3341_v9  ;;  %v3156_v18 = vadd.f32 %v3146_v22, %v3062_v37  ;;  %v3236_v45 = vadd.f32 %v7061_v48, %v3150_v57  ;;  %v3676_v57 = vld [vmem:[#allocation23] sm:$0xff] }
 0x793   : > { %v3242_v2 = vadd.f32 %v3232_v28, %v3156_v18 }
 0x794   : > { %v3308_v59 = vpop.f32.mrf.mxu3 }
 0x795   : > { %v3330_v51 = vadd.f32 %v3308_v59, %v3236_v45  ;;  %v3400_v59 = vadd.f32 %v7063_v52, %v7069_v3  ;;  %v3428_v3 = vld [vmem:[#allocation6] sm:$0xff] }
 0x797   : > { %v3342_v26 = vadd.f32 %v7065_v44, %v3330_v51 }
 0x799   : > { %v7073_v61 = vpop.f32.mrf.mxu0 }
 0x79c   : > { %v3311_v7 = vpop.f32.mrf.mxu3 }
 0x79d   : > { %v3331_v9 = vadd.f32 %v3311_v7, %v3237_v32  ;;  %v3403_v7 = vadd.f32 %v7063_v52, %v7073_v61  ;;  %v3431_v61 = vld [vmem:[#allocation6 + $0x18] sm:$0xff] }
 0x79f   : > { %v3343_v48 = vadd.f32 %v7065_v44, %v3331_v9 }
 0x7a1   : > { %v3405_v58 = vpop.f32.mrf.mxu0 }
 0x7a2   : > { %v3406_v10 = vadd.f32 %v7063_v52, %v3405_v58  ;;  %v7113_v58 = vadd.f32 %v3403_v7, %v3343_v48 }
 0x7a4   : > { %v3314_v29 = vpop.f32.mrf.mxu3 }
 0x7a5   : > { %v3332_v49 = vadd.f32 %v3314_v29, %v3238_v25 }
 0x7a7   : > { %v3344_v4 = vadd.f32 %v7065_v44, %v3332_v49 }
 0x7a9   : > { %v3408_v1 = vpop.f32.mrf.mxu0 }
 0x7aa   : > { %v3409_v47 = vadd.f32 %v7063_v52, %v3408_v1  ;;  %v7110_v1 = vadd.f32 %v3406_v10, %v3344_v4 }
 0x7ac   : > { %v3317_v8 = vpop.f32.mrf.mxu3 }
 0x7ad   : > { %v3333_v42 = vadd.f32 %v3317_v8, %v3239_v0  ;;  %v7116_v8 = vadd.f32 %v3400_v59, %v3342_v26  ;;  %v3555_v0 = vld [vmem:[#allocation20 + $0x8] sm:$0xff] }
 0x7af   : > { %v3345_v30 = vadd.f32 %v7065_v44, %v3333_v42 }
 0x7b1   : > { %v3411_v43 = vpop.f32.mrf.mxu0  ;;  %v7104_v29 = vadd.f32 %v3409_v47, %v3345_v30 }
 0x7b2   : > { %v3412_v34 = vadd.f32 %v7063_v52, %v3411_v43 }
 0x7b4   : > { %v3320_v39 = vpop.f32.mrf.mxu3 }
 0x7b5   : > { %v3334_v54 = vadd.f32 %v3320_v39, %v3240_v16  ;;  %v3679_v16 = vld [vmem:[#allocation23 + $0x18] sm:$0xff] }
 0x7b6   : > { %3696 = vmatpush.msrb.mxu3 %v3679_v16 }
 0x7b7   : > { %v3346_v6 = vadd.f32 %v7065_v44, %v3334_v54  ;;  %v3628_v54 = vld [vmem:[#allocation21 + $0x8] sm:$0xff] }
 0x7b9   : > { %v3414_v5 = vpop.f32.mrf.mxu0  ;;  %v7098_v46 = vadd.f32 %v3412_v34, %v3346_v6 }
 0x7ba   : > { %v3415_v38 = vadd.f32 %v7063_v52, %v3414_v5 }
 0x7bc   : > { %v3323_v20 = vpop.f32.mrf.mxu3 }
 0x7bd   : > { %v3335_v21 = vadd.f32 %v3323_v20, %v3241_v19 }
 0x7bf   : > { %v3347_v24 = vadd.f32 %v7065_v44, %v3335_v21  ;;  %v3556_v21 = vld [vmem:[#allocation20 + $0x10] sm:$0xff] }
 0x7c1   : > { %v3417_v55 = vpop.f32.mrf.mxu0  ;;  %v7093_v36 = vadd.f32 %v3415_v38, %v3347_v24 }
 0x7c2   : > { %v3418_v62 = vadd.f32 %v7063_v52, %v3417_v55  ;;  %v3430_v52 = vld [vmem:[#allocation6 + $0x10] sm:$0xff] }
 0x7c3   : > { %v3630_v55 = vld [vmem:[#allocation21 + $0x18] sm:$0xff] }
 0x7c4   : > { %v3326_v11 = vpop.f32.mrf.mxu3  ;;  %3647 = vmatpush.msra.mxu1 %v3630_v55 }
 0x7c5   : > { %v3336_v23 = vadd.f32 %v3326_v11, %v3242_v2  ;;  %v3557_v2 = vld [vmem:[#allocation20 + $0x18] sm:$0xff]  ;;  %v3678_v11 = vld [vmem:[#allocation23 + $0x10] sm:$0xff] }
 0x7c6   : > { %3648 = vmatpush.msra.mxu1 %v3629_v50  ;;  %3697 = vmatpush.msrb.mxu3 %v3678_v11 }
 0x7c7   : > { %v3348_v27 = vadd.f32 %v7065_v44, %v3336_v23  ;;  %v3429_v44 = vld [vmem:[#allocation6 + $0x8] sm:$0xff]  ;;  %v3554_v23 = vld [vmem:[#allocation20] sm:$0xff] }
 0x7c8   : > { %3649 = vmatpush.msra.mxu1 %v3628_v54 }
 0x7c9   : > { %v7088_v40 = vadd.f32 %v3418_v62, %v3348_v27  ;;  %v3627_v62 = vld [vmem:[#allocation21] sm:$0xff] }
 0x7ca   : > { %3650 = vmatpush.msra.mxu1 %v3627_v62 }
 0x7cb   : > { %3440 = vmatpush.msrb.mxu2 %v7088_v40 }
 0x7cd   : > { %3441 = vmatpush.msrb.mxu2 %v7093_v36 }
 0x7cf   : > { %3442 = vmatpush.msrb.mxu2 %v7098_v46 }
 0x7d1   : > { %3443 = vmatpush.msrb.mxu2 %v7104_v29 }
 0x7d3   : > { %3444 = vmatpush.msrb.mxu2 %v7110_v1 }
 0x7d5   : > { %3445 = vmatpush.msrb.mxu2 %v7113_v58 }
 0x7d7   : > { %3446 = vmatpush.msrb.mxu2 %v7116_v8 }
 0x7d9   : > { %3447 = vmatpush.msrb.mxu2 %v7071_v53 }
 0x7da   : > { %4610 = vmatmul.msk.f32.vlgmr.msrb.gmra.mxu2 %vm7589_vm8, %v7475_v14  ;;  %vm7601_vm8 = vmmov %vm7587_vm1 }
 0x7db   : > { %3467 = vmatpush.msra.mxu2 %v3431_v61 }
 0x7dd   : > { %3468 = vmatpush.msra.mxu2 %v3430_v52 }
 0x7df   : > { %3469 = vmatpush.msra.mxu2 %v3429_v44 }
 0x7e1   : > { %3470 = vmatpush.msra.mxu2 %v3428_v3 }
 0x85d   : > { %v3449_v41 = vpop.f32.mrf.mxu2 }
 0x85e   : > { %4611 = vmatmul.msk.f32.vlgmr.msra.gmra.mxu2 %vm7590_vm10, %v3449_v41  ;;  %vm7602_vm10 = vmmov %vm7587_vm1 }
 0x8e1   : > { %v3472_v43 = vpop.f32.mrf.mxu2 }
 0x8e2   : > { %v3475_v31 = vperm.slane %v3472_v43, 0 }
 0x8e4   : > { %v7125_v13 = vsub.f32 %v7088_v40, %v3475_v31  ;;  %v7128_v33 = vsub.f32 %v7093_v36, %v3475_v31  ;;  %v7133_v60 = vsub.f32 %v7098_v46, %v3475_v31  ;;  %v7138_v5 = vsub.f32 %v7104_v29, %v3475_v31 }
 0x8e5   : > { %v7143_v22 = vsub.f32 %v7110_v1, %v3475_v31  ;;  %v7148_v56 = vsub.f32 %v7113_v58, %v3475_v31  ;;  %v3477_v12 = vsub.f32 %v7116_v8, %v3475_v31  ;;  %v3476_v28 = vsub.f32 %v7071_v53, %v3475_v31 }
 0x8e6   : > { %v3491_v39 = vmul.f32 %v7125_v13, %v7125_v13  ;;  %v3490_v63 = vmul.f32 %v7128_v33, %v7128_v33  ;;  %v3489_v15 = vmul.f32 %v7133_v60, %v7133_v60  ;;  %v3488_v20 = vmul.f32 %v7138_v5, %v7138_v5 }
 0x8e7   : > { %v3487_v37 = vmul.f32 %v7143_v22, %v7143_v22  ;;  %v3486_v18 = vmul.f32 %v7148_v56, %v7148_v56  ;;  %v3485_v17 = vmul.f32 %v3477_v12, %v3477_v12  ;;  %v3484_v19 = vmul.f32 %v3476_v28, %v3476_v28 }
 0x8e8   : > { %3500 = vmatpush.msrb.mxu2 %v3491_v39 }
 0x8ea   : > { %3501 = vmatpush.msrb.mxu2 %v3490_v63 }
 0x8ec   : > { %3502 = vmatpush.msrb.mxu2 %v3489_v15 }
 0x8ee   : > { %3503 = vmatpush.msrb.mxu2 %v3488_v20 }
 0x8f0   : > { %3504 = vmatpush.msrb.mxu2 %v3487_v37 }
 0x8f2   : > { %3505 = vmatpush.msrb.mxu2 %v3486_v18 }
 0x8f4   : > { %3506 = vmatpush.msrb.mxu2 %v3485_v17 }
 0x8f6   : > { %3507 = vmatpush.msrb.mxu2 %v3484_v19 }
 0x8f7   : > { %4612 = vmatmul.msk.f32.vlgmr.msrb.gmra.mxu2 %vm7591_vm0, %v7475_v14  ;;  %v3677_v14 = vld [vmem:[#allocation23 + $0x8] sm:$0xff]  ;;  %vm7603_vm0 = vmmov %vm7587_vm1 }
 0x8f8   : > { %3527 = vmatpush.msra.mxu2 %v3431_v61  ;;  %3698 = vmatpush.msrb.mxu3 %v3677_v14 }
 0x8fa   : > { %3528 = vmatpush.msra.mxu2 %v3430_v52  ;;  %3699 = vmatpush.msrb.mxu3 %v3676_v57 }
 0x8fc   : > { %3529 = vmatpush.msra.mxu2 %v3429_v44 }
 0x8fe   : > { %3530 = vmatpush.msra.mxu2 %v3428_v3 }
 0x900   : > { %3598 = vmatpush.msrb.mxu2 %v3557_v2 }
 0x902   : > { %3599 = vmatpush.msrb.mxu2 %v3556_v21 }
 0x904   : > { %3600 = vmatpush.msrb.mxu2 %v3555_v0 }
 0x906   : > { %3601 = vmatpush.msrb.mxu2 %v3554_v23  ;;  %v4878_v23 = vld [vmem:[#allocation24] ss:$0 sm:$0xff] }
 0x97a   : > { %v3509_v35 = vpop.f32.mrf.mxu2 }
 0x97b   : > { %4613 = vmatmul.msk.f32.vlgmr.msra.gmra.mxu2 %vm7592_vm6, %v3509_v35  ;;  %vm7604_vm6 = vmmov %vm7603_vm0 }
 0x9fe   : > { %v3532_v25 = vpop.f32.mrf.mxu2 }
 0x9ff   : > { %v3533_v42 = vadd.f32 1e-05, %v3532_v25 }
 0xa01   : > { %4949 = vrsqrt.f32 %v3533_v42  ;;  %vm3541_vm9 = vweird.f32 %v3533_v42 }
 0xa07   : > { %v4950_v24 = vpop.eup %4949 }
 0xa08   : > { %v3536_v38 = vmul.f32 %v4950_v24, %v3533_v42  ;;  %vm3542_vm11 = vweird.f32 %v4950_v24 }
 0xa09   : > { %vm3543_vm12 = vmor %vm3541_vm9, %vm3542_vm11 }
 0xa0a   : > { %v3537_v27 = vmul.f32 %v4950_v24, %v3536_v38  ;;  %vm7605_vm11 = vmmov %vm7603_vm0 }
 0xa0b   : > { %vm7606_vm9 = vmmov %vm7603_vm0 }
 0xa0c   : > { %v3538_v32 = vmul.f32 0.5, %v3537_v27 }
 0xa0e   : > { %v3539_v49 = vsub.f32 1.5, %v3538_v32 }
 0xa10   : > { %v3540_v6 = vmul.f32 %v4950_v24, %v3539_v49 }
 0xa12   : > { %v3544_v34 = vsel %vm3543_vm12, %v4950_v24, %v3540_v6  ;;  %vm7607_vm12 = vmmov %vm7603_vm0 }
 0xa13   : > { %v3545_v45 = vperm.slane %v3544_v34, 0 }
 0xa15   : > { %v3546_v9 = vmul.f32 %v3545_v45, %v3476_v28  ;;  %v3547_v30 = vmul.f32 %v3545_v45, %v3477_v12  ;;  %v3548_v47 = vmul.f32 %v3545_v45, %v7148_v56  ;;  %v3549_v51 = vmul.f32 %v3545_v45, %v7143_v22  ;;  %v4879_v56 = vld [vmem:[#allocation27] ss:$0 sm:$0xff] }
 0xa16   : > { %v3550_v4 = vmul.f32 %v3545_v45, %v7138_v5  ;;  %v3551_v10 = vmul.f32 %v3545_v45, %v7133_v60  ;;  %v3552_v48 = vmul.f32 %v3545_v45, %v7128_v33  ;;  %v3553_v7 = vmul.f32 %v3545_v45, %v7125_v13  ;;  %v4877_v13 = vld [vmem:[#allocation26] ss:$0 sm:$0xff] }
 0xa17   : > { %4614 = vmatmul.msk.f32.vlgmr.msrb.gmra.mxu2 %vm7593_vm13, %v3546_v9  ;;  %4622 = vmatmul.msk.f32.vlgmr.msra.gmra.mxu1 %vm7594_vm14, %v3546_v9  ;;  %vm7608_vm13 = vmmov %vm7603_vm0 }
 0xa18   : > { %4630 = vmatmul.msk.f32.vlgmr.msrb.gmra.mxu3 %vm7595_vm15, %v3546_v9  ;;  %vm7609_vm14 = vmmov %vm7603_vm0 }
 0xa19   : > { %vm7610_vm15 = vmmov %vm7603_vm0 }
 0xa1f   : > { %4615 = vmatmul.msk.f32.gmra.mxu2 %vm7596_vm2, %v3547_v30  ;;  %4623 = vmatmul.msk.f32.gmra.mxu1 %vm7597_vm3, %v3547_v30  ;;  %vm7611_vm2 = vmmov %vm7603_vm0 }
 0xa20   : > { %4631 = vmatmul.msk.f32.gmra.mxu3 %vm7598_vm4, %v3547_v30  ;;  %vm7612_vm3 = vmmov %vm7603_vm0 }
 0xa21   : > { %vm7613_vm4 = vmmov %vm7603_vm0 }
 0xa27   : > { %4616 = vmatmul.msk.f32.gmra.mxu2 %vm7599_vm5, %v3548_v47  ;;  %4624 = vmatmul.msk.f32.gmra.mxu1 %vm7587_vm1, %v3548_v47  ;;  %vm7614_vm5 = vmmov %vm7603_vm0 }
 0xa28   : > { %4632 = vmatmul.msk.f32.gmra.mxu3 %vm7600_vm7, %v3548_v47  ;;  %vm7615_vm1 = vmmov %vm7603_vm0 }
 0xa29   : > { %vm7616_vm7 = vmmov %vm7603_vm0 }
 0xa2f   : > { %4617 = vmatmul.msk.f32.gmra.mxu2 %vm7601_vm8, %v3549_v51  ;;  %4625 = vmatmul.msk.f32.gmra.mxu1 %vm7602_vm10, %v3549_v51  ;;  %vm7617_vm8 = vmmov %vm7603_vm0 }
 0xa30   : > { %4633 = vmatmul.msk.f32.gmra.mxu3 %vm7603_vm0, %v3549_v51  ;;  %vm7618_vm10 = vmmov %vm7603_vm0 }
 0xa37   : > { %4618 = vmatmul.msk.f32.gmra.mxu2 %vm7604_vm6, %v3550_v4  ;;  %4626 = vmatmul.msk.f32.gmra.mxu1 %vm7605_vm11, %v3550_v4  ;;  %vm7619_vm6 = vmmov %vm7603_vm0 }
 0xa38   : > { %4634 = vmatmul.msk.f32.gmra.mxu3 %vm7606_vm9, %v3550_v4  ;;  %vm7620_vm11 = vmmov %vm7603_vm0 }
 0xa39   : > { %vm7621_vm9 = vmmov %vm7603_vm0 }
 0xa3f   : > { %4619 = vmatmul.msk.f32.gmra.mxu2 %vm7607_vm12, %v3551_v10  ;;  %4627 = vmatmul.msk.f32.gmra.mxu1 %vm7608_vm13, %v3551_v10  ;;  %vm7622_vm12 = vmmov %vm7603_vm0 }
 0xa40   : > { %4635 = vmatmul.msk.f32.gmra.mxu3 %vm7609_vm14, %v3551_v10  ;;  %vm7623_vm13 = vmmov %vm7603_vm0 }
 0xa41   : > { %vm7624_vm14 = vmmov %vm7603_vm0 }
 0xa47   : > { %4620 = vmatmul.msk.f32.gmra.mxu2 %vm7610_vm15, %v3552_v48  ;;  %4628 = vmatmul.msk.f32.gmra.mxu1 %vm7611_vm2, %v3552_v48  ;;  %vm7625_vm15 = vmmov %vm7603_vm0 }
 0xa48   : > { %4636 = vmatmul.msk.f32.gmra.mxu3 %vm7612_vm3, %v3552_v48  ;;  %vm7626_vm2 = vmmov %vm7603_vm0 }
 0xa49   : > { %vm7627_vm3 = vmmov %vm7603_vm0 }
 0xa4f   : > { %4621 = vmatmul.msk.f32.gmra.mxu2 %vm7613_vm4, %v3553_v7  ;;  %4629 = vmatmul.msk.f32.gmra.mxu1 %vm7614_vm5, %v3553_v7  ;;  %vm7628_vm4 = vmmov %vm7603_vm0 }
 0xa50   : > { %4637 = vmatmul.msk.f32.gmra.mxu3 %vm7615_vm1, %v3553_v7  ;;  %vm7629_vm5 = vmmov %vm7603_vm0 }
 0xa51   : > { %vm7630_vm1 = vmmov %vm7603_vm0 }
 0xa94   : > { %v3652_v26 = vpop.f32.mrf.mxu1 }
 0xa95   : > { %v3653_v62 = vadd.f32 %v4877_v13, %v3652_v26 }
 0xa9a   : > { %v3603_v55 = vpop.f32.mrf.mxu2 }
 0xa9b   : > { %v3701_v59 = vpop.f32.mrf.mxu3  ;;  %v3604_v57 = vadd.f32 %v4878_v23, %v3603_v55 }
 0xa9c   : > { %v3655_v61 = vpop.f32.mrf.mxu1  ;;  %v3702_v0 = vadd.f32 %v4879_v56, %v3701_v59 }
 0xa9d   : > { %v3656_v54 = vadd.f32 %v4877_v13, %v3655_v61 }
 0xaa2   : > { %v3606_v14 = vpop.f32.mrf.mxu2 }
 0xaa3   : > { %v3704_v52 = vpop.f32.mrf.mxu3  ;;  %v3607_v42 = vadd.f32 %v4878_v23, %v3606_v14 }
 0xaa4   : > { %v3658_v44 = vpop.f32.mrf.mxu1  ;;  %v3705_v50 = vadd.f32 %v4879_v56, %v3704_v52 }
 0xaa5   : > { %v3659_v11 = vadd.f32 %v4877_v13, %v3658_v44 }
 0xaaa   : > { %v3609_v25 = vpop.f32.mrf.mxu2 }
 0xaab   : > { %v3707_v3 = vpop.f32.mrf.mxu3  ;;  %v3610_v38 = vadd.f32 %v4878_v23, %v3609_v25 }
 0xaac   : > { %v3661_v41 = vpop.f32.mrf.mxu1  ;;  %v3708_v21 = vadd.f32 %v4879_v56, %v3707_v3 }
 0xaad   : > { %v3662_v16 = vadd.f32 %v4877_v13, %v3661_v41 }
 0xab2   : > { %v3612_v24 = vpop.f32.mrf.mxu2 }
 0xab3   : > { %v3710_v43 = vpop.f32.mrf.mxu3  ;;  %v3613_v32 = vadd.f32 %v4878_v23, %v3612_v24 }
 0xab4   : > { %v3664_v31 = vpop.f32.mrf.mxu1  ;;  %v3711_v2 = vadd.f32 %v4879_v56, %v3710_v43 }
 0xab5   : > { %v3665_v19 = vadd.f32 %v4877_v13, %v3664_v31 }
 0xaba   : > { %v3615_v27 = vpop.f32.mrf.mxu2 }
 0xabb   : > { %v3713_v33 = vpop.f32.mrf.mxu3  ;;  %v3616_v49 = vadd.f32 %v4878_v23, %v3615_v27 }
 0xabc   : > { %v3667_v39 = vpop.f32.mrf.mxu1  ;;  %v3714_v35 = vadd.f32 %v4879_v56, %v3713_v33 }
 0xabd   : > { %v3668_v18 = vadd.f32 %v4877_v13, %v3667_v39 }
 0xac2   : > { %v3618_v6 = vpop.f32.mrf.mxu2 }
 0xac3   : > { %v3716_v60 = vpop.f32.mrf.mxu3  ;;  %v3619_v34 = vadd.f32 %v4878_v23, %v3618_v6 }
 0xac4   : > { %v3670_v63 = vpop.f32.mrf.mxu1  ;;  %v3717_v17 = vadd.f32 %v4879_v56, %v3716_v60 }
 0xac5   : > { %v3671_v20 = vadd.f32 %v4877_v13, %v3670_v63 }
 0xaca   : > { %v3621_v45 = vpop.f32.mrf.mxu2 }
 0xacb   : > { %v3719_v5 = vpop.f32.mrf.mxu3  ;;  %v3622_v9 = vadd.f32 %v4878_v23, %v3621_v45 }
 0xacc   : > { %v3673_v15 = vpop.f32.mrf.mxu1  ;;  %v3720_v28 = vadd.f32 %v4879_v56, %v3719_v5 }
 0xacd   : > { %v3674_v22 = vadd.f32 %v4877_v13, %v3673_v15 }
 0xacf   : > { %4638 = vmatpush.xpose.msk.msra.mxu0 %vm7616_vm7, %v3674_v22  ;;  %vm7631_vm7 = vcmask 523264  }
 0xad2   : > { %v3624_v30 = vpop.f32.mrf.mxu2 }
 0xad3   : > { %v3722_v37 = vpop.f32.mrf.mxu3  ;;  %4639 = vmatpush.xpose.msk.msra.mxu0 %vm7617_vm8, %v3671_v20  ;;  %v3625_v47 = vadd.f32 %v4878_v23, %v3624_v30  ;;  %vm7632_vm8 = vmmov %vm7631_vm7 }
 0xad4   : > { %v3723_v12 = vadd.f32 %v4879_v56, %v3722_v37 }
 0xad6   : > { %4038 = vmatpush.msra.mxu2 %v3723_v12 }
 0xad7   : > { %4640 = vmatpush.xpose.msk.msra.mxu0 %vm7618_vm10, %v3668_v18  ;;  %vm7633_vm10 = vmmov %vm7631_vm7 }
 0xad8   : > { %4039 = vmatpush.msra.mxu2 %v3720_v28 }
 0xada   : > { %4040 = vmatpush.msra.mxu2 %v3717_v17 }
 0xadb   : > { %4641 = vmatpush.xpose.msk.msra.mxu0 %vm7603_vm0, %v3665_v19  ;;  %vm7634_vm0 = vmmov %vm7631_vm7 }
 0xadc   : > { %4041 = vmatpush.msra.mxu2 %v3714_v35 }
 0xade   : > { %4042 = vmatpush.msra.mxu2 %v3711_v2 }
 0xadf   : > { %4642 = vmatpush.xpose.msk.msra.mxu0 %vm7619_vm6, %v3662_v16  ;;  %vm7635_vm6 = vmmov %vm7634_vm0 }
 0xae0   : > { %4043 = vmatpush.msra.mxu2 %v3708_v21 }
 0xae2   : > { %4044 = vmatpush.msra.mxu2 %v3705_v50 }
 0xae3   : > { %4643 = vmatpush.xpose.msk.msra.mxu0 %vm7620_vm11, %v3659_v11  ;;  %vm7636_vm11 = vmmov %vm7634_vm0 }
 0xae4   : > { %4045 = vmatpush.msra.mxu2 %v3702_v0 }
 0xae7   : > { %4644 = vmatpush.xpose.msk.msra.mxu0 %vm7621_vm9, %v3656_v54  ;;  %vm7637_vm9 = vmmov %vm7634_vm0 }
 0xaeb   : > { %4645 = vmatpush.xpose.msk.msra.mxu0 %vm7622_vm12, %v3653_v62  ;;  %vm7638_vm12 = vmmov %vm7634_vm0 }
 0xaee   : > { %4646 = vmatmul.msk.f32.vlgmr.msra.gmra.mxu0 %vm7623_vm13, %v3604_v57  ;;  %vm7639_vm13 = vmmov %vm7634_vm0 }
 0xaf6   : > { %4647 = vmatmul.msk.f32.gmra.mxu0 %vm7624_vm14, %v3607_v42  ;;  %vm7640_vm14 = vmmov %vm7634_vm0 }
 0xafe   : > { %4648 = vmatmul.msk.f32.gmra.mxu0 %vm7625_vm15, %v3610_v38  ;;  %vm7641_vm15 = vmmov %vm7634_vm0 }
 0xb06   : > { %4649 = vmatmul.msk.f32.gmra.mxu0 %vm7626_vm2, %v3613_v32  ;;  %vm7642_vm2 = vmmov %vm7634_vm0 }
 0xb0e   : > { %4650 = vmatmul.msk.f32.gmra.mxu0 %vm7627_vm3, %v3616_v49  ;;  %vm7643_vm3 = vmmov %vm7634_vm0 }
 0xb16   : > { %4651 = vmatmul.msk.f32.gmra.mxu0 %vm7628_vm4, %v3619_v34  ;;  %vm7644_vm4 = vmmov %vm7634_vm0 }
 0xb1e   : > { %4652 = vmatmul.msk.f32.gmra.mxu0 %vm7629_vm5, %v3622_v9  ;;  %vm7645_vm5 = vmmov %vm7634_vm0 }
 0xb26   : > { %4653 = vmatmul.msk.f32.gmra.mxu0 %vm7630_vm1, %v3625_v47  ;;  %vm7646_vm1 = vmmov %vm7634_vm0 }
 0xb6b   : > { %v3790_v51 = vpop.f32.mrf.mxu0 }
 0xb6c   : > { %v3814_v4 = vsel %vm7631_vm7, %v3790_v51, -inf }
 0xb6d   : > { %3815 = vmax.xlane.f32.xlu0 %v3814_v4 }
 0xb73   : > { %v3793_v10 = vpop.f32.mrf.mxu0 }
 0xb74   : > { %v3817_v48 = vsel %vm7632_vm8, %v3793_v10, -inf }
 0xb75   : > { %3818 = vmax.xlane.f32.xlu0 %v3817_v48 }
 0xb7b   : > { %v3796_v7 = vpop.f32.mrf.mxu0 }
 0xb7c   : > { %v3820_v26 = vsel %vm7633_vm10, %v3796_v7, -inf }
 0xb7d   : > { %3821 = vmax.xlane.f32.xlu1 %v3820_v26 }
 0xb83   : > { %v3799_v59 = vpop.f32.mrf.mxu0 }
 0xb84   : > { %v3823_v61 = vsel %vm7634_vm0, %v3799_v59, -inf }
 0xb85   : > { %3824 = vmax.xlane.f32.xlu1 %v3823_v61 }
 0xb8b   : > { %v3802_v52 = vpop.f32.mrf.mxu0 }
 0xb8c   : > { %v3826_v44 = vsel %vm7635_vm6, %v3802_v52, -inf }
 0xb8d   : > { %3827 = vmax.xlane.f32.xlu2 %v3826_v44 }
 0xb93   : > { %v3805_v3 = vpop.f32.mrf.mxu0 }
 0xb94   : > { %v3829_v41 = vsel %vm7636_vm11, %v3805_v3, -inf  ;;  %vm7647_vm11 = vmmov %vm7646_vm1 }
 0xb95   : > { %3830 = vmax.xlane.f32.xlu2 %v3829_v41 }
 0xb9b   : > { %v3808_v43 = vpop.f32.mrf.mxu0 }
 0xb9c   : > { %v3832_v31 = vsel %vm7637_vm9, %v3808_v43, -inf }
 0xb9d   : > { %3833 = vmax.xlane.f32.xlu0 %v3832_v31 }
 0xba3   : > { %v3811_v33 = vpop.f32.mrf.mxu0 }
 0xba4   : > { %v3835_v39 = vsel %vm7638_vm12, %v3811_v33, -inf }
 0xba5   : > { %3836 = vmax.xlane.f32.xlu2 %v3835_v39 }
 0xbe0   : > { %v3816_v60 = vpop.xlane.xlu0 %3815 }
 0xbe1   : > { %v3838_v63 = vsub.f32 %v3790_v51, %v3816_v60 }
 0xbe3   : > { %v3846_v13 = vmul.f32 1.442695, %v3838_v63 }
 0xbe5   : > { %4951 = vpow2.f32 %v3846_v13 }
 0xbe8   : > { %v3819_v5 = vpop.xlane.xlu0 %3818 }
 0xbe9   : > { %v3839_v15 = vsub.f32 %v3793_v10, %v3819_v5 }
 0xbeb   : > { %v7213_v22 = vpop.eup %4951  ;;  %v3848_v20 = vmul.f32 1.442695, %v3839_v15 }
 0xbec   : > { %v3862_v56 = vsel %vm7639_vm13, %v7213_v22, 0.0 }
 0xbed   : > { %4953 = vpow2.f32 %v3848_v20  ;;  %3863 = vadd.xlane.f32.xlu1 %v3862_v56 }
 0xbf0   : > { %v3822_v37 = vpop.xlane.xlu1 %3821 }
 0xbf1   : > { %v3840_v12 = vsub.f32 %v3796_v7, %v3822_v37 }
 0xbf3   : > { %v7217_v18 = vpop.eup %4953  ;;  %v3850_v28 = vmul.f32 1.442695, %v3840_v12 }
 0xbf4   : > { %v3865_v17 = vsel %vm7640_vm14, %v7217_v18, 0.0 }
 0xbf5   : > { %4955 = vpow2.f32 %v3850_v28  ;;  %3866 = vadd.xlane.f32.xlu0 %v3865_v17 }
 0xbf8   : > { %v3825_v19 = vpop.xlane.xlu1 %3824 }
 0xbf9   : > { %v3841_v35 = vsub.f32 %v3799_v59, %v3825_v19 }
 0xbfb   : > { %v7221_v55 = vpop.eup %4955  ;;  %v3852_v2 = vmul.f32 1.442695, %v3841_v35 }
 0xbfc   : > { %v3868_v16 = vsel %vm7641_vm15, %v7221_v55, 0.0  ;;  %vm7648_vm15 = vmmov %vm7646_vm1 }
 0xbfd   : > { %4957 = vpow2.f32 %v3852_v2  ;;  %3869 = vadd.xlane.f32.xlu1 %v3868_v16 }
 0xc00   : > { %v3828_v21 = vpop.xlane.xlu2 %3827 }
 0xc01   : > { %v3842_v50 = vsub.f32 %v3802_v52, %v3828_v21 }
 0xc03   : > { %v7225_v11 = vpop.eup %4957  ;;  %v3854_v0 = vmul.f32 1.442695, %v3842_v50 }
 0xc04   : > { %v3871_v54 = vsel %vm7642_vm2, %v7225_v11, 0.0 }
 0xc05   : > { %4959 = vpow2.f32 %v3854_v0  ;;  %3872 = vadd.xlane.f32.xlu2 %v3871_v54 }
 0xc08   : > { %v3831_v14 = vpop.xlane.xlu2 %3830 }
 0xc09   : > { %v3843_v23 = vsub.f32 %v3805_v3, %v3831_v14 }
 0xc0b   : > { %v7229_v62 = vpop.eup %4959  ;;  %v3856_v57 = vmul.f32 1.442695, %v3843_v23 }
 0xc0c   : > { %v3874_v25 = vsel %vm7643_vm3, %v7229_v62, 0.0 }
 0xc0d   : > { %4961 = vpow2.f32 %v3856_v57  ;;  %3875 = vadd.xlane.f32.xlu0 %v3874_v25 }
 0xc10   : > { %v3834_v42 = vpop.xlane.xlu0 %3833 }
 0xc11   : > { %v3844_v24 = vsub.f32 %v3808_v43, %v3834_v42 }
 0xc13   : > { %v7233_v38 = vpop.eup %4961  ;;  %v3858_v27 = vmul.f32 1.442695, %v3844_v24 }
 0xc14   : > { %v3877_v32 = vsel %vm7644_vm4, %v7233_v38, 0.0 }
 0xc15   : > { %4963 = vpow2.f32 %v3858_v27  ;;  %3878 = vadd.xlane.f32.xlu1 %v3877_v32 }
 0xc18   : > { %v3837_v49 = vpop.xlane.xlu2 %3836 }
 0xc19   : > { %v3845_v6 = vsub.f32 %v3811_v33, %v3837_v49 }
 0xc1b   : > { %v7237_v34 = vpop.eup %4963  ;;  %v3860_v45 = vmul.f32 1.442695, %v3845_v6 }
 0xc1c   : > { %v3880_v9 = vsel %vm7645_vm5, %v7237_v34, 0.0 }
 0xc1d   : > { %4965 = vpow2.f32 %v3860_v45  ;;  %3881 = vadd.xlane.f32.xlu2 %v3880_v9 }
 0xc23   : > { %v7241_v30 = vpop.eup %4965 }
 0xc24   : > { %v3883_v47 = vsel %vm7646_vm1, %v7241_v30, 0.0 }
 0xc25   : > { %3884 = vadd.xlane.f32.xlu0 %v3883_v47 }
 0xc60   : > { %v3864_v51 = vpop.xlane.xlu1 %3863 }
 0xc61   : > { %4967 = vrcp.f32 %v3864_v51  ;;  %v3897_v26 = vand.u32 2147483648, %v3864_v51  ;;  %v3895_v61 = vand.u32 2147483647, %v3864_v51  ;;  %vm3891_vm8 = vweird.f32 %v3864_v51 }
 0xc63   : > { %v3898_v3 = vor.u32 1.1754944e-38, %v3897_v26  ;;  %vm3896_vm0 = vcmp.eq.f32.partialorder %v3895_v61, 8.507059e+37  ;;  %v4074_v26 = vld [vmem:[%s7650_s8 + $0x18] sm:$0xff] }
 0xc64   : > { %4115 = vmatpush.msrb.mxu1 %v4074_v26 }
 0xc67   : > { %v4968_v4 = vpop.eup %4967 }
 0xc68   : > { %v3887_v10 = vmul.f32 %v4968_v4, %v3864_v51  ;;  %v3867_v48 = vpop.xlane.xlu0 %3866  ;;  %vm3892_vm7 = vweird.f32 %v4968_v4 }
 0xc69   : > { %4969 = vrcp.f32 %v3867_v48  ;;  %vm3893_vm10 = vmor %vm3891_vm8, %vm3892_vm7  ;;  %v3912_v13 = vand.u32 2147483648, %v3867_v48  ;;  %v3910_v5 = vand.u32 2147483647, %v3867_v48  ;;  %vm3906_vm9 = vweird.f32 %v3867_v48 }
 0xc6a   : > { %v3888_v7 = vsub.f32 1.0, %v3887_v10 }
 0xc6b   : > { %v3913_v56 = vor.u32 1.1754944e-38, %v3912_v13  ;;  %vm3911_vm13 = vcmp.eq.f32.partialorder %v3910_v5, 8.507059e+37 }
 0xc6c   : > { %v3889_v59 = vmul.f32 %v4968_v4, %v3888_v7 }
 0xc6e   : > { %v3890_v52 = vadd.f32 %v4968_v4, %v3889_v59  ;;  %v4073_v59 = vld [vmem:[%s7650_s8 + $0x10] sm:$0xff] }
 0xc6f   : > { %v4970_v44 = vpop.eup %4969  ;;  %4116 = vmatpush.msrb.mxu1 %v4073_v59 }
 0xc70   : > { %v3894_v41 = vsel %vm3893_vm10, %v4968_v4, %v3890_v52  ;;  %v3902_v43 = vmul.f32 %v4970_v44, %v3867_v48  ;;  %v3870_v31 = vpop.xlane.xlu1 %3869  ;;  %vm3907_vm6 = vweird.f32 %v4970_v44 }
 0xc71   : > { %v3899_v33 = vsel %vm3896_vm0, %v3898_v3, %v3894_v41  ;;  %4971 = vrcp.f32 %v3870_v31  ;;  %vm3908_vm12 = vmor %vm3906_vm9, %vm3907_vm6  ;;  %v3927_v2 = vand.u32 2147483648, %v3870_v31  ;;  %v3925_v16 = vand.u32 2147483647, %v3870_v31 }
 0xc72   : > { %v3900_v39 = vmul.f32 %v7213_v22, %v3899_v33  ;;  %v3903_v60 = vsub.f32 1.0, %v3902_v43  ;;  %vm3921_vm2 = vweird.f32 %v3870_v31  ;;  %vm7649_vm6 = vmmov %vm7646_vm1 }
 0xc73   : > { %v3928_v0 = vor.u32 1.1754944e-38, %v3927_v2  ;;  %vm3926_vm4 = vcmp.eq.f32.partialorder %v3925_v16, 8.507059e+37 }
 0xc74   : > { %v3904_v63 = vmul.f32 %v4970_v44, %v3903_v60  ;;  %4654 = vmatmul.msk.f32.vlgmr.msra.gmra.mxu2 %vm7647_vm11, %v3900_v39 }
 0xc76   : > { %v3905_v15 = vadd.f32 %v4970_v44, %v3904_v63 }
 0xc77   : > { %v4972_v20 = vpop.eup %4971 }
 0xc78   : > { %v3917_v37 = vmul.f32 %v4972_v20, %v3870_v31  ;;  %v3873_v12 = vpop.xlane.xlu2 %3872  ;;  %v3909_v28 = vsel %vm3908_vm12, %v4970_v44, %v3905_v15  ;;  %vm3922_vm14 = vweird.f32 %v4972_v20 }
 0xc79   : > { %4973 = vrcp.f32 %v3873_v12  ;;  %v3914_v19 = vsel %vm3911_vm13, %v3913_v56, %v3909_v28  ;;  %vm3923_vm3 = vmor %vm3921_vm2, %vm3922_vm14  ;;  %v3942_v24 = vand.u32 2147483648, %v3873_v12  ;;  %v3940_v27 = vand.u32 2147483647, %v3873_v12 }
 0xc7a   : > { %v3918_v17 = vsub.f32 1.0, %v3917_v37  ;;  %v3915_v22 = vmul.f32 %v7217_v18, %v3914_v19  ;;  %vm3936_vm7 = vweird.f32 %v3873_v12  ;;  %vm7651_vm14 = vmmov %vm7646_vm1 }
 0xc7b   : > { %v3943_v6 = vor.u32 1.1754944e-38, %v3942_v24  ;;  %vm3941_vm10 = vcmp.eq.f32.partialorder %v3940_v27, 8.507059e+37 }
 0xc7c   : > { %v3919_v35 = vmul.f32 %v4972_v20, %v3918_v17  ;;  %4655 = vmatmul.msk.f32.gmra.mxu2 %vm7648_vm15, %v3915_v22 }
 0xc7e   : > { %v3920_v21 = vadd.f32 %v4972_v20, %v3919_v35 }
 0xc7f   : > { %v4974_v50 = vpop.eup %4973 }
 0xc80   : > { %v3932_v54 = vmul.f32 %v4974_v50, %v3873_v12  ;;  %v3876_v14 = vpop.xlane.xlu0 %3875  ;;  %v3924_v23 = vsel %vm3923_vm3, %v4972_v20, %v3920_v21  ;;  %vm3937_vm5 = vweird.f32 %v4974_v50 }
 0xc81   : > { %4975 = vrcp.f32 %v3876_v14  ;;  %v3929_v25 = vsel %vm3926_vm4, %v3928_v0, %v3924_v23  ;;  %vm3938_vm8 = vmor %vm3936_vm7, %vm3937_vm5  ;;  %v3957_v48 = vand.u32 2147483648, %v3876_v14  ;;  %v3955_v7 = vand.u32 2147483647, %v3876_v14 }
 0xc82   : > { %v3933_v57 = vsub.f32 1.0, %v3932_v54  ;;  %v3930_v18 = vmul.f32 %v7221_v55, %v3929_v25  ;;  %vm3951_vm11 = vweird.f32 %v3876_v14  ;;  %vm7652_vm5 = vmmov %vm7646_vm1 }
 0xc83   : > { %v3958_v44 = vor.u32 1.1754944e-38, %v3957_v48  ;;  %vm3956_vm12 = vcmp.eq.f32.partialorder %v3955_v7, 8.507059e+37 }
 0xc84   : > { %v3934_v42 = vmul.f32 %v4974_v50, %v3933_v57  ;;  %4656 = vmatmul.msk.f32.gmra.mxu2 %vm7646_vm1, %v3930_v18 }
 0xc86   : > { %v3935_v32 = vadd.f32 %v4974_v50, %v3934_v42 }
 0xc87   : > { %v4976_v49 = vpop.eup %4975 }
 0xc88   : > { %v3947_v45 = vmul.f32 %v4976_v49, %v3876_v14  ;;  %v3879_v9 = vpop.xlane.xlu1 %3878  ;;  %v3939_v47 = vsel %vm3938_vm8, %v4974_v50, %v3935_v32  ;;  %vm3952_vm0 = vweird.f32 %v4976_v49 }
 0xc89   : > { %4977 = vrcp.f32 %v3879_v9  ;;  %v3944_v4 = vsel %vm3941_vm10, %v3943_v6, %v3939_v47  ;;  %vm3953_vm9 = vmor %vm3951_vm11, %vm3952_vm0  ;;  %v3972_v63 = vand.u32 2147483648, %v3879_v9  ;;  %v3970_v13 = vand.u32 2147483647, %v3879_v9 }
 0xc8a   : > { %v3948_v51 = vsub.f32 1.0, %v3947_v45  ;;  %v3945_v55 = vmul.f32 %v7225_v11, %v3944_v4  ;;  %v4072_v11 = vld [vmem:[%s7650_s8 + $0x8] sm:$0xff]  ;;  %vm3966_vm15 = vweird.f32 %v3879_v9  ;;  %vm7653_vm0 = vmmov %vm7652_vm5 }
 0xc8b   : > { %4117 = vmatpush.msrb.mxu1 %v4072_v11  ;;  %v3973_v56 = vor.u32 1.1754944e-38, %v3972_v63  ;;  %vm3971_vm3 = vcmp.eq.f32.partialorder %v3970_v13, 8.507059e+37 }
 0xc8c   : > { %v3949_v10 = vmul.f32 %v4976_v49, %v3948_v51  ;;  %4657 = vmatmul.msk.f32.gmra.mxu2 %vm7649_vm6, %v3945_v55  ;;  %v4880_v55 = vld [vmem:[%s7663_s28] ss:$0 sm:$0xff] }
 0xc8e   : > { %v3950_v61 = vadd.f32 %v4976_v49, %v3949_v10 }
 0xc8f   : > { %v4978_v52 = vpop.eup %4977 }
 0xc90   : > { %v3962_v3 = vmul.f32 %v4978_v52, %v3879_v9  ;;  %v3882_v41 = vpop.xlane.xlu2 %3881  ;;  %v3954_v43 = vsel %vm3953_vm9, %v4976_v49, %v3950_v61  ;;  %vm3967_vm13 = vweird.f32 %v4978_v52 }
 0xc91   : > { %4979 = vrcp.f32 %v3882_v41  ;;  %v3959_v33 = vsel %vm3956_vm12, %v3958_v44, %v3954_v43  ;;  %vm3968_vm2 = vmor %vm3966_vm15, %vm3967_vm13  ;;  %v3987_v19 = vand.u32 2147483648, %v3882_v41  ;;  %v3985_v35 = vand.u32 2147483647, %v3882_v41 }
 0xc92   : > { %v3963_v31 = vsub.f32 1.0, %v3962_v3  ;;  %v3960_v39 = vmul.f32 %v7229_v62, %v3959_v33  ;;  %vm3981_vm1 = vweird.f32 %v3882_v41  ;;  %vm7654_vm12 = vmmov %vm7653_vm0  ;;  %vm7655_vm13 = vcmask 261120  }
 0xc93   : > { %v3988_v21 = vor.u32 1.1754944e-38, %v3987_v19  ;;  %vm3986_vm8 = vcmp.eq.f32.partialorder %v3985_v35, 8.507059e+37  ;;  %vm7657_vm15 = vmmov %vm7655_vm13 }
 0xc94   : > { %v3964_v60 = vmul.f32 %v4978_v52, %v3963_v31  ;;  %4658 = vmatmul.msk.f32.gmra.mxu2 %vm7651_vm14, %v3960_v39  ;;  %vm7656_vm14 = vmmov %vm7655_vm13 }
 0xc96   : > { %v3965_v5 = vadd.f32 %v4978_v52, %v3964_v60 }
 0xc97   : > { %v4980_v15 = vpop.eup %4979 }
 0xc98   : > { %v3969_v20 = vsel %vm3968_vm2, %v4978_v52, %v3965_v5  ;;  %v3977_v37 = vmul.f32 %v4980_v15, %v3882_v41  ;;  %v3885_v12 = vpop.xlane.xlu0 %3884  ;;  %vm3982_vm4 = vweird.f32 %v4980_v15  ;;  %vm7658_vm2 = vmmov %vm7655_vm13 }
 0xc99   : > { %4981 = vrcp.f32 %v3885_v12  ;;  %v3974_v17 = vsel %vm3971_vm3, %v3973_v56, %v3969_v20  ;;  %vm3983_vm7 = vmor %vm3981_vm1, %vm3982_vm4  ;;  %v4002_v57 = vand.u32 2147483648, %v3885_v12  ;;  %vm3996_vm6 = vweird.f32 %v3885_v12 }
 0xc9a   : > { %v3978_v28 = vsub.f32 1.0, %v3977_v37  ;;  %v3975_v62 = vmul.f32 %v7233_v38, %v3974_v17  ;;  %v4000_v38 = vand.u32 2147483647, %v3885_v12  ;;  %vm7659_vm3 = vmmov %vm7658_vm2 }
 0xc9b   : > { %v4003_v42 = vor.u32 1.1754944e-38, %v4002_v57  ;;  %vm7660_vm4 = vmmov %vm7658_vm2 }
 0xc9c   : > { %v3979_v22 = vmul.f32 %v4980_v15, %v3978_v28  ;;  %4659 = vmatmul.msk.f32.gmra.mxu2 %vm7652_vm5, %v3975_v62  ;;  %vm4001_vm9 = vcmp.eq.f32.partialorder %v4000_v38, 8.507059e+37  ;;  %vm7661_vm5 = vmmov %vm7658_vm2 }
 0xc9d   : > { %vm7662_vm1 = vmmov %vm7658_vm2 }
 0xc9e   : > { %v3980_v2 = vadd.f32 %v4980_v15, %v3979_v22 }
 0xc9f   : > { %v4982_v16 = vpop.eup %4981 }
 0xca0   : > { %v3984_v50 = vsel %vm3983_vm7, %v4980_v15, %v3980_v2  ;;  %v3992_v0 = vmul.f32 %v4982_v16, %v3885_v12  ;;  %vm3997_vm10 = vweird.f32 %v4982_v16  ;;  %vm7665_vm7 = vmmov %vm7662_vm1 }
 0xca1   : > { %v3989_v54 = vsel %vm3986_vm8, %v3988_v21, %v3984_v50  ;;  %vm3998_vm11 = vmor %vm3996_vm6, %vm3997_vm10 }
 0xca2   : > { %v3993_v14 = vsub.f32 1.0, %v3992_v0  ;;  %v3990_v23 = vmul.f32 %v7237_v34, %v3989_v54  ;;  %v4071_v34 = vld [vmem:[%s7650_s8] sm:$0xff]  ;;  %vm7666_vm8 = vmmov %vm7662_vm1 }
 0xca3   : > { %4118 = vmatpush.msrb.mxu1 %v4071_v34  ;;  %vm7667_vm10 = vmmov %vm7662_vm1 }
 0xca4   : > { %v3994_v25 = vmul.f32 %v4982_v16, %v3993_v14  ;;  %4660 = vmatmul.msk.f32.gmra.mxu2 %vm7653_vm0, %v3990_v23  ;;  %vm7668_vm0 = vmmov %vm7662_vm1 }
 0xca5   : > { %vm7669_vm6 = vmmov %vm7668_vm0 }
 0xca6   : > { %v3995_v18 = vadd.f32 %v4982_v16, %v3994_v25 }
 0xca8   : > { %v3999_v24 = vsel %vm3998_vm11, %v4982_v16, %v3995_v18  ;;  %vm7670_vm11 = vmmov %vm7668_vm0 }
 0xca9   : > { %v4004_v27 = vsel %vm4001_vm9, %v4003_v42, %v3999_v24  ;;  %vm7671_vm9 = vmmov %vm7668_vm0 }
 0xcaa   : > { %v4005_v32 = vmul.f32 %v7241_v30, %v4004_v27 }
 0xcac   : > { %4661 = vmatmul.msk.f32.gmra.mxu2 %vm7654_vm12, %v4005_v32  ;;  %vm7672_vm12 = vmmov %vm7668_vm0 }
 0xcf7   : > { %v4047_v49 = vpop.f32.mrf.mxu2 }
 0xcf8   : > { %4662 = vmatmul.msk.f32.vlgmr.msrb.gmra.mxu1 %vm7655_vm13, %v4047_v49 }
 0xcff   : > { %v4050_v6 = vpop.f32.mrf.mxu2 }
 0xd00   : > { %4663 = vmatmul.msk.f32.gmra.mxu1 %vm7656_vm14, %v4050_v6 }
 0xd07   : > { %v4053_v45 = vpop.f32.mrf.mxu2 }
 0xd08   : > { %4664 = vmatmul.msk.f32.gmra.mxu1 %vm7657_vm15, %v4053_v45 }
 0xd0f   : > { %v4056_v9 = vpop.f32.mrf.mxu2 }
 0xd10   : > { %4665 = vmatmul.msk.f32.gmra.mxu1 %vm7658_vm2, %v4056_v9 }
 0xd17   : > { %v4059_v30 = vpop.f32.mrf.mxu2 }
 0xd18   : > { %4666 = vmatmul.msk.f32.gmra.mxu1 %vm7659_vm3, %v4059_v30 }
 0xd1f   : > { %v4062_v47 = vpop.f32.mrf.mxu2 }
 0xd20   : > { %4667 = vmatmul.msk.f32.gmra.mxu1 %vm7660_vm4, %v4062_v47 }
 0xd27   : > { %v4065_v51 = vpop.f32.mrf.mxu2 }
 0xd28   : > { %4668 = vmatmul.msk.f32.gmra.mxu1 %vm7661_vm5, %v4065_v51 }
 0xd2f   : > { %v4068_v4 = vpop.f32.mrf.mxu2 }
 0xd30   : > { %4669 = vmatmul.msk.f32.gmra.mxu1 %vm7662_vm1, %v4068_v4 }
 0xd75   : > { %v4120_v10 = vpop.f32.mrf.mxu1 }
 0xd76   : > { %v4121_v48 = vadd.f32 %v4880_v55, %v4120_v10 }
 0xd78   : > { %v4144_v7 = vadd.f32 %v4121_v48, %v7071_v53 }
 0xd7a   : > { %4152 = vst.msk [vmem:[%s923_s5] sm:$0xff] %vm7665_vm7, %v4144_v7 }
 0xd7d   : > { %v4123_v26 = vpop.f32.mrf.mxu1 }
 0xd7e   : > { %v4124_v59 = vadd.f32 %v4880_v55, %v4123_v26 }
 0xd80   : > { %v4145_v61 = vadd.f32 %v4124_v59, %v7116_v8 }
 0xd82   : > { %4153 = vst.msk [vmem:[%s923_s5 + $0x8] sm:$0xff] %vm7666_vm8, %v4145_v61 }
 0xd85   : > { %v4126_v52 = vpop.f32.mrf.mxu1 }
 0xd86   : > { %v4127_v11 = vadd.f32 %v4880_v55, %v4126_v52 }
 0xd88   : > { %v4146_v44 = vadd.f32 %v4127_v11, %v7113_v58 }
 0xd8a   : > { %4154 = vst.msk [vmem:[%s923_s5 + $0x10] sm:$0xff] %vm7667_vm10, %v4146_v44 }
 0xd8d   : > { %v4129_v3 = vpop.f32.mrf.mxu1 }
 0xd8e   : > { %v4130_v41 = vadd.f32 %v4880_v55, %v4129_v3 }
 0xd90   : > { %v4147_v43 = vadd.f32 %v4130_v41, %v7110_v1 }
 0xd92   : > { %4155 = vst.msk [vmem:[%s923_s5 + $0x18] sm:$0xff] %vm7668_vm0, %v4147_v43 }
 0xd95   : > { %v4132_v53 = vpop.f32.mrf.mxu1 }
 0xd96   : > { %v4133_v31 = vadd.f32 %v4880_v55, %v4132_v53 }
 0xd98   : > { %v4148_v33 = vadd.f32 %v4133_v31, %v7104_v29 }
 0xd9a   : > { %4156 = vst.msk [vmem:[%s923_s5 + $0x20] sm:$0xff] %vm7669_vm6, %v4148_v33 }
 0xd9d   : > { %v4135_v8 = vpop.f32.mrf.mxu1 }
 0xd9e   : > { %v4136_v39 = vadd.f32 %v4880_v55, %v4135_v8 }
 0xda0   : > { %v4149_v60 = vadd.f32 %v4136_v39, %v7098_v46 }
 0xda2   : > { %4157 = vst.msk [vmem:[%s923_s5 + $0x28] sm:$0xff] %vm7670_vm11, %v4149_v60 }
 0xda5   : > { %v4138_v58 = vpop.f32.mrf.mxu1 }
 0xda6   : > { %v4139_v63 = vadd.f32 %v4880_v55, %v4138_v58 }
 0xda8   : > { %v4150_v13 = vadd.f32 %v4139_v63, %v7093_v36 }
 0xdaa   : > { %4158 = vst.msk [vmem:[%s923_s5 + $0x30] sm:$0xff] %vm7671_vm9, %v4150_v13 }
 0xdad   : > { %v4141_v1 = vpop.f32.mrf.mxu1 }
 0xdae   : > { %v4142_v5 = vadd.f32 %v4880_v55, %v4141_v1 }
 0xdb0   : > { %v4151_v15 = vadd.f32 %v4142_v5, %v7088_v40 }
 0xdb2   : > { %4159 = vst.msk [vmem:[%s923_s5 + $0x38] sm:$0xff] %vm7672_vm12, %v4151_v15 }
 0xdb3 PF: > { %p39_p1 = scmp.ge.s32.totalorder %s5807_s30, 4   ;;  %s7673_s2 = smov %s5533_s25 }
 0xdb4   : > { %s7674_s25 = smov %s5537_s26  ;;  %s7675_s26 = smov %s5818_s7 }
 0xdb5   : > { %s7676_s27 = smov %s5807_s30  ;;  %41 = sbr.rel (!%p39_p1) target bundleno = 25 (0x19), region = 224 }
 0xdba   :  { %4181 = vsyncpa [#allocation5], 1 }
 0xdbb   :  { %4183 = vsyncpa [#allocation5 + $0x1], 1 }
 0xdbc   :  { %4184 = vsyncpa [#allocation7], 1 }
 0xdbd   :  { %4185 = vsyncpa [#allocation10], 1 }
 0xdbe   :  { %4187 = vsyncpa [#allocation10 + $0x1], 1 }
 0xdbf   :  { %4188 = vsyncpa [#allocation13], 1 }
 0xdc0   :  { %4189 = vsyncpa [#allocation16], 1 }
 0xdc1   :  { %4190 = vsyncpa [#allocation19], 1 }
 0xdc2   :  { %4191 = vsyncpa [#allocation22], 1 }
 0xdc3   :  { %4192 = vsyncpa [#allocation25], 1 }
 0xdc4   :  { %4193 = vsyncpa [#allocation28], 1 }

</bundles_post_ra>
